<compile_context>
chip_gen: v7x
topology: tpu7x:2x2x1
jax: 0.10.0
libtpu: 0.0.40
codegen_flags: <defaults>
</compile_context>

<pallas_src>
import functools

import numpy as np
import jax
import jax.numpy as jnp
from jax.experimental import pallas as pl
from jax.experimental.pallas import tpu as pltpu


# ----------------------------------------------------------------------------
# Fused forward kernel (one grid step = one batch tile of BT samples).
# ----------------------------------------------------------------------------
def _fused_forward_kernel(x_ref, mask_ref, w1_ref, b1_ref, w2_ref, b2_ref,
                          fw1_ref, fb1_ref, fw2_ref, fb2_ref, o_ref,
                          *, W, HW, BT, C2):
    N = BT * HW
    taps = [(dh, dw) for dh in (-1, 0, 1) for dw in (-1, 0, 1)]

    def conv3x3_relu(x, w_ref, b_ref):
        # x: (Cin, BT*HW) f32, batch-major / spatial-minor along lanes.
        # Each tap is a lane rotation (XLU) + 0/1 border mask (VALU); the 9
        # taps are stacked along sublanes and consumed by ONE MXU dot with
        # K = 9*Cin.
        pieces = []
        for t, (dh, dw) in enumerate(taps):
            shift = (-(dh * W + dw)) % N            # modulo the FULL lane extent
            shifted = pltpu.roll(x, shift=shift, axis=1) if shift else x
            pieces.append(shifted * mask_ref[t])    # zero padding / no x-sample leak
        rhs = jnp.concatenate(pieces, axis=0).astype(jnp.bfloat16)  # (9*Cin, N)
        acc = jnp.dot(w_ref[...], rhs, preferred_element_type=jnp.float32)
        return jnp.maximum(acc + b_ref[...], 0.0)   # bias (Cout,1) over lanes

    h1 = conv3x3_relu(x_ref[...], w1_ref, b1_ref)   # (C1, BT*HW)
    h2 = conv3x3_relu(h1, w2_ref, b2_ref)           # (C2, BT*HW)

    # NCHW flatten -> (BT, C2*HW).  Per-sample rows are built with
    # 128-lane-aligned slices: lane-concat the C2 channel slabs of sample b,
    # then sublane-concat the BT rows.
    rows = [
        jnp.concatenate(
            [h2[c:c + 1, b * HW:(b + 1) * HW] for c in range(C2)], axis=1)
        for b in range(BT)
    ]
    flat = jnp.concatenate(rows, axis=0).astype(jnp.bfloat16)       # (BT, C2*HW)

    # fc1: one batched matmul (BT, C2*HW) @ (C2*HW, hidden), f32 accumulate.
    z = jnp.dot(flat, fw1_ref[...],
                preferred_element_type=jnp.float32) + fb1_ref[...]
    z = jnp.maximum(z, 0.0)

    # fc2 + softmax over a lane-dense (BT, 128) block.  Padded class columns
    # have weight 0 and bias -1e9, so exp() underflows to exactly 0.
    logits = jnp.dot(z.astype(jnp.bfloat16), fw2_ref[...],
                     preferred_element_type=jnp.float32) + fb2_ref[...]
    m = jnp.max(logits, axis=-1, keepdims=True)
    e = jnp.exp(logits - m)
    denom = jnp.sum(e, axis=-1, keepdims=True)
    r = pl.reciprocal(denom, approx=True)           # EUP slot
    r = r * (2.0 - denom * r)                       # one Newton step -> f32 accuracy
    o_ref[...] = (e * r).astype(o_ref.dtype)


# ----------------------------------------------------------------------------
# Host-side (trace-time) constant prep.
# ----------------------------------------------------------------------------
def _conv_border_masks(H, W, bt):
    """(9, 1, bt*H*W) f32 0/1 masks implementing 'same' zero padding,
    tiled per sample along the lane axis."""
    hh = np.arange(H).reshape(H, 1)
    ww = np.arange(W).reshape(1, W)
    masks = []
    for dh in (-1, 0, 1):
        for dw in (-1, 0, 1):
            valid = ((hh + dh >= 0) & (hh + dh < H) &
                     (ww + dw >= 0) & (ww + dw < W))
            masks.append(np.tile(valid.astype(np.float32).reshape(1, H * W),
                                 (1, bt)))
    return jnp.asarray(np.stack(masks, axis=0))


def _fuse_conv_taps(w, cin_pad):
    """PyTorch (Cout, Cin, 3, 3) -> (Cout, 9*Cin_pad) bf16,
    K index = (kh*3 + kw)*Cin_pad + ci (matches the kernel's tap stack)."""
    co, ci, kh, kw = w.shape
    if cin_pad != ci:
        w = jnp.pad(w, ((0, 0), (0, cin_pad - ci), (0, 0), (0, 0)))
    return jnp.transpose(w, (0, 2, 3, 1)).reshape(
        co, kh * kw * cin_pad).astype(jnp.bfloat16)


# ----------------------------------------------------------------------------
# AdversarialSSDAController.forward: pred_arr = classifier(encoder(x))
# ----------------------------------------------------------------------------
def adversarial_ssda_forward(params, x, *, btile=8):
    B, Cin, H, W = x.shape
    HW = H * W
    C1 = params["conv1_w"].shape[0]
    C2 = params["conv2_w"].shape[0]
    hidden = params["fc1_w"].shape[1]
    n_cls = params["fc2_w"].shape[1]

    cin_p = -(-Cin // 8) * 8                      # channel pad to sublane multiple
    bt = max(8, -(-btile // 8) * 8)               # batch tile (multiple of 8)
    b_pad = -(-B // bt) * bt
    nt = b_pad // bt
    n_lanes = bt * HW
    ncls_p = -(-n_cls // 128) * 128               # lane-dense output width

    # input: (B, Cin, H, W) -> per-tile (cin_p, bt*HW), batch along lanes.
    xf = x.reshape(B, Cin, HW).astype(jnp.float32)
    xf = jnp.pad(xf, ((0, b_pad - B), (0, cin_p - Cin), (0, 0)))
    xf = xf.reshape(nt, bt, cin_p, HW).transpose(0, 2, 1, 3)
    xf = xf.reshape(nt * cin_p, n_lanes)

    masks = _conv_border_masks(H, W, bt)                          # (9, 1, bt*HW) f32
    w1f = _fuse_conv_taps(params["conv1_w"], cin_p)               # (C1, 9*cin_p) bf16
    w2f = _fuse_conv_taps(params["conv2_w"], C1)                  # (C2, 9*C1)    bf16
    b1 = params["conv1_b"].reshape(C1, 1).astype(jnp.float32)
    b2 = params["conv2_b"].reshape(C2, 1).astype(jnp.float32)
    fw1 = params["fc1_w"].astype(jnp.bfloat16)                    # (C2*HW, hidden)
    fb1 = params["fc1_b"].reshape(1, hidden).astype(jnp.float32)
    fw2 = jnp.pad(params["fc2_w"],
                  ((0, 0), (0, ncls_p - n_cls))).astype(jnp.bfloat16)
    fb2 = jnp.pad(params["fc2_b"].reshape(1, n_cls),
                  ((0, 0), (0, ncls_p - n_cls)),
                  constant_values=-1e9).astype(jnp.float32)

    kernel = functools.partial(_fused_forward_kernel, W=W, HW=HW, BT=bt, C2=C2)

    out = pl.pallas_call(
        kernel,
        out_shape=jax.ShapeDtypeStruct((b_pad, ncls_p), jnp.float32),
        grid=(nt,),
        in_specs=[
            pl.BlockSpec((cin_p, n_lanes), lambda i: (i, 0)),     # x (per batch tile)
            pl.BlockSpec(masks.shape, lambda i: (0, 0, 0)),
            pl.BlockSpec(w1f.shape, lambda i: (0, 0)),
            pl.BlockSpec(b1.shape, lambda i: (0, 0)),
            pl.BlockSpec(w2f.shape, lambda i: (0, 0)),
            pl.BlockSpec(b2.shape, lambda i: (0, 0)),
            pl.BlockSpec(fw1.shape, lambda i: (0, 0)),
            pl.BlockSpec(fb1.shape, lambda i: (0, 0)),
            pl.BlockSpec(fw2.shape, lambda i: (0, 0)),
            pl.BlockSpec(fb2.shape, lambda i: (0, 0)),
        ],
        out_specs=pl.BlockSpec((bt, ncls_p), lambda i: (i, 0)),
        compiler_params=pltpu.CompilerParams(
            dimension_semantics=("parallel",),
        ),
    )(xf, masks, w1f, b1, w2f, b2, fw1, fb1, fw2, fb2)
    return out[:B, :n_cls]


# ----------------------------------------------------------------------------
# Deterministic synthetic parameters (shapes implied by forward()).
# ----------------------------------------------------------------------------
def init_params(key, in_ch=4, enc_ch=8, hidden=32, n_classes=10, hw=16):
    ks = jax.random.split(key, 4)

    def xavier(k, shape, fan_in, fan_out):
        scale = jnp.sqrt(2.0 / (fan_in + fan_out)).astype(jnp.float32)
        return scale * jax.random.normal(k, shape, dtype=jnp.float32)

    return {
        "conv1_w": xavier(ks[0], (enc_ch, in_ch, 3, 3), in_ch * 9, enc_ch * 9),
        "conv1_b": jnp.zeros((enc_ch,), jnp.float32),
        "conv2_w": xavier(ks[1], (enc_ch, enc_ch, 3, 3), enc_ch * 9, enc_ch * 9),
        "conv2_b": jnp.zeros((enc_ch,), jnp.float32),
        # stored as (in_features, out_features); transpose torch Linear weights.
        "fc1_w": xavier(ks[2], (enc_ch * hw * hw, hidden), enc_ch * hw * hw, hidden),
        "fc1_b": jnp.zeros((hidden,), jnp.float32),
        "fc2_w": xavier(ks[3], (hidden, n_classes), hidden, n_classes),
        "fc2_b": jnp.zeros((n_classes,), jnp.float32),
    }


if __name__ == "__main__":
    key = jax.random.PRNGKey(0)
    k_param, k_x = jax.random.split(key)
    params = init_params(k_param)
    x = jax.random.normal(k_x, (2, 4, 16, 16), dtype=jnp.float32)   # NCHW

    fwd = jax.jit(adversarial_ssda_forward)
    pred = jax.block_until_ready(fwd(params, x))

    assert pred.shape == (2, 10)
    assert bool(jnp.all(jnp.isfinite(pred)))
    # softmax rows sum to ~1
    assert bool(jnp.allclose(jnp.sum(pred, axis=-1), 1.0, atol=1e-3))
    print("KERNEL_OK")
</pallas_src>

<mosaic_0001>
module attributes {stable_mosaic.version = 11 : i64} {
  func.func @_fused_forward_kernel(%arg0: i32, %arg1: memref<8x2048xf32, #tpu.memory_space<vmem>>, %arg2: memref<9x1x2048xf32, #tpu.memory_space<vmem>>, %arg3: memref<8x72xbf16, #tpu.memory_space<vmem>>, %arg4: memref<8x1xf32, #tpu.memory_space<vmem>>, %arg5: memref<8x72xbf16, #tpu.memory_space<vmem>>, %arg6: memref<8x1xf32, #tpu.memory_space<vmem>>, %arg7: memref<2048x32xbf16, #tpu.memory_space<vmem>>, %arg8: memref<1x32xf32, #tpu.memory_space<vmem>>, %arg9: memref<32x128xbf16, #tpu.memory_space<vmem>>, %arg10: memref<1x128xf32, #tpu.memory_space<vmem>>, %arg11: memref<8x128xf32, #tpu.memory_space<vmem>>) attributes {dimension_semantics = [#tpu.dimension_semantics<parallel>], iteration_bounds = array<i64: 1>, scalar_prefetch = 0 : i64, scratch_operands = 0 : i64, tpu.core_type = #tpu.core_type<tc>, window_params = [{transform_indices = @transform_0, window_bounds = array<i64: 8, 2048>}, {pipeline_mode = #tpu.pipeline_mode<synchronous>, transform_indices = @transform_1, window_bounds = array<i64: 9, 1, 2048>}, {pipeline_mode = #tpu.pipeline_mode<synchronous>, transform_indices = @transform_2, window_bounds = array<i64: 8, 72>}, {pipeline_mode = #tpu.pipeline_mode<synchronous>, transform_indices = @transform_3, window_bounds = array<i64: 8, 1>}, {pipeline_mode = #tpu.pipeline_mode<synchronous>, transform_indices = @transform_4, window_bounds = array<i64: 8, 72>}, {pipeline_mode = #tpu.pipeline_mode<synchronous>, transform_indices = @transform_5, window_bounds = array<i64: 8, 1>}, {pipeline_mode = #tpu.pipeline_mode<synchronous>, transform_indices = @transform_6, window_bounds = array<i64: 2048, 32>}, {pipeline_mode = #tpu.pipeline_mode<synchronous>, transform_indices = @transform_7, window_bounds = array<i64: 1, 32>}, {pipeline_mode = #tpu.pipeline_mode<synchronous>, transform_indices = @transform_8, window_bounds = array<i64: 32, 128>}, {pipeline_mode = #tpu.pipeline_mode<synchronous>, transform_indices = @transform_9, window_bounds = array<i64: 1, 128>}, {transform_indices = @transform_10, window_bounds = array<i64: 8, 128>}]} {
    %c0 = arith.constant 0 : index
    %c0_0 = arith.constant 0 : index
    %0 = vector.load %arg1[%c0, %c0_0] : memref<8x2048xf32, #tpu.memory_space<vmem>>, vector<8x2048xf32>
    %c17_i32 = arith.constant 17 : i32
    %1 = tpu.dynamic_rotate %0 by %c17_i32 dim 1 : vector<8x2048xf32>, i32 -> vector<8x2048xf32>
    %c0_1 = arith.constant 0 : index
    %c0_2 = arith.constant 0 : index
    %c0_3 = arith.constant 0 : index
    %2 = vector.load %arg2[%c0_1, %c0_2, %c0_3] : memref<9x1x2048xf32, #tpu.memory_space<vmem>>, vector<1x1x2048xf32>
    %3 = vector.shape_cast %2 : vector<1x1x2048xf32> to vector<1x2048xf32>
    %4 = vector.broadcast %3 : vector<1x2048xf32> to vector<8x2048xf32>
    %5 = arith.mulf %1, %4 : vector<8x2048xf32>
    %c16_i32 = arith.constant 16 : i32
    %6 = tpu.dynamic_rotate %0 by %c16_i32 dim 1 : vector<8x2048xf32>, i32 -> vector<8x2048xf32>
    %c1 = arith.constant 1 : index
    %c0_4 = arith.constant 0 : index
    %c0_5 = arith.constant 0 : index
    %7 = vector.load %arg2[%c1, %c0_4, %c0_5] : memref<9x1x2048xf32, #tpu.memory_space<vmem>>, vector<1x1x2048xf32>
    %8 = vector.shape_cast %7 : vector<1x1x2048xf32> to vector<1x2048xf32>
    %9 = vector.broadcast %8 : vector<1x2048xf32> to vector<8x2048xf32>
    %10 = arith.mulf %6, %9 : vector<8x2048xf32>
    %c15_i32 = arith.constant 15 : i32
    %11 = tpu.dynamic_rotate %0 by %c15_i32 dim 1 : vector<8x2048xf32>, i32 -> vector<8x2048xf32>
    %c2 = arith.constant 2 : index
    %c0_6 = arith.constant 0 : index
    %c0_7 = arith.constant 0 : index
    %12 = vector.load %arg2[%c2, %c0_6, %c0_7] : memref<9x1x2048xf32, #tpu.memory_space<vmem>>, vector<1x1x2048xf32>
    %13 = vector.shape_cast %12 : vector<1x1x2048xf32> to vector<1x2048xf32>
    %14 = vector.broadcast %13 : vector<1x2048xf32> to vector<8x2048xf32>
    %15 = arith.mulf %11, %14 : vector<8x2048xf32>
    %c1_i32 = arith.constant 1 : i32
    %16 = tpu.dynamic_rotate %0 by %c1_i32 dim 1 : vector<8x2048xf32>, i32 -> vector<8x2048xf32>
    %c3 = arith.constant 3 : index
    %c0_8 = arith.constant 0 : index
    %c0_9 = arith.constant 0 : index
    %17 = vector.load %arg2[%c3, %c0_8, %c0_9] : memref<9x1x2048xf32, #tpu.memory_space<vmem>>, vector<1x1x2048xf32>
    %18 = vector.shape_cast %17 : vector<1x1x2048xf32> to vector<1x2048xf32>
    %19 = vector.broadcast %18 : vector<1x2048xf32> to vector<8x2048xf32>
    %20 = arith.mulf %16, %19 : vector<8x2048xf32>
    %c4 = arith.constant 4 : index
    %c0_10 = arith.constant 0 : index
    %c0_11 = arith.constant 0 : index
    %21 = vector.load %arg2[%c4, %c0_10, %c0_11] : memref<9x1x2048xf32, #tpu.memory_space<vmem>>, vector<1x1x2048xf32>
    %22 = vector.shape_cast %21 : vector<1x1x2048xf32> to vector<1x2048xf32>
    %23 = vector.broadcast %22 : vector<1x2048xf32> to vector<8x2048xf32>
    %24 = arith.mulf %0, %23 : vector<8x2048xf32>
    %c2047_i32 = arith.constant 2047 : i32
    %25 = tpu.dynamic_rotate %0 by %c2047_i32 dim 1 : vector<8x2048xf32>, i32 -> vector<8x2048xf32>
    %c5 = arith.constant 5 : index
    %c0_12 = arith.constant 0 : index
    %c0_13 = arith.constant 0 : index
    %26 = vector.load %arg2[%c5, %c0_12, %c0_13] : memref<9x1x2048xf32, #tpu.memory_space<vmem>>, vector<1x1x2048xf32>
    %27 = vector.shape_cast %26 : vector<1x1x2048xf32> to vector<1x2048xf32>
    %28 = vector.broadcast %27 : vector<1x2048xf32> to vector<8x2048xf32>
    %29 = arith.mulf %25, %28 : vector<8x2048xf32>
    %c2033_i32 = arith.constant 2033 : i32
    %30 = tpu.dynamic_rotate %0 by %c2033_i32 dim 1 : vector<8x2048xf32>, i32 -> vector<8x2048xf32>
    %c6 = arith.constant 6 : index
    %c0_14 = arith.constant 0 : index
    %c0_15 = arith.constant 0 : index
    %31 = vector.load %arg2[%c6, %c0_14, %c0_15] : memref<9x1x2048xf32, #tpu.memory_space<vmem>>, vector<1x1x2048xf32>
    %32 = vector.shape_cast %31 : vector<1x1x2048xf32> to vector<1x2048xf32>
    %33 = vector.broadcast %32 : vector<1x2048xf32> to vector<8x2048xf32>
    %34 = arith.mulf %30, %33 : vector<8x2048xf32>
    %c2032_i32 = arith.constant 2032 : i32
    %35 = tpu.dynamic_rotate %0 by %c2032_i32 dim 1 : vector<8x2048xf32>, i32 -> vector<8x2048xf32>
    %c7 = arith.constant 7 : index
    %c0_16 = arith.constant 0 : index
    %c0_17 = arith.constant 0 : index
    %36 = vector.load %arg2[%c7, %c0_16, %c0_17] : memref<9x1x2048xf32, #tpu.memory_space<vmem>>, vector<1x1x2048xf32>
    %37 = vector.shape_cast %36 : vector<1x1x2048xf32> to vector<1x2048xf32>
    %38 = vector.broadcast %37 : vector<1x2048xf32> to vector<8x2048xf32>
    %39 = arith.mulf %35, %38 : vector<8x2048xf32>
    %c2031_i32 = arith.constant 2031 : i32
    %40 = tpu.dynamic_rotate %0 by %c2031_i32 dim 1 : vector<8x2048xf32>, i32 -> vector<8x2048xf32>
    %c8 = arith.constant 8 : index
    %c0_18 = arith.constant 0 : index
    %c0_19 = arith.constant 0 : index
    %41 = vector.load %arg2[%c8, %c0_18, %c0_19] : memref<9x1x2048xf32, #tpu.memory_space<vmem>>, vector<1x1x2048xf32>
    %42 = vector.shape_cast %41 : vector<1x1x2048xf32> to vector<1x2048xf32>
    %43 = vector.broadcast %42 : vector<1x2048xf32> to vector<8x2048xf32>
    %44 = arith.mulf %40, %43 : vector<8x2048xf32>
    %45 = tpu.concatenate %5, %10, %15, %20, %24, %29, %34, %39, %44 in 0 : vector<8x2048xf32>, vector<8x2048xf32>, vector<8x2048xf32>, vector<8x2048xf32>, vector<8x2048xf32>, vector<8x2048xf32>, vector<8x2048xf32>, vector<8x2048xf32>, vector<8x2048xf32> -> vector<72x2048xf32>
    %46 = arith.truncf %45 : vector<72x2048xf32> to vector<72x2048xbf16>
    %c0_20 = arith.constant 0 : index
    %c0_21 = arith.constant 0 : index
    %47 = vector.load %arg3[%c0_20, %c0_21] : memref<8x72xbf16, #tpu.memory_space<vmem>>, vector<8x72xbf16>
    %cst = arith.constant dense<0.000000e+00> : vector<8x2048xf32>
    %48 = tpu.matmul %47, %46, %cst {dimension_numbers = #tpu.dot_dimension_numbers<[1], [0], [0], [1], [0, 0, 1, 1], [], []>} : vector<8x72xbf16>, vector<72x2048xbf16>, vector<8x2048xf32> -> vector<8x2048xf32>
    %c0_22 = arith.constant 0 : index
    %c0_23 = arith.constant 0 : index
    %49 = vector.load %arg4[%c0_22, %c0_23] : memref<8x1xf32, #tpu.memory_space<vmem>>, vector<8x1xf32>
    %50 = vector.broadcast %49 : vector<8x1xf32> to vector<8x2048xf32>
    %51 = arith.addf %48, %50 : vector<8x2048xf32>
    %cst_24 = arith.constant 0.000000e+00 : f32
    %52 = vector.broadcast %cst_24 : f32 to vector<8x2048xf32>
    %53 = arith.maximumf %51, %52 : vector<8x2048xf32>
    %c17_i32_25 = arith.constant 17 : i32
    %54 = tpu.dynamic_rotate %53 by %c17_i32_25 dim 1 : vector<8x2048xf32>, i32 -> vector<8x2048xf32>
    %c0_26 = arith.constant 0 : index
    %c0_27 = arith.constant 0 : index
    %c0_28 = arith.constant 0 : index
    %55 = vector.load %arg2[%c0_26, %c0_27, %c0_28] : memref<9x1x2048xf32, #tpu.memory_space<vmem>>, vector<1x1x2048xf32>
    %56 = vector.shape_cast %55 : vector<1x1x2048xf32> to vector<1x2048xf32>
    %57 = vector.broadcast %56 : vector<1x2048xf32> to vector<8x2048xf32>
    %58 = arith.mulf %54, %57 : vector<8x2048xf32>
    %c16_i32_29 = arith.constant 16 : i32
    %59 = tpu.dynamic_rotate %53 by %c16_i32_29 dim 1 : vector<8x2048xf32>, i32 -> vector<8x2048xf32>
    %c1_30 = arith.constant 1 : index
    %c0_31 = arith.constant 0 : index
    %c0_32 = arith.constant 0 : index
    %60 = vector.load %arg2[%c1_30, %c0_31, %c0_32] : memref<9x1x2048xf32, #tpu.memory_space<vmem>>, vector<1x1x2048xf32>
    %61 = vector.shape_cast %60 : vector<1x1x2048xf32> to vector<1x2048xf32>
    %62 = vector.broadcast %61 : vector<1x2048xf32> to vector<8x2048xf32>
    %63 = arith.mulf %59, %62 : vector<8x2048xf32>
    %c15_i32_33 = arith.constant 15 : i32
    %64 = tpu.dynamic_rotate %53 by %c15_i32_33 dim 1 : vector<8x2048xf32>, i32 -> vector<8x2048xf32>
    %c2_34 = arith.constant 2 : index
    %c0_35 = arith.constant 0 : index
    %c0_36 = arith.constant 0 : index
    %65 = vector.load %arg2[%c2_34, %c0_35, %c0_36] : memref<9x1x2048xf32, #tpu.memory_space<vmem>>, vector<1x1x2048xf32>
    %66 = vector.shape_cast %65 : vector<1x1x2048xf32> to vector<1x2048xf32>
    %67 = vector.broadcast %66 : vector<1x2048xf32> to vector<8x2048xf32>
    %68 = arith.mulf %64, %67 : vector<8x2048xf32>
    %c1_i32_37 = arith.constant 1 : i32
    %69 = tpu.dynamic_rotate %53 by %c1_i32_37 dim 1 : vector<8x2048xf32>, i32 -> vector<8x2048xf32>
    %c3_38 = arith.constant 3 : index
    %c0_39 = arith.constant 0 : index
    %c0_40 = arith.constant 0 : index
    %70 = vector.load %arg2[%c3_38, %c0_39, %c0_40] : memref<9x1x2048xf32, #tpu.memory_space<vmem>>, vector<1x1x2048xf32>
    %71 = vector.shape_cast %70 : vector<1x1x2048xf32> to vector<1x2048xf32>
    %72 = vector.broadcast %71 : vector<1x2048xf32> to vector<8x2048xf32>
    %73 = arith.mulf %69, %72 : vector<8x2048xf32>
    %c4_41 = arith.constant 4 : index
    %c0_42 = arith.constant 0 : index
    %c0_43 = arith.constant 0 : index
    %74 = vector.load %arg2[%c4_41, %c0_42, %c0_43] : memref<9x1x2048xf32, #tpu.memory_space<vmem>>, vector<1x1x2048xf32>
    %75 = vector.shape_cast %74 : vector<1x1x2048xf32> to vector<1x2048xf32>
    %76 = vector.broadcast %75 : vector<1x2048xf32> to vector<8x2048xf32>
    %77 = arith.mulf %53, %76 : vector<8x2048xf32>
    %c2047_i32_44 = arith.constant 2047 : i32
    %78 = tpu.dynamic_rotate %53 by %c2047_i32_44 dim 1 : vector<8x2048xf32>, i32 -> vector<8x2048xf32>
    %c5_45 = arith.constant 5 : index
    %c0_46 = arith.constant 0 : index
    %c0_47 = arith.constant 0 : index
    %79 = vector.load %arg2[%c5_45, %c0_46, %c0_47] : memref<9x1x2048xf32, #tpu.memory_space<vmem>>, vector<1x1x2048xf32>
    %80 = vector.shape_cast %79 : vector<1x1x2048xf32> to vector<1x2048xf32>
    %81 = vector.broadcast %80 : vector<1x2048xf32> to vector<8x2048xf32>
    %82 = arith.mulf %78, %81 : vector<8x2048xf32>
    %c2033_i32_48 = arith.constant 2033 : i32
    %83 = tpu.dynamic_rotate %53 by %c2033_i32_48 dim 1 : vector<8x2048xf32>, i32 -> vector<8x2048xf32>
    %c6_49 = arith.constant 6 : index
    %c0_50 = arith.constant 0 : index
    %c0_51 = arith.constant 0 : index
    %84 = vector.load %arg2[%c6_49, %c0_50, %c0_51] : memref<9x1x2048xf32, #tpu.memory_space<vmem>>, vector<1x1x2048xf32>
    %85 = vector.shape_cast %84 : vector<1x1x2048xf32> to vector<1x2048xf32>
    %86 = vector.broadcast %85 : vector<1x2048xf32> to vector<8x2048xf32>
    %87 = arith.mulf %83, %86 : vector<8x2048xf32>
    %c2032_i32_52 = arith.constant 2032 : i32
    %88 = tpu.dynamic_rotate %53 by %c2032_i32_52 dim 1 : vector<8x2048xf32>, i32 -> vector<8x2048xf32>
    %c7_53 = arith.constant 7 : index
    %c0_54 = arith.constant 0 : index
    %c0_55 = arith.constant 0 : index
    %89 = vector.load %arg2[%c7_53, %c0_54, %c0_55] : memref<9x1x2048xf32, #tpu.memory_space<vmem>>, vector<1x1x2048xf32>
    %90 = vector.shape_cast %89 : vector<1x1x2048xf32> to vector<1x2048xf32>
    %91 = vector.broadcast %90 : vector<1x2048xf32> to vector<8x2048xf32>
    %92 = arith.mulf %88, %91 : vector<8x2048xf32>
    %c2031_i32_56 = arith.constant 2031 : i32
    %93 = tpu.dynamic_rotate %53 by %c2031_i32_56 dim 1 : vector<8x2048xf32>, i32 -> vector<8x2048xf32>
    %c8_57 = arith.constant 8 : index
    %c0_58 = arith.constant 0 : index
    %c0_59 = arith.constant 0 : index
    %94 = vector.load %arg2[%c8_57, %c0_58, %c0_59] : memref<9x1x2048xf32, #tpu.memory_space<vmem>>, vector<1x1x2048xf32>
    %95 = vector.shape_cast %94 : vector<1x1x2048xf32> to vector<1x2048xf32>
    %96 = vector.broadcast %95 : vector<1x2048xf32> to vector<8x2048xf32>
    %97 = arith.mulf %93, %96 : vector<8x2048xf32>
    %98 = tpu.concatenate %58, %63, %68, %73, %77, %82, %87, %92, %97 in 0 : vector<8x2048xf32>, vector<8x2048xf32>, vector<8x2048xf32>, vector<8x2048xf32>, vector<8x2048xf32>, vector<8x2048xf32>, vector<8x2048xf32>, vector<8x2048xf32>, vector<8x2048xf32> -> vector<72x2048xf32>
    %99 = arith.truncf %98 : vector<72x2048xf32> to vector<72x2048xbf16>
    %c0_60 = arith.constant 0 : index
    %c0_61 = arith.constant 0 : index
    %100 = vector.load %arg5[%c0_60, %c0_61] : memref<8x72xbf16, #tpu.memory_space<vmem>>, vector<8x72xbf16>
    %cst_62 = arith.constant dense<0.000000e+00> : vector<8x2048xf32>
    %101 = tpu.matmul %100, %99, %cst_62 {dimension_numbers = #tpu.dot_dimension_numbers<[1], [0], [0], [1], [0, 0, 1, 1], [], []>} : vector<8x72xbf16>, vector<72x2048xbf16>, vector<8x2048xf32> -> vector<8x2048xf32>
    %c0_63 = arith.constant 0 : index
    %c0_64 = arith.constant 0 : index
    %102 = vector.load %arg6[%c0_63, %c0_64] : memref<8x1xf32, #tpu.memory_space<vmem>>, vector<8x1xf32>
    %103 = vector.broadcast %102 : vector<8x1xf32> to vector<8x2048xf32>
    %104 = arith.addf %101, %103 : vector<8x2048xf32>
    %cst_65 = arith.constant 0.000000e+00 : f32
    %105 = vector.broadcast %cst_65 : f32 to vector<8x2048xf32>
    %106 = arith.maximumf %104, %105 : vector<8x2048xf32>
    %107 = vector.extract_strided_slice %106 {offsets = [0, 0], sizes = [1, 256], strides = [1, 1]} : vector<8x2048xf32> to vector<1x256xf32>
    %108 = vector.extract_strided_slice %106 {offsets = [1, 0], sizes = [1, 256], strides = [1, 1]} : vector<8x2048xf32> to vector<1x256xf32>
    %109 = vector.extract_strided_slice %106 {offsets = [2, 0], sizes = [1, 256], strides = [1, 1]} : vector<8x2048xf32> to vector<1x256xf32>
    %110 = vector.extract_strided_slice %106 {offsets = [3, 0], sizes = [1, 256], strides = [1, 1]} : vector<8x2048xf32> to vector<1x256xf32>
    %111 = vector.extract_strided_slice %106 {offsets = [4, 0], sizes = [1, 256], strides = [1, 1]} : vector<8x2048xf32> to vector<1x256xf32>
    %112 = vector.extract_strided_slice %106 {offsets = [5, 0], sizes = [1, 256], strides = [1, 1]} : vector<8x2048xf32> to vector<1x256xf32>
    %113 = vector.extract_strided_slice %106 {offsets = [6, 0], sizes = [1, 256], strides = [1, 1]} : vector<8x2048xf32> to vector<1x256xf32>
    %114 = vector.extract_strided_slice %106 {offsets = [7, 0], sizes = [1, 256], strides = [1, 1]} : vector<8x2048xf32> to vector<1x256xf32>
    %115 = tpu.concatenate %107, %108, %109, %110, %111, %112, %113, %114 in 1 : vector<1x256xf32>, vector<1x256xf32>, vector<1x256xf32>, vector<1x256xf32>, vector<1x256xf32>, vector<1x256xf32>, vector<1x256xf32>, vector<1x256xf32> -> vector<1x2048xf32>
    %116 = vector.extract_strided_slice %106 {offsets = [0, 256], sizes = [1, 256], strides = [1, 1]} : vector<8x2048xf32> to vector<1x256xf32>
    %117 = vector.extract_strided_slice %106 {offsets = [1, 256], sizes = [1, 256], strides = [1, 1]} : vector<8x2048xf32> to vector<1x256xf32>
    %118 = vector.extract_strided_slice %106 {offsets = [2, 256], sizes = [1, 256], strides = [1, 1]} : vector<8x2048xf32> to vector<1x256xf32>
    %119 = vector.extract_strided_slice %106 {offsets = [3, 256], sizes = [1, 256], strides = [1, 1]} : vector<8x2048xf32> to vector<1x256xf32>
    %120 = vector.extract_strided_slice %106 {offsets = [4, 256], sizes = [1, 256], strides = [1, 1]} : vector<8x2048xf32> to vector<1x256xf32>
    %121 = vector.extract_strided_slice %106 {offsets = [5, 256], sizes = [1, 256], strides = [1, 1]} : vector<8x2048xf32> to vector<1x256xf32>
    %122 = vector.extract_strided_slice %106 {offsets = [6, 256], sizes = [1, 256], strides = [1, 1]} : vector<8x2048xf32> to vector<1x256xf32>
    %123 = vector.extract_strided_slice %106 {offsets = [7, 256], sizes = [1, 256], strides = [1, 1]} : vector<8x2048xf32> to vector<1x256xf32>
    %124 = tpu.concatenate %116, %117, %118, %119, %120, %121, %122, %123 in 1 : vector<1x256xf32>, vector<1x256xf32>, vector<1x256xf32>, vector<1x256xf32>, vector<1x256xf32>, vector<1x256xf32>, vector<1x256xf32>, vector<1x256xf32> -> vector<1x2048xf32>
    %125 = vector.extract_strided_slice %106 {offsets = [0, 512], sizes = [1, 256], strides = [1, 1]} : vector<8x2048xf32> to vector<1x256xf32>
    %126 = vector.extract_strided_slice %106 {offsets = [1, 512], sizes = [1, 256], strides = [1, 1]} : vector<8x2048xf32> to vector<1x256xf32>
    %127 = vector.extract_strided_slice %106 {offsets = [2, 512], sizes = [1, 256], strides = [1, 1]} : vector<8x2048xf32> to vector<1x256xf32>
    %128 = vector.extract_strided_slice %106 {offsets = [3, 512], sizes = [1, 256], strides = [1, 1]} : vector<8x2048xf32> to vector<1x256xf32>
    %129 = vector.extract_strided_slice %106 {offsets = [4, 512], sizes = [1, 256], strides = [1, 1]} : vector<8x2048xf32> to vector<1x256xf32>
    %130 = vector.extract_strided_slice %106 {offsets = [5, 512], sizes = [1, 256], strides = [1, 1]} : vector<8x2048xf32> to vector<1x256xf32>
    %131 = vector.extract_strided_slice %106 {offsets = [6, 512], sizes = [1, 256], strides = [1, 1]} : vector<8x2048xf32> to vector<1x256xf32>
    %132 = vector.extract_strided_slice %106 {offsets = [7, 512], sizes = [1, 256], strides = [1, 1]} : vector<8x2048xf32> to vector<1x256xf32>
    %133 = tpu.concatenate %125, %126, %127, %128, %129, %130, %131, %132 in 1 : vector<1x256xf32>, vector<1x256xf32>, vector<1x256xf32>, vector<1x256xf32>, vector<1x256xf32>, vector<1x256xf32>, vector<1x256xf32>, vector<1x256xf32> -> vector<1x2048xf32>
    %134 = vector.extract_strided_slice %106 {offsets = [0, 768], sizes = [1, 256], strides = [1, 1]} : vector<8x2048xf32> to vector<1x256xf32>
    %135 = vector.extract_strided_slice %106 {offsets = [1, 768], sizes = [1, 256], strides = [1, 1]} : vector<8x2048xf32> to vector<1x256xf32>
    %136 = vector.extract_strided_slice %106 {offsets = [2, 768], sizes = [1, 256], strides = [1, 1]} : vector<8x2048xf32> to vector<1x256xf32>
    %137 = vector.extract_strided_slice %106 {offsets = [3, 768], sizes = [1, 256], strides = [1, 1]} : vector<8x2048xf32> to vector<1x256xf32>
    %138 = vector.extract_strided_slice %106 {offsets = [4, 768], sizes = [1, 256], strides = [1, 1]} : vector<8x2048xf32> to vector<1x256xf32>
    %139 = vector.extract_strided_slice %106 {offsets = [5, 768], sizes = [1, 256], strides = [1, 1]} : vector<8x2048xf32> to vector<1x256xf32>
    %140 = vector.extract_strided_slice %106 {offsets = [6, 768], sizes = [1, 256], strides = [1, 1]} : vector<8x2048xf32> to vector<1x256xf32>
    %141 = vector.extract_strided_slice %106 {offsets = [7, 768], sizes = [1, 256], strides = [1, 1]} : vector<8x2048xf32> to vector<1x256xf32>
    %142 = tpu.concatenate %134, %135, %136, %137, %138, %139, %140, %141 in 1 : vector<1x256xf32>, vector<1x256xf32>, vector<1x256xf32>, vector<1x256xf32>, vector<1x256xf32>, vector<1x256xf32>, vector<1x256xf32>, vector<1x256xf32> -> vector<1x2048xf32>
    %143 = vector.extract_strided_slice %106 {offsets = [0, 1024], sizes = [1, 256], strides = [1, 1]} : vector<8x2048xf32> to vector<1x256xf32>
    %144 = vector.extract_strided_slice %106 {offsets = [1, 1024], sizes = [1, 256], strides = [1, 1]} : vector<8x2048xf32> to vector<1x256xf32>
    %145 = vector.extract_strided_slice %106 {offsets = [2, 1024], sizes = [1, 256], strides = [1, 1]} : vector<8x2048xf32> to vector<1x256xf32>
    %146 = vector.extract_strided_slice %106 {offsets = [3, 1024], sizes = [1, 256], strides = [1, 1]} : vector<8x2048xf32> to vector<1x256xf32>
    %147 = vector.extract_strided_slice %106 {offsets = [4, 1024], sizes = [1, 256], strides = [1, 1]} : vector<8x2048xf32> to vector<1x256xf32>
    %148 = vector.extract_strided_slice %106 {offsets = [5, 1024], sizes = [1, 256], strides = [1, 1]} : vector<8x2048xf32> to vector<1x256xf32>
    %149 = vector.extract_strided_slice %106 {offsets = [6, 1024], sizes = [1, 256], strides = [1, 1]} : vector<8x2048xf32> to vector<1x256xf32>
    %150 = vector.extract_strided_slice %106 {offsets = [7, 1024], sizes = [1, 256], strides = [1, 1]} : vector<8x2048xf32> to vector<1x256xf32>
    %151 = tpu.concatenate %143, %144, %145, %146, %147, %148, %149, %150 in 1 : vector<1x256xf32>, vector<1x256xf32>, vector<1x256xf32>, vector<1x256xf32>, vector<1x256xf32>, vector<1x256xf32>, vector<1x256xf32>, vector<1x256xf32> -> vector<1x2048xf32>
    %152 = vector.extract_strided_slice %106 {offsets = [0, 1280], sizes = [1, 256], strides = [1, 1]} : vector<8x2048xf32> to vector<1x256xf32>
    %153 = vector.extract_strided_slice %106 {offsets = [1, 1280], sizes = [1, 256], strides = [1, 1]} : vector<8x2048xf32> to vector<1x256xf32>
    %154 = vector.extract_strided_slice %106 {offsets = [2, 1280], sizes = [1, 256], strides = [1, 1]} : vector<8x2048xf32> to vector<1x256xf32>
    %155 = vector.extract_strided_slice %106 {offsets = [3, 1280], sizes = [1, 256], strides = [1, 1]} : vector<8x2048xf32> to vector<1x256xf32>
    %156 = vector.extract_strided_slice %106 {offsets = [4, 1280], sizes = [1, 256], strides = [1, 1]} : vector<8x2048xf32> to vector<1x256xf32>
    %157 = vector.extract_strided_slice %106 {offsets = [5, 1280], sizes = [1, 256], strides = [1, 1]} : vector<8x2048xf32> to vector<1x256xf32>
    %158 = vector.extract_strided_slice %106 {offsets = [6, 1280], sizes = [1, 256], strides = [1, 1]} : vector<8x2048xf32> to vector<1x256xf32>
    %159 = vector.extract_strided_slice %106 {offsets = [7, 1280], sizes = [1, 256], strides = [1, 1]} : vector<8x2048xf32> to vector<1x256xf32>
    %160 = tpu.concatenate %152, %153, %154, %155, %156, %157, %158, %159 in 1 : vector<1x256xf32>, vector<1x256xf32>, vector<1x256xf32>, vector<1x256xf32>, vector<1x256xf32>, vector<1x256xf32>, vector<1x256xf32>, vector<1x256xf32> -> vector<1x2048xf32>
    %161 = vector.extract_strided_slice %106 {offsets = [0, 1536], sizes = [1, 256], strides = [1, 1]} : vector<8x2048xf32> to vector<1x256xf32>
    %162 = vector.extract_strided_slice %106 {offsets = [1, 1536], sizes = [1, 256], strides = [1, 1]} : vector<8x2048xf32> to vector<1x256xf32>
    %163 = vector.extract_strided_slice %106 {offsets = [2, 1536], sizes = [1, 256], strides = [1, 1]} : vector<8x2048xf32> to vector<1x256xf32>
    %164 = vector.extract_strided_slice %106 {offsets = [3, 1536], sizes = [1, 256], strides = [1, 1]} : vector<8x2048xf32> to vector<1x256xf32>
    %165 = vector.extract_strided_slice %106 {offsets = [4, 1536], sizes = [1, 256], strides = [1, 1]} : vector<8x2048xf32> to vector<1x256xf32>
    %166 = vector.extract_strided_slice %106 {offsets = [5, 1536], sizes = [1, 256], strides = [1, 1]} : vector<8x2048xf32> to vector<1x256xf32>
    %167 = vector.extract_strided_slice %106 {offsets = [6, 1536], sizes = [1, 256], strides = [1, 1]} : vector<8x2048xf32> to vector<1x256xf32>
    %168 = vector.extract_strided_slice %106 {offsets = [7, 1536], sizes = [1, 256], strides = [1, 1]} : vector<8x2048xf32> to vector<1x256xf32>
    %169 = tpu.concatenate %161, %162, %163, %164, %165, %166, %167, %168 in 1 : vector<1x256xf32>, vector<1x256xf32>, vector<1x256xf32>, vector<1x256xf32>, vector<1x256xf32>, vector<1x256xf32>, vector<1x256xf32>, vector<1x256xf32> -> vector<1x2048xf32>
    %170 = vector.extract_strided_slice %106 {offsets = [0, 1792], sizes = [1, 256], strides = [1, 1]} : vector<8x2048xf32> to vector<1x256xf32>
    %171 = vector.extract_strided_slice %106 {offsets = [1, 1792], sizes = [1, 256], strides = [1, 1]} : vector<8x2048xf32> to vector<1x256xf32>
    %172 = vector.extract_strided_slice %106 {offsets = [2, 1792], sizes = [1, 256], strides = [1, 1]} : vector<8x2048xf32> to vector<1x256xf32>
    %173 = vector.extract_strided_slice %106 {offsets = [3, 1792], sizes = [1, 256], strides = [1, 1]} : vector<8x2048xf32> to vector<1x256xf32>
    %174 = vector.extract_strided_slice %106 {offsets = [4, 1792], sizes = [1, 256], strides = [1, 1]} : vector<8x2048xf32> to vector<1x256xf32>
    %175 = vector.extract_strided_slice %106 {offsets = [5, 1792], sizes = [1, 256], strides = [1, 1]} : vector<8x2048xf32> to vector<1x256xf32>
    %176 = vector.extract_strided_slice %106 {offsets = [6, 1792], sizes = [1, 256], strides = [1, 1]} : vector<8x2048xf32> to vector<1x256xf32>
    %177 = vector.extract_strided_slice %106 {offsets = [7, 1792], sizes = [1, 256], strides = [1, 1]} : vector<8x2048xf32> to vector<1x256xf32>
    %178 = tpu.concatenate %170, %171, %172, %173, %174, %175, %176, %177 in 1 : vector<1x256xf32>, vector<1x256xf32>, vector<1x256xf32>, vector<1x256xf32>, vector<1x256xf32>, vector<1x256xf32>, vector<1x256xf32>, vector<1x256xf32> -> vector<1x2048xf32>
    %179 = tpu.concatenate %115, %124, %133, %142, %151, %160, %169, %178 in 0 : vector<1x2048xf32>, vector<1x2048xf32>, vector<1x2048xf32>, vector<1x2048xf32>, vector<1x2048xf32>, vector<1x2048xf32>, vector<1x2048xf32>, vector<1x2048xf32> -> vector<8x2048xf32>
    %180 = arith.truncf %179 : vector<8x2048xf32> to vector<8x2048xbf16>
    %c0_66 = arith.constant 0 : index
    %c0_67 = arith.constant 0 : index
    %181 = vector.load %arg7[%c0_66, %c0_67] : memref<2048x32xbf16, #tpu.memory_space<vmem>>, vector<2048x32xbf16>
    %cst_68 = arith.constant dense<0.000000e+00> : vector<8x32xf32>
    %182 = tpu.matmul %180, %181, %cst_68 {dimension_numbers = #tpu.dot_dimension_numbers<[1], [0], [0], [1], [0, 0, 1, 1], [], []>} : vector<8x2048xbf16>, vector<2048x32xbf16>, vector<8x32xf32> -> vector<8x32xf32>
    %c0_69 = arith.constant 0 : index
    %c0_70 = arith.constant 0 : index
    %183 = vector.load %arg8[%c0_69, %c0_70] : memref<1x32xf32, #tpu.memory_space<vmem>>, vector<1x32xf32>
    %184 = vector.broadcast %183 : vector<1x32xf32> to vector<8x32xf32>
    %185 = arith.addf %182, %184 : vector<8x32xf32>
    %cst_71 = arith.constant 0.000000e+00 : f32
    %186 = vector.broadcast %cst_71 : f32 to vector<8x32xf32>
    %187 = arith.maximumf %185, %186 : vector<8x32xf32>
    %188 = arith.truncf %187 : vector<8x32xf32> to vector<8x32xbf16>
    %c0_72 = arith.constant 0 : index
    %c0_73 = arith.constant 0 : index
    %189 = vector.load %arg9[%c0_72, %c0_73] : memref<32x128xbf16, #tpu.memory_space<vmem>>, vector<32x128xbf16>
    %cst_74 = arith.constant dense<0.000000e+00> : vector<8x128xf32>
    %190 = tpu.matmul %188, %189, %cst_74 {dimension_numbers = #tpu.dot_dimension_numbers<[1], [0], [0], [1], [0, 0, 1, 1], [], []>} : vector<8x32xbf16>, vector<32x128xbf16>, vector<8x128xf32> -> vector<8x128xf32>
    %c0_75 = arith.constant 0 : index
    %c0_76 = arith.constant 0 : index
    %191 = vector.load %arg10[%c0_75, %c0_76] : memref<1x128xf32, #tpu.memory_space<vmem>>, vector<1x128xf32>
    %192 = vector.broadcast %191 : vector<1x128xf32> to vector<8x128xf32>
    %193 = arith.addf %190, %192 : vector<8x128xf32>
    %cst_77 = arith.constant dense<0xFF800000> : vector<8xf32>
    %194 = vector.multi_reduction <maximumf>, %193, %cst_77 [1] : vector<8x128xf32> to vector<8xf32>
    %195 = vector.shape_cast %194 : vector<8xf32> to vector<8x1xf32>
    %196 = vector.broadcast %195 : vector<8x1xf32> to vector<8x128xf32>
    %197 = arith.subf %193, %196 : vector<8x128xf32>
    %198 = math.exp %197 : vector<8x128xf32>
    %cst_78 = arith.constant dense<0.000000e+00> : vector<8xf32>
    %199 = vector.multi_reduction <add>, %198, %cst_78 [1] : vector<8x128xf32> to vector<8xf32>
    %200 = vector.shape_cast %199 : vector<8xf32> to vector<8x1xf32>
    %201 = tpu.reciprocal %200 {approx = true} : vector<8x1xf32> -> vector<8x1xf32>
    %202 = arith.mulf %200, %201 : vector<8x1xf32>
    %cst_79 = arith.constant 2.000000e+00 : f32
    %203 = vector.broadcast %cst_79 : f32 to vector<8x1xf32>
    %204 = arith.subf %203, %202 : vector<8x1xf32>
    %205 = arith.mulf %201, %204 : vector<8x1xf32>
    %206 = vector.broadcast %205 : vector<8x1xf32> to vector<8x128xf32>
    %207 = arith.mulf %198, %206 : vector<8x128xf32>
    %c0_80 = arith.constant 0 : index
    %c0_81 = arith.constant 0 : index
    %208 = vector.load %arg11[%c0_80, %c0_81] : memref<8x128xf32, #tpu.memory_space<vmem>>, vector<8x128xf32>
    tpu.vector_store %arg11[%c0_80, %c0_81], %207 {strides = array<i32>} : memref<8x128xf32, #tpu.memory_space<vmem>>, vector<8x128xf32>,
    return
  }
  func.func @transform_0(%arg0: i32) -> (i32, i32) {
    %c0_i32 = arith.constant 0 : i32
    %c0_i32_0 = arith.constant 0 : i32
    return %arg0, %c0_i32 : i32, i32
  }
  func.func @transform_1(%arg0: i32) -> (i32, i32, i32) {
    %c0_i32 = arith.constant 0 : i32
    %c0_i32_0 = arith.constant 0 : i32
    %c0_i32_1 = arith.constant 0 : i32
    %c0_i32_2 = arith.constant 0 : i32
    return %c0_i32, %c0_i32_0, %c0_i32_1 : i32, i32, i32
  }
  func.func @transform_2(%arg0: i32) -> (i32, i32) {
    %c0_i32 = arith.constant 0 : i32
    %c0_i32_0 = arith.constant 0 : i32
    %c0_i32_1 = arith.constant 0 : i32
    return %c0_i32, %c0_i32_0 : i32, i32
  }
  func.func @transform_3(%arg0: i32) -> (i32, i32) {
    %c0_i32 = arith.constant 0 : i32
    %c0_i32_0 = arith.constant 0 : i32
    %c0_i32_1 = arith.constant 0 : i32
    return %c0_i32, %c0_i32_0 : i32, i32
  }
  func.func @transform_4(%arg0: i32) -> (i32, i32) {
    %c0_i32 = arith.constant 0 : i32
    %c0_i32_0 = arith.constant 0 : i32
    %c0_i32_1 = arith.constant 0 : i32
    return %c0_i32, %c0_i32_0 : i32, i32
  }
  func.func @transform_5(%arg0: i32) -> (i32, i32) {
    %c0_i32 = arith.constant 0 : i32
    %c0_i32_0 = arith.constant 0 : i32
    %c0_i32_1 = arith.constant 0 : i32
    return %c0_i32, %c0_i32_0 : i32, i32
  }
  func.func @transform_6(%arg0: i32) -> (i32, i32) {
    %c0_i32 = arith.constant 0 : i32
    %c0_i32_0 = arith.constant 0 : i32
    %c0_i32_1 = arith.constant 0 : i32
    return %c0_i32, %c0_i32_0 : i32, i32
  }
  func.func @transform_7(%arg0: i32) -> (i32, i32) {
    %c0_i32 = arith.constant 0 : i32
    %c0_i32_0 = arith.constant 0 : i32
    %c0_i32_1 = arith.constant 0 : i32
    return %c0_i32, %c0_i32_0 : i32, i32
  }
  func.func @transform_8(%arg0: i32) -> (i32, i32) {
    %c0_i32 = arith.constant 0 : i32
    %c0_i32_0 = arith.constant 0 : i32
    %c0_i32_1 = arith.constant 0 : i32
    return %c0_i32, %c0_i32_0 : i32, i32
  }
  func.func @transform_9(%arg0: i32) -> (i32, i32) {
    %c0_i32 = arith.constant 0 : i32
    %c0_i32_0 = arith.constant 0 : i32
    %c0_i32_1 = arith.constant 0 : i32
    return %c0_i32, %c0_i32_0 : i32, i32
  }
  func.func @transform_10(%arg0: i32) -> (i32, i32) {
    %c0_i32 = arith.constant 0 : i32
    %c0_i32_0 = arith.constant 0 : i32
    return %arg0, %c0_i32 : i32, i32
  }
}

</mosaic_0001>

<bundles_post_ra>
// kernel: adversarial_ssda_forward.1
= control target key start
LH: loop header
LB: loop body
LE: loop exit
PB: predicated region body
PF: predicated region fallthrough
CT: control target
= control target key end

     0   :  { %s5387_s15 = smov 16   ;;  %s5388_s16 = smov 17   ;;  %v9201_v6 = vmov 0   ;;  %v84_v12 = vlaneseq  ;;  %vm1445_vm8 = vcmask 1043456   ;;  %vm1441_vm9 = vcmask 588800   ;;  %s9190_s0 = inlined_call_operand.vmem [shape: f32[8,2048], index: 0, kind: input, shape index: {}]   ;;  %s9191_s1 = inlined_call_operand.vmem [shape: f32[9,1,2048], index: 1, kind: input, shape index: {}]   ;;  %s9192_s2 = inlined_call_operand.vmem [shape: bf16[8,72], index: 2, kind: input, shape index: {}]   ;;  %s9193_s3 = inlined_call_operand.vmem [shape: f32[8,1], index: 3, kind: input, shape index: {}]   ;;  %s9194_s4 = inlined_call_operand.vmem [shape: bf16[8,72], index: 4, kind: input, shape index: {}]   ;;  %s9195_s5 = inlined_call_operand.vmem [shape: f32[8,1], index: 5, kind: input, shape index: {}]   ;;  %s9196_s6 = inlined_call_operand.vmem [shape: bf16[2048,32], index: 6, kind: input, shape index: {}]   ;;  %s9197_s8 = inlined_call_operand.vmem [shape: bf16[32,128], index: 8, kind: input, shape index: {}]   ;;  %s9198_s7 = inlined_call_operand.vmem [shape: f32[1,32], index: 7, kind: input, shape index: {}]   ;;  %s9199_s9 = inlined_call_operand.vmem [shape: f32[1,128], index: 9, kind: input, shape index: {}]   ;;  %s9200_s10 = inlined_call_operand.vmem [shape: f32[8,128], index: 10, kind: output, shape index: {}]  }
   0x1   :  { %v5456_v0 = vld [vmem:[%s9190_s0 + $0x10] sm:$0xff]  ;;  %v5465_v1 = vld [vmem:[%s9190_s0 + $0x18] sm:$0xff]  ;;  %v5474_v2 = vld [vmem:[%s9190_s0 + $0x8] sm:$0xff]  ;;  %s5389_s21 = smov 15   ;;  %s5390_s22 = smov 1   ;;  %1567 = vmatprep.mubr.bf16.mxu1 %v9201_v6  ;;  %1526 = vmatprep.mubr.bf16.mxu0 %v9201_v6  ;;  %vm3200_vm10 = vcmask 1040384  }
   0x2   :  { %207 = vrot.lane.b32.xlu1 %v5456_v0, %s5387_s15  ;;  %56 = vrot.lane.b32.xlu0 %v5456_v0, %s5388_s16  ;;  %v5495_v3 = vld [vmem:[%s9190_s0 + $0x20] sm:$0xff]  ;;  %s5391_s25 = smov 127   ;;  %s5392_s26 = smov 113   ;;  %v5524_v4 = vld [vmem:[%s9190_s0 + $0x38] sm:$0xff]  ;;  %v5623_v13 = vshrl.u32 %v84_v12, 7  ;;  %v5629_v14 = vand.u32 127, %v84_v12 }
   0x3   :  { %s5393_s27 = smov 112   ;;  %s5394_s28 = smov 111   ;;  %v5529_v5 = vld [vmem:[%s9190_s0 + $0x30] sm:$0xff]  ;;  %5234 = vset.pattern.permute.xlu0 %v9201_v6  ;;  %v5545_v7 = vld [vmem:[%s9190_s0 + $0x28] sm:$0xff]  ;;  %v5566_v8 = vld [vmem:[%s9190_s0 + $0x40] sm:$0xff]  ;;  %vm3217_vm11 = vcmask 1041408  }
   0x4   :  { %v5595_v9 = vld [vmem:[%s9190_s0 + $0x58] sm:$0xff]  ;;  %v5600_v10 = vld [vmem:[%s9190_s0 + $0x50] sm:$0xff]  ;;  %v5613_v11 = vld [vmem:[%s9190_s0 + $0x48] sm:$0xff]  ;;  %v5632_v15 = vsub.s32 3, %v5623_v13  ;;  %v5645_v20 = vsub.s32 2, %v5623_v13  ;;  %vm235_vm0 = vcmp.lt.s32.totalorder %v5629_v14, 16 }
   0x5   :  { %v5637_v16 = vld [vmem:[%s9191_s1] sm:$0xff]  ;;  %v5642_v17 = vld [vmem:[%s9191_s1 + $0x10] sm:$0xff]  ;;  %vm86_vm1 = vcmp.lt.s32.totalorder %v5629_v14, 17  ;;  %v5719_v41 = vld [vmem:[%s9190_s0 + $0x78] sm:$0xff]  ;;  %vm385_vm2 = vcmp.lt.s32.totalorder %v5629_v14, 15  ;;  %vm535_vm3 = vcmp.lt.s32.totalorder %v5629_v14, 1 }
   0x6   :  { %209 = vrot.lane.b32.xlu1 %v5465_v1, %s5387_s15  ;;  %58 = vrot.lane.b32.xlu0 %v5465_v1, %s5388_s16  ;;  %v5655_v21 = vrot.slane %v5637_v16, %v5632_v15  ;;  %v5659_v22 = vrot.slane %v5642_v17, %v5632_v15  ;;  %v5664_v23 = vld [vmem:[%s9190_s0 + $0x60] sm:$0xff]  ;;  %v5678_v28 = vrot.slane %v5637_v16, %v5645_v20  ;;  %v5724_v42 = vld [vmem:[%s9191_s1 + $0x30] sm:$0xff]  ;;  %vm786_vm4 = vcmp.lt.s32.totalorder %v5629_v14, 127 }
   0x7   :  { %v5688_v31 = vrot.slane %v5642_v17, %v5645_v20  ;;  %v5693_v32 = vld [vmem:[%s9190_s0] sm:$0xff]  ;;  %v5738_v47 = vrot.slane %v5724_v42, %v5632_v15  ;;  %v5761_v55 = vrot.slane %v5724_v42, %v5645_v20  ;;  %v5772_v57 = vld [vmem:[%s9191_s1 + $0x50] sm:$0xff]  ;;  %vm936_vm5 = vcmp.lt.s32.totalorder %v5629_v14, 113 }
   0x8   :  { %9381 = vst [vmem:[#allocation2_spill] sm:$0xff] %v5655_v21  ;;  %9382 = vst [vmem:[#allocation3_spill] sm:$0xff] %v5659_v22  ;;  %v5714_v40 = vld [vmem:[%s9191_s1 + $0x20] sm:$0xff]  ;;  %vm1086_vm6 = vcmp.lt.s32.totalorder %v5629_v14, 112  ;;  %vm1236_vm7 = vcmp.lt.s32.totalorder %v5629_v14, 111  ;;  %vm3234_vm12 = vcmask 1042432  }
   0x9   :  { %9383 = vst [vmem:[#allocation4_spill] sm:$0xff] %v5678_v28  ;;  %9384 = vst [vmem:[#allocation5_spill] sm:$0xff] %v5688_v31  ;;  %v5732_v46 = vrot.slane %v5714_v40, %v5632_v15  ;;  %v5753_v52 = vld [vmem:[%s9191_s1 + $0x40] sm:$0xff]  ;;  %v5765_v56 = vrot.slane %v5714_v40, %v5645_v20  ;;  %vm3267_vm13 = vcmask 1044480   ;;  %vm3284_vm14 = vcmask 1045504  }
   0xa   :  { %205 = vrot.lane.b32.xlu1 %v5474_v2, %s5387_s15  ;;  %54 = vrot.lane.b32.xlu0 %v5474_v2, %s5388_s16  ;;  %9386 = vst [vmem:[#allocation7_spill] sm:$0xff] %v5738_v47  ;;  %9387 = vst [vmem:[#allocation8_spill] sm:$0xff] %v5761_v55  ;;  %v5780_v61 = vrot.slane %v5753_v52, %v5632_v15  ;;  %v5386_v14 = vld [vmem:[%s9194_s4] sm:$0xf]  ;;  %vm3301_vm15 = vcmask 1046528  }
   0xb   :  { %9385 = vst [vmem:[#allocation6_spill] sm:$0xff] %v5732_v46  ;;  %9388 = vst [vmem:[#allocation9_spill] sm:$0xff] %v5765_v56 }
   0xc   :  { %9389 = vst [vmem:[#allocation10_spill] sm:$0xff] %v5780_v61 }
   0xe   :  { %359 = vrot.lane.b32.xlu1 %v5465_v1, %s5389_s21  ;;  %357 = vrot.lane.b32.xlu0 %v5456_v0, %s5389_s21 }
  0x12   :  { %509 = vrot.lane.b32.xlu1 %v5465_v1, %s5390_s22  ;;  %507 = vrot.lane.b32.xlu0 %v5456_v0, %s5390_s22 }
  0x16   :  { %505 = vrot.lane.b32.xlu1 %v5474_v2, %s5390_s22  ;;  %355 = vrot.lane.b32.xlu0 %v5474_v2, %s5389_s21 }
  0x1a   :  { %762 = vrot.lane.b32.xlu1 %v5495_v3, %s5391_s25  ;;  %760 = vrot.lane.b32.xlu0 %v5465_v1, %s5391_s25 }
  0x1e   :  { %910 = vrot.lane.b32.xlu1 %v5465_v1, %s5392_s26  ;;  %758 = vrot.lane.b32.xlu0 %v5456_v0, %s5391_s25 }
  0x22   :  { %1060 = vrot.lane.b32.xlu1 %v5465_v1, %s5393_s27  ;;  %912 = vrot.lane.b32.xlu0 %v5495_v3, %s5392_s26 }
  0x26   :  { %908 = vrot.lane.b32.xlu1 %v5456_v0, %s5392_s26  ;;  %1062 = vrot.lane.b32.xlu0 %v5495_v3, %s5393_s27 }
  0x2a   :  { %1208 = vrot.lane.b32.xlu1 %v5456_v0, %s5394_s28  ;;  %1058 = vrot.lane.b32.xlu0 %v5456_v0, %s5393_s27 }
  0x2e   :  { %1212 = vrot.lane.b32.xlu1 %v5495_v3, %s5394_s28  ;;  %1210 = vrot.lane.b32.xlu0 %v5465_v1, %s5394_s28 }
  0x32   :  { %66 = vrot.lane.b32.xlu1 %v5524_v4, %s5388_s16  ;;  %64 = vrot.lane.b32.xlu0 %v5529_v5, %s5388_s16 }
  0x36   :  { %217 = vrot.lane.b32.xlu1 %v5524_v4, %s5387_s15  ;;  %215 = vrot.lane.b32.xlu0 %v5529_v5, %s5387_s15 }
  0x3a   :  { %213 = vrot.lane.b32.xlu1 %v5545_v7, %s5387_s15  ;;  %62 = vrot.lane.b32.xlu0 %v5545_v7, %s5388_s16 }
  0x3e   :  { %367 = vrot.lane.b32.xlu1 %v5524_v4, %s5389_s21  ;;  %365 = vrot.lane.b32.xlu0 %v5529_v5, %s5389_s21 }
  0x42   :  { %517 = vrot.lane.b32.xlu1 %v5524_v4, %s5390_s22  ;;  %515 = vrot.lane.b32.xlu0 %v5529_v5, %s5390_s22 }
  0x46   :  { %513 = vrot.lane.b32.xlu1 %v5545_v7, %s5390_s22  ;;  %363 = vrot.lane.b32.xlu0 %v5545_v7, %s5389_s21 }
  0x4a   :  { %770 = vrot.lane.b32.xlu1 %v5566_v8, %s5391_s25  ;;  %768 = vrot.lane.b32.xlu0 %v5524_v4, %s5391_s25 }
  0x4e   :  { %918 = vrot.lane.b32.xlu1 %v5524_v4, %s5392_s26  ;;  %766 = vrot.lane.b32.xlu0 %v5529_v5, %s5391_s25 }
  0x52   :  { %1068 = vrot.lane.b32.xlu1 %v5524_v4, %s5393_s27  ;;  %920 = vrot.lane.b32.xlu0 %v5566_v8, %s5392_s26 }
  0x56   :  { %916 = vrot.lane.b32.xlu1 %v5529_v5, %s5392_s26  ;;  %1070 = vrot.lane.b32.xlu0 %v5566_v8, %s5393_s27 }
  0x5a   :  { %1216 = vrot.lane.b32.xlu1 %v5529_v5, %s5394_s28  ;;  %1066 = vrot.lane.b32.xlu0 %v5529_v5, %s5393_s27 }
  0x5e   :  { %1220 = vrot.lane.b32.xlu1 %v5566_v8, %s5394_s28  ;;  %1218 = vrot.lane.b32.xlu0 %v5524_v4, %s5394_s28 }
  0x62   :  { %74 = vrot.lane.b32.xlu1 %v5595_v9, %s5388_s16  ;;  %72 = vrot.lane.b32.xlu0 %v5600_v10, %s5388_s16 }
  0x66   :  { %225 = vrot.lane.b32.xlu1 %v5595_v9, %s5387_s15  ;;  %223 = vrot.lane.b32.xlu0 %v5600_v10, %s5387_s15 }
  0x6a   :  { %221 = vrot.lane.b32.xlu1 %v5613_v11, %s5387_s15  ;;  %70 = vrot.lane.b32.xlu0 %v5613_v11, %s5388_s16 }
  0x6e   :  { %375 = vrot.lane.b32.xlu1 %v5595_v9, %s5389_s21  ;;  %373 = vrot.lane.b32.xlu0 %v5600_v10, %s5389_s21 }
  0x72   :  { %525 = vrot.lane.b32.xlu1 %v5595_v9, %s5390_s22  ;;  %523 = vrot.lane.b32.xlu0 %v5600_v10, %s5390_s22 }
  0x74   :  { %v208_v18 = vpop.permute.xlu1 %207  ;;  %v57_v19 = vpop.permute.xlu0 %56 }
  0x76   :  { %521 = vrot.lane.b32.xlu1 %v5613_v11, %s5390_s22  ;;  %371 = vrot.lane.b32.xlu0 %v5613_v11, %s5389_s21 }
  0x78   :  { %v5666_v24 = vpop.permute.xlu1 %209  ;;  %v5668_v25 = vpop.permute.xlu0 %58 }
  0x79   :  { %v99_v26 = vsel %vm86_vm1, %v57_v19, %v5668_v25  ;;  %v248_v27 = vsel %vm235_vm0, %v208_v18, %v5666_v24 }
  0x7a   :  { %778 = vrot.lane.b32.xlu1 %v5664_v23, %s5391_s25  ;;  %776 = vrot.lane.b32.xlu0 %v5595_v9, %s5391_s25  ;;  %v190_v29 = vmul.f32 %v5655_v21, %v99_v26  ;;  %v340_v30 = vmul.f32 %v5659_v22, %v248_v27 }
  0x7c   :  { %v5695_v33 = vpop.permute.xlu1 %205  ;;  %v5697_v34 = vpop.permute.xlu0 %54  ;;  %v1357_v35 = vpack.c.bf16 %v340_v30, %v190_v29  ;;  %v741_v30 = vmul.f32 %v5780_v61, %v5465_v1 }
  0x7d   :  { %v249_v36 = vsel %vm235_vm0, %v5695_v33, %v208_v18  ;;  %v100_v37 = vsel %vm86_vm1, %v5697_v34, %v57_v19  ;;  %v5795_v19 = vrot.slane %v5772_v57, %v5632_v15 }
  0x7e   :  { %1535 = vmatprep.subr.bf16.mxu1 %v1357_v35  ;;  %203 = vrot.lane.b32.xlu1 %v5693_v32, %s5387_s15  ;;  %v189_v38 = vmul.f32 %v5678_v28, %v100_v37  ;;  %v339_v39 = vmul.f32 %v5688_v31, %v249_v36  ;;  %v5805_v35 = vrot.slane %v5753_v52, %v5645_v20 }
  0x7f   :  { %52 = vrot.lane.b32.xlu0 %v5693_v32, %s5388_s16  ;;  %9390 = vst [vmem:[#allocation11_spill] sm:$0xff] %v5795_v19 }
  0x80   :  { %v5727_v43 = vpop.permute.xlu1 %359  ;;  %v358_v44 = vpop.permute.xlu0 %357  ;;  %v1356_v45 = vpack.c.bf16 %v339_v39, %v189_v38  ;;  %9391 = vst [vmem:[#allocation12_spill] sm:$0xff] %v5805_v35  ;;  %v5815_v38 = vrot.slane %v5772_v57, %v5645_v20 }
  0x81   :  { %v398_v48 = vsel %vm385_vm2, %v358_v44, %v5727_v43 }
  0x82   :  { %1536 = vmatpush1.bf16.msra.mxu1 %v1356_v45  ;;  %82 = vrot.lane.b32.xlu1 %v5719_v41, %s5388_s16  ;;  %v490_v53 = vmul.f32 %v5732_v46, %v398_v48  ;;  %9392 = vst [vmem:[#allocation13_spill] sm:$0xff] %v5815_v38  ;;  %v740_v45 = vmul.f32 %v5805_v35, %v5456_v0  ;;  %v5839_v0 = vld [vmem:[%s9191_s1 + $0x70] sm:$0xff] }
  0x83   :  { %774 = vrot.lane.b32.xlu0 %v5600_v10, %s5391_s25 }
  0x84   :  { %v5745_v49 = vpop.permute.xlu1 %509  ;;  %v508_v50 = vpop.permute.xlu0 %507 }
  0x85   :  { %v548_v51 = vsel %vm535_vm3, %v508_v50, %v5745_v49 }
  0x86   :  { %v640_v54 = vmul.f32 %v5738_v47, %v548_v51  ;;  %926 = vrot.lane.b32.xlu1 %v5595_v9, %s5392_s26  ;;  %v5834_v51 = vld [vmem:[%s9191_s1 + $0x60] sm:$0xff]  ;;  %v9407_v47 = vmov 0  }
  0x87   :  { %233 = vrot.lane.b32.xlu0 %v5719_v41, %s5387_s15 }
  0x88   :  { %v5774_v58 = vpop.permute.xlu1 %505  ;;  %v5776_v59 = vpop.permute.xlu0 %355  ;;  %v1373_v60 = vpack.c.bf16 %v640_v54, %v490_v53 }
  0x89   :  { %v549_v62 = vsel %vm535_vm3, %v5774_v58, %v508_v50  ;;  %v399_v63 = vsel %vm385_vm2, %v5776_v59, %v358_v44 }
  0x8a   :  { %v639_v12 = vmul.f32 %v5761_v55, %v549_v62  ;;  %v489_v18 = vmul.f32 %v5765_v56, %v399_v63  ;;  %1537 = vmatprep.subr.bf16.mxu1 %v1373_v60  ;;  %1076 = vrot.lane.b32.xlu1 %v5595_v9, %s5393_s27  ;;  %v5847_v62 = vrot.slane %v5834_v51, %v5632_v15 }
  0x8b   :  { %928 = vrot.lane.b32.xlu0 %v5664_v23, %s5392_s26  ;;  %v5853_v63 = vrot.slane %v5839_v0, %v5632_v15 }
  0x8c   :  { %v5799_v26 = vpop.permute.xlu1 %762  ;;  %v761_v27 = vpop.permute.xlu0 %760  ;;  %v1372_v29 = vpack.c.bf16 %v639_v12, %v489_v18  ;;  %9393 = vst [vmem:[#allocation14_spill] sm:$0xff] %v5847_v62 }
  0x8d   :  { %v798_v36 = vsel %vm786_vm4, %v761_v27, %v5799_v26  ;;  %9394 = vst [vmem:[#allocation15_spill] sm:$0xff] %v5853_v63 }
  0x8e   :  { %v891_v37 = vmul.f32 %v5795_v19, %v798_v36  ;;  %1538 = vmatpush1.bf16.msra.mxu1 %v1372_v29  ;;  %353 = vrot.lane.b32.xlu1 %v5693_v32, %s5389_s21  ;;  %v5870_v36 = vrot.slane %v5834_v51, %v5645_v20 }
  0x8f   :  { %1078 = vrot.lane.b32.xlu0 %v5664_v23, %s5393_s27 }
  0x90   :  { %v911_v1 = vpop.permute.xlu1 %910  ;;  %v5819_v39 = vpop.permute.xlu0 %758  ;;  %v1389_v44 = vpack.c.bf16 %v891_v37, %v741_v30  ;;  %9396 = vst [vmem:[#allocation17_spill] sm:$0xff] %v5870_v36 }
  0x91   :  { %v799_v48 = vsel %vm786_vm4, %v5819_v39, %v761_v27 }
  0x92   :  { %v890_v50 = vmul.f32 %v5815_v38, %v799_v48  ;;  %1539 = vmatprep.subr.bf16.mxu1 %v1389_v44  ;;  %924 = vrot.lane.b32.xlu1 %v5600_v10, %s5392_s26  ;;  %v5877_v44 = vrot.slane %v5839_v0, %v5645_v20 }
  0x93   :  { %503 = vrot.lane.b32.xlu0 %v5693_v32, %s5390_s22 }
  0x94   :  { %v1061_v53 = vpop.permute.xlu1 %1060  ;;  %v5842_v54 = vpop.permute.xlu0 %912  ;;  %v1388_v60 = vpack.c.bf16 %v890_v50, %v740_v45  ;;  %9397 = vst [vmem:[#allocation18_spill] sm:$0xff] %v5877_v44  ;;  %v5882_v45 = vld [vmem:[%s9191_s1 + $0x80] sm:$0xff] }
  0x95   :  { %v948_v12 = vsel %vm936_vm5, %v911_v1, %v5842_v54  ;;  %v5898_v6 = vrot.slane %v5882_v45, %v5632_v15 }
  0x96   :  { %1540 = vmatpush1.bf16.msra.mxu1 %v1388_v60  ;;  %383 = vrot.lane.b32.xlu1 %v5719_v41, %s5389_s21  ;;  %v1041_v30 = vmul.f32 %v5847_v62, %v948_v12 }
  0x97   :  { %1074 = vrot.lane.b32.xlu0 %v5600_v10, %s5393_s27  ;;  %9398 = vst [vmem:[#allocation19_spill] sm:$0xff] %v5898_v6 }
  0x98   :  { %v5860_v18 = vpop.permute.xlu1 %908  ;;  %v5862_v27 = vpop.permute.xlu0 %1062 }
  0x99   :  { %9395 = vst [vmem:[#allocation16_spill] sm:$0xff] %v5862_v27  ;;  %v1098_v29 = vsel %vm1086_vm6, %v1061_v53, %v5862_v27  ;;  %v949_v48 = vsel %vm936_vm5, %v5860_v18, %v911_v1 }
  0x9a   :  { %v1191_v37 = vmul.f32 %v5853_v63, %v1098_v29  ;;  %1224 = vrot.lane.b32.xlu1 %v5600_v10, %s5394_s28  ;;  %v1040_v1 = vmul.f32 %v5870_v36, %v949_v48  ;;  %v5923_v36 = vsub.s32 7, %v5623_v13 }
  0x9b   :  { %533 = vrot.lane.b32.xlu0 %v5719_v41, %s5390_s22 }
  0x9c   :  { %v5889_v50 = vpop.permute.xlu1 %1208  ;;  %v5891_v60 = vpop.permute.xlu0 %1058  ;;  %v1405_v12 = vpack.c.bf16 %v1191_v37, %v1041_v30  ;;  %v5907_v30 = vrot.slane %v5882_v45, %v5645_v20 }
  0x9d   :  { %v1099_v29 = vsel %vm1086_vm6, %v5891_v60, %v1061_v53 }
  0x9e   :  { %v1190_v62 = vmul.f32 %v5877_v44, %v1099_v29  ;;  %1541 = vmatprep.subr.bf16.mxu1 %v1405_v12  ;;  %1228 = vrot.lane.b32.xlu1 %v5664_v23, %s5394_s28  ;;  %9399 = vst [vmem:[#allocation20_spill] sm:$0xff] %v5907_v30 }
  0x9f   :  { %1226 = vrot.lane.b32.xlu0 %v5595_v9, %s5394_s28 }
  0xa0   :  { %v5911_v53 = vpop.permute.xlu1 %1212  ;;  %v1211_v37 = vpop.permute.xlu0 %1210  ;;  %v1404_v63 = vpack.c.bf16 %v1190_v62, %v1040_v1  ;;  %v5931_v62 = vld [vmem:[%s9190_s0 + $0x70] sm:$0xff] }
  0xa1   :  { %9400 = vst [vmem:[#allocation21_spill] sm:$0xff] %v5911_v53  ;;  %v1248_v48 = vsel %vm1236_vm7, %v1211_v37, %v5911_v53  ;;  %v1249_v12 = vsel %vm1236_vm7, %v5889_v50, %v1211_v37 }
  0xa2   :  { %v1341_v29 = vmul.f32 %v5898_v6, %v1248_v48  ;;  %1542 = vmatpush1.bf16.msra.mxu1 %v1404_v63  ;;  %754 = vrot.lane.b32.xlu1 %v5693_v32, %s5391_s25  ;;  %v1340_v44 = vmul.f32 %v5907_v30, %v1249_v12  ;;  %v5936_v6 = vsub.s32 6, %v5623_v13  ;;  %v5940_v12 = vrot.slane %v5637_v16, %v5923_v36 }
  0xa3   :  { %756 = vrot.lane.b32.xlu0 %v5474_v2, %s5391_s25 }
  0xa4   :  { %v1421_v1 = vpack.c.bf16 %v1341_v29, %v1341_v29  ;;  %v5933_v37 = vpop.permute.xlu1 %66  ;;  %v65_v63 = vpop.permute.xlu0 %64  ;;  %v1420_v48 = vpack.c.bf16 %v1340_v44, %v1340_v44  ;;  %9402 = vst [vmem:[#allocation23_spill] sm:$0xff] %v5940_v12  ;;  %v5948_v29 = vrot.slane %v5642_v17, %v5923_v36  ;;  %v5980_v46 = vrot.slane %v5637_v16, %v5936_v6 }
  0xa5   :  { %9401 = vst [vmem:[#allocation22_spill] sm:$0xff] %v5933_v37  ;;  %v95_v44 = vsel %vm86_vm1, %v65_v63, %v5933_v37 }
  0xa6   :  { %4789 = vmatprep.subr.msk.bf16.mxu1 %vm1445_vm8, %v1421_v1  ;;  %231 = vrot.lane.b32.xlu1 %v5931_v62, %s5387_s15  ;;  %v1453_v30 = vsel %vm1445_vm8, %v1420_v48, 0  ;;  %9403 = vst [vmem:[#allocation24_spill] sm:$0xff] %v5948_v29  ;;  %v5958_v1 = vld [vmem:[%s9190_s0 + $0x68] sm:$0xff]  ;;  %v5963_v48 = vld [vmem:[%s9192_s2] sm:$0xf]  ;;  %v194_v38 = vmul.f32 %v5940_v12, %v95_v44  ;;  %9406 = vst [vmem:[#allocation27_spill] sm:$0xff] %v5980_v46 }
  0xa7   :  { %80 = vrot.lane.b32.xlu0 %v5931_v62, %s5388_s16  ;;  %1544 = vmatpush1.bf16.msra.mxu1 %v1453_v30  ;;  %v5972_v30 = vrot.slane %v5642_v17, %v5936_v6 }
  0xa8   :  { %v5965_v35 = vpop.permute.xlu1 %217  ;;  %v216_v61 = vpop.permute.xlu0 %215 }
  0xa9   :  { %9404 = vst [vmem:[#allocation25_spill] sm:$0xff] %v5965_v35  ;;  %v244_v19 = vsel %vm235_vm0, %v216_v61, %v5965_v35  ;;  %9405 = vst [vmem:[#allocation26_spill] sm:$0xff] %v5972_v30 }
  0xaa   :  { %v344_v56 = vmul.f32 %v5948_v29, %v244_v19  ;;  %229 = vrot.lane.b32.xlu1 %v5958_v1, %s5387_s15  ;;  %4790 = vmatmul.mubr.msk.bf16.vlgmr.msra.gmra.mrb[0].mxu1 %vm1441_vm9, %v5963_v48 }
  0xab   :  { %78 = vrot.lane.b32.xlu0 %v5958_v1, %s5388_s16  ;;  %1649 = vmatprep.mubr.bf16.mxu1 %v9407_v47 }
  0xac   :  { %v5987_v55 = vpop.permute.xlu1 %213  ;;  %v5989_v44 = vpop.permute.xlu0 %62  ;;  %v1361_v19 = vpack.c.bf16 %v344_v56, %v194_v38 }
  0xad   :  { %v245_v29 = vsel %vm235_vm0, %v5987_v55, %v216_v61  ;;  %v96_v12 = vsel %vm86_vm1, %v5989_v44, %v65_v63  ;;  %v6007_v61 = vrot.slane %v5714_v40, %v5923_v36  ;;  %v6013_v63 = vrot.slane %v5724_v42, %v5923_v36 }
  0xae   :  { %v343_v28 = vmul.f32 %v5972_v30, %v245_v29  ;;  %v193_v21 = vmul.f32 %v5980_v46, %v96_v12  ;;  %1617 = vmatprep.subr.bf16.mxu1 %v1361_v19  ;;  %1056 = vrot.lane.b32.xlu1 %v5474_v2, %s5393_s27  ;;  %v6031_v46 = vrot.slane %v5724_v42, %v5936_v6 }
  0xaf   :  { %906 = vrot.lane.b32.xlu0 %v5474_v2, %s5392_s26  ;;  %9409 = vst [vmem:[#allocation29_spill] sm:$0xff] %v6007_v61  ;;  %9410 = vst [vmem:[#allocation30_spill] sm:$0xff] %v6013_v63  ;;  %v6035_v30 = vrot.slane %v5714_v40, %v5936_v6 }
  0xb0   :  { %v1360_v56 = vpack.c.bf16 %v343_v28, %v193_v21  ;;  %v6003_v38 = vpop.permute.xlu1 %367  ;;  %v366_v22 = vpop.permute.xlu0 %365  ;;  %9412 = vst [vmem:[#allocation32_spill] sm:$0xff] %v6031_v46 }
  0xb1   :  { %9408 = vst [vmem:[#allocation28_spill] sm:$0xff] %v6003_v38  ;;  %v394_v12 = vsel %vm385_vm2, %v366_v22, %v6003_v38  ;;  %9413 = vst [vmem:[#allocation33_spill] sm:$0xff] %v6035_v30 }
  0xb2   :  { %1618 = vmatpush1.bf16.msra.mxu1 %v1360_v56  ;;  %1054 = vrot.lane.b32.xlu1 %v5693_v32, %s5393_s27  ;;  %v494_v19 = vmul.f32 %v6007_v61, %v394_v12 }
  0xb3   :  { %904 = vrot.lane.b32.xlu0 %v5693_v32, %s5392_s26 }
  0xb4   :  { %v6020_v21 = vpop.permute.xlu1 %517  ;;  %v516_v28 = vpop.permute.xlu0 %515 }
  0xb5   :  { %9411 = vst [vmem:[#allocation31_spill] sm:$0xff] %v6020_v21  ;;  %v544_v29 = vsel %vm535_vm3, %v516_v28, %v6020_v21 }
  0xb6   :  { %v644_v56 = vmul.f32 %v6013_v63, %v544_v29  ;;  %531 = vrot.lane.b32.xlu1 %v5931_v62, %s5390_s22  ;;  %v6045_v29 = vrot.slane %v5753_v52, %v5923_v36 }
  0xb7   :  { %381 = vrot.lane.b32.xlu0 %v5931_v62, %s5389_s21 }
  0xb8   :  { %v6039_v31 = vpop.permute.xlu1 %513  ;;  %v6041_v38 = vpop.permute.xlu0 %363  ;;  %v1377_v12 = vpack.c.bf16 %v644_v56, %v494_v19  ;;  %9414 = vst [vmem:[#allocation34_spill] sm:$0xff] %v6045_v29  ;;  %v6059_v19 = vrot.slane %v5772_v57, %v5923_v36 }
  0xb9   :  { %v545_v63 = vsel %vm535_vm3, %v6039_v31, %v516_v28  ;;  %v395_v61 = vsel %vm385_vm2, %v6041_v38, %v366_v22  ;;  %v6067_v22 = vrot.slane %v5753_v52, %v5936_v6 }
  0xba   :  { %v643_v21 = vmul.f32 %v6031_v46, %v545_v63  ;;  %v493_v37 = vmul.f32 %v6035_v30, %v395_v61  ;;  %1619 = vmatprep.subr.bf16.mxu1 %v1377_v12  ;;  %529 = vrot.lane.b32.xlu1 %v5958_v1, %s5390_s22  ;;  %9415 = vst [vmem:[#allocation35_spill] sm:$0xff] %v6059_v19 }
  0xbb   :  { %379 = vrot.lane.b32.xlu0 %v5958_v1, %s5389_s21  ;;  %9417 = vst [vmem:[#allocation37_spill] sm:$0xff] %v6067_v22  ;;  %v745_v61 = vmul.f32 %v6045_v29, %v5524_v4  ;;  %v744_v4 = vmul.f32 %v6067_v22, %v5529_v5  ;;  %v6099_v5 = vrot.slane %v5834_v51, %v5923_v36 }
  0xbc   :  { %v1376_v28 = vpack.c.bf16 %v643_v21, %v493_v37  ;;  %v6063_v56 = vpop.permute.xlu1 %770  ;;  %v769_v35 = vpop.permute.xlu0 %768  ;;  %v6079_v37 = vrot.slane %v5772_v57, %v5936_v6  ;;  %v6129_v22 = vrot.slane %v5839_v0, %v5936_v6 }
  0xbd   :  { %9416 = vst [vmem:[#allocation36_spill] sm:$0xff] %v6063_v56  ;;  %v794_v63 = vsel %vm786_vm4, %v769_v35, %v6063_v56  ;;  %9420 = vst [vmem:[#allocation40_spill] sm:$0xff] %v6099_v5  ;;  %v6153_v56 = vrot.slane %v5882_v45, %v5923_v36 }
  0xbe   :  { %v895_v12 = vmul.f32 %v6059_v19, %v794_v63  ;;  %1620 = vmatpush1.bf16.msra.mxu1 %v1376_v28  ;;  %1206 = vrot.lane.b32.xlu1 %v5474_v2, %s5394_s28  ;;  %9418 = vst [vmem:[#allocation38_spill] sm:$0xff] %v6079_v37  ;;  %9425 = vst [vmem:[#allocation45_spill] sm:$0xff] %v6129_v22 }
  0xbf   :  { %1204 = vrot.lane.b32.xlu0 %v5693_v32, %s5394_s28  ;;  %9429 = vst [vmem:[#allocation49_spill] sm:$0xff] %v6153_v56 }
  0xc0   :  { %v919_v21 = vpop.permute.xlu1 %918  ;;  %v6085_v29 = vpop.permute.xlu0 %766  ;;  %v1393_v30 = vpack.c.bf16 %v895_v12, %v745_v61 }
  0xc1   :  { %v795_v28 = vsel %vm786_vm4, %v6085_v29, %v769_v35  ;;  %v6105_v35 = vrot.slane %v5839_v0, %v5923_v36 }
  0xc2   :  { %v894_v2 = vmul.f32 %v6079_v37, %v795_v28  ;;  %1621 = vmatprep.subr.bf16.mxu1 %v1393_v30  ;;  %60 = vrot.lane.b32.xlu1 %v5495_v3, %s5388_s16 }
  0xc3   :  { %784 = vrot.lane.b32.xlu0 %v5719_v41, %s5391_s25  ;;  %9421 = vst [vmem:[#allocation41_spill] sm:$0xff] %v6105_v35 }
  0xc4   :  { %v1392_v63 = vpack.c.bf16 %v894_v2, %v744_v4  ;;  %v1069_v19 = vpop.permute.xlu1 %1068  ;;  %v6095_v46 = vpop.permute.xlu0 %920  ;;  %v6122_v2 = vrot.slane %v5834_v51, %v5936_v6 }
  0xc5   :  { %9419 = vst [vmem:[#allocation39_spill] sm:$0xff] %v6095_v46  ;;  %v944_v30 = vsel %vm936_vm5, %v919_v21, %v6095_v46 }
  0xc6   :  { %1622 = vmatpush1.bf16.msra.mxu1 %v1392_v63  ;;  %782 = vrot.lane.b32.xlu1 %v5931_v62, %s5391_s25  ;;  %v1045_v28 = vmul.f32 %v6099_v5, %v944_v30  ;;  %9424 = vst [vmem:[#allocation44_spill] sm:$0xff] %v6122_v2 }
  0xc7   :  { %211 = vrot.lane.b32.xlu0 %v5495_v3, %s5387_s15 }
  0xc8   :  { %v6112_v61 = vpop.permute.xlu1 %916  ;;  %v6114_v12 = vpop.permute.xlu0 %1070 }
  0xc9   :  { %9422 = vst [vmem:[#allocation42_spill] sm:$0xff] %v6112_v61  ;;  %9423 = vst [vmem:[#allocation43_spill] sm:$0xff] %v6114_v12  ;;  %v1094_v4 = vsel %vm1086_vm6, %v1069_v19, %v6114_v12  ;;  %v945_v37 = vsel %vm936_vm5, %v6112_v61, %v919_v21 }
  0xca   :  { %v1195_v63 = vmul.f32 %v6105_v35, %v1094_v4  ;;  %1084 = vrot.lane.b32.xlu1 %v5719_v41, %s5393_s27  ;;  %v6145_v35 = vrot.slane %v5882_v45, %v5936_v6  ;;  %v1044_v12 = vmul.f32 %v6122_v2, %v945_v37 }
  0xcb   :  { %934 = vrot.lane.b32.xlu0 %v5719_v41, %s5392_s26 }
  0xcc   :  { %v6136_v30 = vpop.permute.xlu1 %1216  ;;  %v6138_v5 = vpop.permute.xlu0 %1066  ;;  %v1409_v46 = vpack.c.bf16 %v1195_v63, %v1045_v28  ;;  %9428 = vst [vmem:[#allocation48_spill] sm:$0xff] %v6145_v35 }
  0xcd   :  { %9426 = vst [vmem:[#allocation46_spill] sm:$0xff] %v6136_v30  ;;  %9427 = vst [vmem:[#allocation47_spill] sm:$0xff] %v6138_v5  ;;  %v1095_v4 = vsel %vm1086_vm6, %v6138_v5, %v1069_v19 }
  0xce   :  { %v1194_v21 = vmul.f32 %v6129_v22, %v1095_v4  ;;  %1623 = vmatprep.subr.bf16.mxu1 %v1409_v46  ;;  %511 = vrot.lane.b32.xlu1 %v5495_v3, %s5390_s22 }
  0xcf   :  { %361 = vrot.lane.b32.xlu0 %v5495_v3, %s5389_s21  ;;  %v6174_v3 = vld [vmem:[%s9191_s1 + $0x8] sm:$0xff] }
  0xd0   :  { %v1408_v19 = vpack.c.bf16 %v1194_v21, %v1044_v12  ;;  %v6157_v28 = vpop.permute.xlu1 %1220  ;;  %v1219_v63 = vpop.permute.xlu0 %1218  ;;  %v6179_v12 = vld [vmem:[%s9191_s1 + $0x18] sm:$0xff] }
  0xd1   :  { %9430 = vst [vmem:[#allocation50_spill] sm:$0xff] %v6157_v28  ;;  %v1244_v37 = vsel %vm1236_vm7, %v1219_v63, %v6157_v28  ;;  %v1245_v46 = vsel %vm1236_vm7, %v6136_v30, %v1219_v63 }
  0xd2   :  { %v1344_v4 = vmul.f32 %v6145_v35, %v1245_v46  ;;  %v1345_v2 = vmul.f32 %v6153_v56, %v1244_v37  ;;  %1624 = vmatpush1.bf16.msra.mxu1 %v1408_v19  ;;  %1082 = vrot.lane.b32.xlu1 %v5931_v62, %s5393_s27  ;;  %v6185_v46 = vrot.slane %v6174_v3, %v5632_v15 }
  0xd3   :  { %932 = vrot.lane.b32.xlu0 %v5931_v62, %s5392_s26  ;;  %v6193_v35 = vrot.slane %v6179_v12, %v5632_v15 }
  0xd4   :  { %v1424_v21 = vpack.c.bf16 %v1344_v4, %v1344_v4  ;;  %v1425_v63 = vpack.c.bf16 %v1345_v2, %v1345_v2  ;;  %v6181_v37 = vpop.permute.xlu1 %74  ;;  %v73_v19 = vpop.permute.xlu0 %72  ;;  %9432 = vst [vmem:[#allocation52_spill] sm:$0xff] %v6185_v46 }
  0xd5   :  { %9431 = vst [vmem:[#allocation51_spill] sm:$0xff] %v6181_v37  ;;  %9433 = vst [vmem:[#allocation53_spill] sm:$0xff] %v6193_v35  ;;  %v91_v2 = vsel %vm86_vm1, %v73_v19, %v6181_v37 }
  0xd6   :  { %4793 = vmatprep.subr.msk.bf16.mxu1 %vm1445_vm8, %v1425_v63  ;;  %1234 = vrot.lane.b32.xlu1 %v5719_v41, %s5394_s28  ;;  %v1465_v56 = vsel %vm1445_vm8, %v1424_v21, 0  ;;  %v6207_v21 = vrot.slane %v6179_v12, %v5645_v20  ;;  %v198_v28 = vmul.f32 %v6185_v46, %v91_v2 }
  0xd7   :  { %1232 = vrot.lane.b32.xlu0 %v5931_v62, %s5394_s28  ;;  %1626 = vmatpush1.bf16.msra.mxu1 %v1465_v56  ;;  %v6215_v56 = vrot.slane %v6174_v3, %v5645_v20 }
  0xd8   :  { %v6200_v4 = vpop.permute.xlu1 %225  ;;  %v224_v63 = vpop.permute.xlu0 %223  ;;  %9435 = vst [vmem:[#allocation55_spill] sm:$0xff] %v6207_v21 }
  0xd9   :  { %9434 = vst [vmem:[#allocation54_spill] sm:$0xff] %v6200_v4  ;;  %v240_v22 = vsel %vm235_vm0, %v224_v63, %v6200_v4  ;;  %9436 = vst [vmem:[#allocation56_spill] sm:$0xff] %v6215_v56 }
  0xda   :  { %v348_v27 = vmul.f32 %v6193_v35, %v240_v22  ;;  %914 = vrot.lane.b32.xlu1 %v5545_v7, %s5392_s26  ;;  %4794 = vmatmul.mubr.msk.bf16.vlgmr.msra.gmra.mrb[4].mxu1 %vm1441_vm9, %v5963_v48 }
  0xdb   :  { %764 = vrot.lane.b32.xlu0 %v5545_v7, %s5391_s25  ;;  %1731 = vmatprep.mubr.bf16.mxu1 %v9407_v47 }
  0xdc   :  { %v6222_v37 = vpop.permute.xlu1 %221  ;;  %v6224_v2 = vpop.permute.xlu0 %70  ;;  %v1365_v22 = vpack.c.bf16 %v348_v27, %v198_v28  ;;  %v6241_v27 = vld [vmem:[%s9191_s1 + $0x28] sm:$0xff]  ;;  %v6246_v28 = vld [vmem:[%s9191_s1 + $0x38] sm:$0xff] }
  0xdd   :  { %9437 = vst [vmem:[#allocation57_spill] sm:$0xff] %v6222_v37  ;;  %9438 = vst [vmem:[#allocation58_spill] sm:$0xff] %v6224_v2  ;;  %v241_v35 = vsel %vm235_vm0, %v6222_v37, %v224_v63  ;;  %v92_v46 = vsel %vm86_vm1, %v6224_v2, %v73_v19  ;;  %v6252_v63 = vrot.slane %v6241_v27, %v5632_v15 }
  0xde   :  { %v347_v4 = vmul.f32 %v6207_v21, %v241_v35  ;;  %v197_v5 = vmul.f32 %v6215_v56, %v92_v46  ;;  %1699 = vmatprep.subr.bf16.mxu1 %v1365_v22  ;;  %1214 = vrot.lane.b32.xlu1 %v5545_v7, %s5394_s28  ;;  %v6273_v56 = vld [vmem:[%s9191_s1 + $0x48] sm:$0xff]  ;;  %v6285_v37 = vrot.slane %v6241_v27, %v5645_v20 }
  0xdf   :  { %1064 = vrot.lane.b32.xlu0 %v5545_v7, %s5393_s27  ;;  %9440 = vst [vmem:[#allocation60_spill] sm:$0xff] %v6252_v63  ;;  %v6258_v7 = vrot.slane %v6246_v28, %v5632_v15 }
  0xe0   :  { %v1364_v35 = vpack.c.bf16 %v347_v4, %v197_v5  ;;  %v6248_v19 = vpop.permute.xlu1 %375  ;;  %v374_v46 = vpop.permute.xlu0 %373  ;;  %9444 = vst [vmem:[#allocation64_spill] sm:$0xff] %v6285_v37 }
  0xe1   :  { %9439 = vst [vmem:[#allocation59_spill] sm:$0xff] %v6248_v19  ;;  %9441 = vst [vmem:[#allocation61_spill] sm:$0xff] %v6258_v7  ;;  %v390_v22 = vsel %vm385_vm2, %v374_v46, %v6248_v19  ;;  %v6281_v19 = vrot.slane %v6246_v28, %v5645_v20 }
  0xe2   :  { %1700 = vmatpush1.bf16.msra.mxu1 %v1364_v35  ;;  %219 = vrot.lane.b32.xlu1 %v5566_v8, %s5387_s15  ;;  %v498_v21 = vmul.f32 %v6252_v63, %v390_v22  ;;  %v6292_v22 = vld [vmem:[%s9191_s1 + $0x58] sm:$0xff] }
  0xe3   :  { %68 = vrot.lane.b32.xlu0 %v5566_v8, %s5388_s16  ;;  %9443 = vst [vmem:[#allocation63_spill] sm:$0xff] %v6281_v19 }
  0xe4   :  { %v6265_v5 = vpop.permute.xlu1 %525  ;;  %v524_v4 = vpop.permute.xlu0 %523 }
  0xe5   :  { %9442 = vst [vmem:[#allocation62_spill] sm:$0xff] %v6265_v5  ;;  %v540_v35 = vsel %vm535_vm3, %v524_v4, %v6265_v5  ;;  %v6300_v5 = vrot.slane %v6273_v56, %v5632_v15 }
  0xe6   :  { %v648_v2 = vmul.f32 %v6258_v7, %v540_v35  ;;  %519 = vrot.lane.b32.xlu1 %v5566_v8, %s5390_s22 }
  0xe7   :  { %369 = vrot.lane.b32.xlu0 %v5566_v8, %s5389_s21  ;;  %9445 = vst [vmem:[#allocation65_spill] sm:$0xff] %v6300_v5 }
  0xe8   :  { %v6294_v35 = vpop.permute.xlu1 %521  ;;  %v6296_v7 = vpop.permute.xlu0 %371  ;;  %v1381_v63 = vpack.c.bf16 %v648_v2, %v498_v21  ;;  %v6314_v21 = vrot.slane %v6292_v22, %v5632_v15  ;;  %v6317_v2 = vsub.s32 1, %v5623_v13 }
  0xe9   :  { %v541_v53 = vsel %vm535_vm3, %v6294_v35, %v524_v4  ;;  %v391_v8 = vsel %vm385_vm2, %v6296_v7, %v374_v46 }
  0xea   :  { %v647_v30 = vmul.f32 %v6281_v19, %v541_v53  ;;  %v497_v61 = vmul.f32 %v6285_v37, %v391_v8  ;;  %1701 = vmatprep.subr.bf16.mxu1 %v1381_v63  ;;  %922 = vrot.lane.b32.xlu1 %v5613_v11, %s5392_s26  ;;  %9446 = vst [vmem:[#allocation66_spill] sm:$0xff] %v6314_v21 }
  0xeb   :  { %772 = vrot.lane.b32.xlu0 %v5613_v11, %s5391_s25  ;;  %v749_v63 = vmul.f32 %v6300_v5, %v5595_v9  ;;  %v6333_v19 = vrot.slane %v5642_v17, %v6317_v2  ;;  %v6339_v9 = vrot.slane %v5637_v16, %v6317_v2 }
  0xec   :  { %v1380_v4 = vpack.c.bf16 %v647_v30, %v497_v61  ;;  %v6321_v46 = vpop.permute.xlu1 %778  ;;  %v777_v53 = vpop.permute.xlu0 %776 }
  0xed   :  { %9447 = vst [vmem:[#allocation67_spill] sm:$0xff] %v6321_v46  ;;  %v790_v8 = vsel %vm786_vm4, %v777_v53, %v6321_v46  ;;  %9448 = vst [vmem:[#allocation68_spill] sm:$0xff] %v6333_v19 }
  0xee   :  { %v899_v37 = vmul.f32 %v6314_v21, %v790_v8  ;;  %1702 = vmatpush1.bf16.msra.mxu1 %v1380_v4  ;;  %1222 = vrot.lane.b32.xlu1 %v5613_v11, %s5394_s28  ;;  %9449 = vst [vmem:[#allocation69_spill] sm:$0xff] %v6339_v9  ;;  %v6343_v4 = vrot.slane %v6273_v56, %v5645_v20 }
  0xef   :  { %1072 = vrot.lane.b32.xlu0 %v5613_v11, %s5393_s27 }
  0xf0   :  { %v204_v61 = vpop.permute.xlu1 %203  ;;  %v1397_v30 = vpack.c.bf16 %v899_v37, %v749_v63  ;;  %9450 = vst [vmem:[#allocation70_spill] sm:$0xff] %v6343_v4  ;;  %v6358_v37 = vrot.slane %v6292_v22, %v5645_v20  ;;  %v748_v46 = vmul.f32 %v6343_v4, %v5600_v10 }
  0xf1   :  { %v53_v5 = vpop.permute.xlu0 %52  ;;  %v250_v8 = vsel %vm235_vm0, %v204_v61, %v5695_v33  ;;  %v6362_v33 = vsub.s32 0, %v5623_v13 }
  0xf2   :  { %1703 = vmatprep.subr.bf16.mxu1 %v1397_v30  ;;  %227 = vrot.lane.b32.xlu1 %v5664_v23, %s5387_s15  ;;  %v101_v11 = vsel %vm86_vm1, %v53_v5, %v5697_v34  ;;  %v338_v21 = vmul.f32 %v6333_v19, %v250_v8  ;;  %9451 = vst [vmem:[#allocation71_spill] sm:$0xff] %v6358_v37 }
  0xf3   :  { %76 = vrot.lane.b32.xlu0 %v5664_v23, %s5388_s16  ;;  %v188_v63 = vmul.f32 %v6339_v9, %v101_v11  ;;  %v6380_v9 = vrot.slane %v5637_v16, %v6362_v33  ;;  %v6384_v10 = vrot.slane %v5642_v17, %v6362_v33 }
  0xf4   :  { %v6364_v30 = vpop.permute.xlu1 %82 }
  0xf5   :  { %v6368_v34 = vpop.permute.xlu0 %774  ;;  %v1355_v8 = vpack.c.bf16 %v338_v21, %v188_v63  ;;  %9453 = vst [vmem:[#allocation73_spill] sm:$0xff] %v6380_v9  ;;  %9454 = vst [vmem:[#allocation74_spill] sm:$0xff] %v6384_v10  ;;  %v102_v21 = vsel %vm86_vm1, %v6364_v30, %v53_v5  ;;  %v6403_v5 = vld [vmem:[%s9191_s1 + $0x68] sm:$0xff] }
  0xf6   :  { %9452 = vst [vmem:[#allocation72_spill] sm:$0xff] %v6368_v34  ;;  %v791_v19 = vsel %vm786_vm4, %v6368_v34, %v777_v53  ;;  %527 = vrot.lane.b32.xlu1 %v5664_v23, %s5390_s22  ;;  %v187_v16 = vmul.f32 %v6380_v9, %v102_v21 }
  0xf7   :  { %v898_v11 = vmul.f32 %v6358_v37, %v791_v19  ;;  %377 = vrot.lane.b32.xlu0 %v5664_v23, %s5389_s21  ;;  %1494 = vmatprep.subr.bf16.mxu0 %v1355_v8 }
  0xf8   :  { %v927_v53 = vpop.permute.xlu1 %926 }
  0xf9   :  { %v1396_v63 = vpack.c.bf16 %v898_v11, %v748_v46  ;;  %v6389_v4 = vpop.permute.xlu0 %233  ;;  %v6408_v46 = vld [vmem:[%s9191_s1 + $0x78] sm:$0xff]  ;;  %v6416_v11 = vrot.slane %v6403_v5, %v5632_v15 }
  0xfa   :  { %v251_v23 = vsel %vm235_vm0, %v6389_v4, %v204_v61  ;;  %930 = vrot.lane.b32.xlu1 %v5958_v1, %s5392_s26  ;;  %v6422_v21 = vrot.slane %v6408_v46, %v5632_v15 }
  0xfb   :  { %780 = vrot.lane.b32.xlu0 %v5958_v1, %s5391_s25  ;;  %1704 = vmatpush1.bf16.msra.mxu1 %v1396_v63  ;;  %v337_v17 = vmul.f32 %v6384_v10, %v251_v23  ;;  %9456 = vst [vmem:[#allocation76_spill] sm:$0xff] %v6416_v11  ;;  %v6440_v10 = vrot.slane %v5724_v42, %v6317_v2 }
  0xfc   :  { %v1077_v19 = vpop.permute.xlu1 %1076  ;;  %9457 = vst [vmem:[#allocation77_spill] sm:$0xff] %v6422_v21 }
  0xfd   :  { %v6410_v61 = vpop.permute.xlu0 %928  ;;  %v1354_v8 = vpack.c.bf16 %v337_v17, %v187_v16  ;;  %9460 = vst [vmem:[#allocation80_spill] sm:$0xff] %v6440_v10 }
  0xfe   :  { %9455 = vst [vmem:[#allocation75_spill] sm:$0xff] %v6410_v61  ;;  %1230 = vrot.lane.b32.xlu1 %v5958_v1, %s5394_s28  ;;  %v940_v63 = vsel %vm936_vm5, %v927_v53, %v6410_v61 }
  0xff   :  { %1080 = vrot.lane.b32.xlu0 %v5958_v1, %s5393_s27  ;;  %1495 = vmatpush1.bf16.msra.mxu0 %v1354_v8  ;;  %v1049_v37 = vmul.f32 %v6416_v11, %v940_v63  ;;  %v6435_v1 = vrot.slane %v5714_v40, %v6317_v2 }
 0x100   :  { %v354_v23 = vpop.permute.xlu1 %353 }
 0x101   :  { %v6427_v16 = vpop.permute.xlu0 %1078  ;;  %9459 = vst [vmem:[#allocation79_spill] sm:$0xff] %v6435_v1  ;;  %v400_v9 = vsel %vm385_vm2, %v354_v23, %v5776_v59  ;;  %v6458_v59 = vrot.slane %v6408_v46, %v5645_v20 }
 0x102   :  { %9458 = vst [vmem:[#allocation78_spill] sm:$0xff] %v6427_v16  ;;  %v1090_v17 = vsel %vm1086_vm6, %v1077_v19, %v6427_v16  ;;  %v488_v11 = vmul.f32 %v6435_v1, %v400_v9 }
 0x103   :  { %v1199_v8 = vmul.f32 %v6422_v21, %v1090_v17  ;;  %v6453_v17 = vrot.slane %v6403_v5, %v5645_v20  ;;  %9463 = vst [vmem:[#allocation83_spill] sm:$0xff] %v6458_v59 }
 0x104   :  { %v6445_v61 = vpop.permute.xlu1 %924 }
 0x105   :  { %9461 = vst [vmem:[#allocation81_spill] sm:$0xff] %v6445_v61  ;;  %v504_v34 = vpop.permute.xlu0 %503  ;;  %v1413_v16 = vpack.c.bf16 %v1199_v8, %v1049_v37  ;;  %9462 = vst [vmem:[#allocation82_spill] sm:$0xff] %v6453_v17  ;;  %v941_v37 = vsel %vm936_vm5, %v6445_v61, %v927_v53  ;;  %v6481_v61 = vrot.slane %v5724_v42, %v6362_v33 }
 0x106   :  { %v550_v63 = vsel %vm535_vm3, %v504_v34, %v5774_v58  ;;  %v1435_v58 = vld [vmem:[%s9193_s3] sm:$0xff] }
 0x107   :  { %v638_v21 = vmul.f32 %v6440_v10, %v550_v63  ;;  %1705 = vmatprep.subr.bf16.mxu1 %v1413_v16  ;;  %1438 = vperm.xlu0 %5234, %v1435_v58   ;;  %v1048_v63 = vmul.f32 %v6453_v17, %v941_v37  ;;  %v6476_v10 = vrot.slane %v5714_v40, %v6362_v33 }
 0x108   :  { %v6463_v8 = vpop.permute.xlu1 %383  ;;  %9465 = vst [vmem:[#allocation85_spill] sm:$0xff] %v6481_v61 }
 0x109   :  { %v6468_v9 = vpop.permute.xlu0 %1074  ;;  %v1371_v1 = vpack.c.bf16 %v638_v21, %v488_v11  ;;  %9464 = vst [vmem:[#allocation84_spill] sm:$0xff] %v6476_v10  ;;  %v401_v11 = vsel %vm385_vm2, %v6463_v8, %v354_v23 }
 0x10a   :  { %v1091_v16 = vsel %vm1086_vm6, %v6468_v9, %v1077_v19  ;;  %v6491_v19 = vld [vmem:[%s9191_s1 + $0x88] sm:$0xff]  ;;  %v487_v42 = vmul.f32 %v6476_v10, %v401_v11  ;;  %v6516_v11 = vrot.slane %v5753_v52, %v6362_v33 }
 0x10b   :  { %v1198_v53 = vmul.f32 %v6458_v59, %v1091_v16  ;;  %1496 = vmatprep.subr.bf16.mxu0 %v1371_v1  ;;  %v6502_v23 = vrot.slane %v6491_v19, %v5645_v20  ;;  %v6506_v16 = vrot.slane %v6491_v19, %v5632_v15 }
 0x10c   :  { %v6486_v21 = vpop.permute.xlu1 %1224  ;;  %9469 = vst [vmem:[#allocation89_spill] sm:$0xff] %v6516_v11 }
 0x10d   :  { %v1412_v40 = vpack.c.bf16 %v1198_v53, %v1048_v63  ;;  %v6493_v37 = vpop.permute.xlu0 %533  ;;  %9466 = vst [vmem:[#allocation86_spill] sm:$0xff] %v6502_v23  ;;  %9467 = vst [vmem:[#allocation87_spill] sm:$0xff] %v6506_v16 }
 0x10e   :  { %v551_v1 = vsel %vm535_vm3, %v6493_v37, %v504_v34  ;;  %v6512_v34 = vrot.slane %v5753_v52, %v6317_v2  ;;  %v6532_v52 = vrot.slane %v5772_v57, %v6317_v2 }
 0x10f   :  { %v637_v58 = vmul.f32 %v6481_v61, %v551_v1  ;;  %1706 = vmatpush1.bf16.msra.mxu1 %v1412_v40 }
 0x110   :  { %v6508_v63 = vpop.permute.xlu1 %1228  ;;  %9468 = vst [vmem:[#allocation88_spill] sm:$0xff] %v6512_v34  ;;  %9471 = vst [vmem:[#allocation91_spill] sm:$0xff] %v6532_v52 }
 0x111   :  { %v1227_v53 = vpop.permute.xlu0 %1226  ;;  %v1370_v17 = vpack.c.bf16 %v637_v58, %v487_v42  ;;  %v6528_v42 = vrot.slane %v5772_v57, %v6362_v33 }
 0x112   :  { %v1240_v20 = vsel %vm1236_vm7, %v1227_v53, %v6508_v63  ;;  %v1241_v15 = vsel %vm1236_vm7, %v6486_v21, %v1227_v53  ;;  %v5369_v53 = vld [vmem:[%s9190_s0 + $0x8] sm:$0xff] }
 0x113   :  { %v1348_v40 = vmul.f32 %v6502_v23, %v1241_v15  ;;  %v1349_v1 = vmul.f32 %v6506_v16, %v1240_v20  ;;  %1497 = vmatpush1.bf16.msra.mxu0 %v1370_v17  ;;  %9470 = vst [vmem:[#allocation90_spill] sm:$0xff] %v6528_v42  ;;  %v739_v20 = vmul.f32 %v5369_v53, %v6512_v34 }
 0x114   :  { %v6534_v58 = vpop.permute.xlu1 %754  ;;  %v738_v17 = vmul.f32 %v6516_v11, %v5693_v32  ;;  %v6558_v53 = vrot.slane %v6174_v3, %v5923_v36 }
 0x115   :  { %v1428_v59 = vpack.c.bf16 %v1348_v40, %v1348_v40  ;;  %v1429_v61 = vpack.c.bf16 %v1349_v1, %v1349_v1  ;;  %v757_v10 = vpop.permute.xlu0 %756  ;;  %v6550_v40 = vrot.slane %v6179_v12, %v5923_v36 }
 0x116   :  { %v800_v15 = vsel %vm786_vm4, %v757_v10, %v5819_v39  ;;  %v801_v57 = vsel %vm786_vm4, %v6534_v58, %v757_v10  ;;  %9473 = vst [vmem:[#allocation93_spill] sm:$0xff] %v6558_v53 }
 0x117   :  { %9472 = vst [vmem:[#allocation92_spill] sm:$0xff] %v6550_v40  ;;  %v888_v1 = vmul.f32 %v6528_v42, %v801_v57  ;;  %v889_v16 = vmul.f32 %v6532_v52, %v800_v15  ;;  %4797 = vmatprep.subr.msk.bf16.mxu1 %vm1445_vm8, %v1429_v61  ;;  %v1477_v32 = vsel %vm1445_vm8, %v1428_v59, 0  ;;  %v6569_v59 = vrot.slane %v6179_v12, %v5936_v6  ;;  %v9507_v52 = vld [vmem:[#allocation47_spill] sm:$0xff] }
 0x118   :  { %1708 = vmatpush1.bf16.msra.mxu1 %v1477_v32  ;;  %v232_v39 = vpop.permute.xlu1 %231  ;;  %v6574_v32 = vrot.slane %v6174_v3, %v5936_v6 }
 0x119   :  { %v236_v10 = vsel %vm235_vm0, %v232_v39, %v6389_v4  ;;  %v81_v23 = vpop.permute.xlu0 %80  ;;  %v1387_v11 = vpack.c.bf16 %v889_v16, %v739_v20  ;;  %v1386_v34 = vpack.c.bf16 %v888_v1, %v738_v17  ;;  %9474 = vst [vmem:[#allocation94_spill] sm:$0xff] %v6569_v59 }
 0x11a   :  { %v352_v57 = vmul.f32 %v6550_v40, %v236_v10  ;;  %v87_v61 = vsel %vm86_vm1, %v81_v23, %v6364_v30  ;;  %9475 = vst [vmem:[#allocation95_spill] sm:$0xff] %v6574_v32  ;;  %v6597_v10 = vrot.slane %v5834_v51, %v6317_v2 }
 0x11b   :  { %v202_v15 = vmul.f32 %v6558_v53, %v87_v61  ;;  %1498 = vmatprep.subr.bf16.mxu0 %v1387_v11  ;;  %4798 = vmatmul.mubr.msk.bf16.vlgmr.msra.gmra.mrb[8].mxu1 %vm1441_vm9, %v5963_v48 }
 0x11c   :  { %1499 = vmatpush1.bf16.msra.mxu0 %v1386_v34  ;;  %v6578_v4 = vpop.permute.xlu1 %229  ;;  %1813 = vmatprep.mubr.bf16.mxu1 %v9407_v47  ;;  %v6592_v34 = vrot.slane %v5839_v0, %v6317_v2  ;;  %9477 = vst [vmem:[#allocation97_spill] sm:$0xff] %v6597_v10 }
 0x11d   :  { %v237_v30 = vsel %vm235_vm0, %v6578_v4, %v232_v39  ;;  %v6584_v16 = vpop.permute.xlu0 %78  ;;  %v1369_v20 = vpack.c.bf16 %v352_v57, %v202_v15 }
 0x11e   :  { %v351_v11 = vmul.f32 %v6569_v59, %v237_v30  ;;  %v88_v17 = vsel %vm86_vm1, %v6584_v16, %v81_v23  ;;  %9476 = vst [vmem:[#allocation96_spill] sm:$0xff] %v6592_v34 }
 0x11f   :  { %v201_v1 = vmul.f32 %v6574_v32, %v88_v17  ;;  %1781 = vmatprep.subr.bf16.mxu1 %v1369_v20  ;;  %v6608_v20 = vrot.slane %v5839_v0, %v6362_v33  ;;  %v6649_v32 = vrot.slane %v6241_v27, %v5936_v6 }
 0x120   :  { %v1057_v39 = vpop.permute.xlu1 %1056 }
 0x121   :  { %v1368_v61 = vpack.c.bf16 %v351_v11, %v201_v1  ;;  %v1100_v57 = vsel %vm1086_vm6, %v1057_v39, %v5891_v60  ;;  %v907_v15 = vpop.permute.xlu0 %906  ;;  %9478 = vst [vmem:[#allocation98_spill] sm:$0xff] %v6608_v20  ;;  %v6613_v11 = vrot.slane %v5834_v51, %v6362_v33  ;;  %9483 = vst [vmem:[#allocation103_spill] sm:$0xff] %v6649_v32 }
 0x122   :  { %v1189_v23 = vmul.f32 %v6592_v34, %v1100_v57  ;;  %v950_v30 = vsel %vm936_vm5, %v907_v15, %v5860_v18  ;;  %v6916_v34 = vrot.slane %v6179_v12, %v6317_v2 }
 0x123   :  { %v1039_v17 = vmul.f32 %v6597_v10, %v950_v30  ;;  %1782 = vmatpush1.bf16.msra.mxu1 %v1368_v61  ;;  %9479 = vst [vmem:[#allocation99_spill] sm:$0xff] %v6613_v11  ;;  %v6628_v61 = vrot.slane %v6246_v28, %v5923_v36  ;;  %v6633_v30 = vrot.slane %v6241_v27, %v5923_v36 }
 0x124   :  { %v6615_v1 = vpop.permute.xlu1 %1054 }
 0x125   :  { %v1101_v60 = vsel %vm1086_vm6, %v6615_v1, %v1057_v39  ;;  %v6620_v57 = vpop.permute.xlu0 %904  ;;  %v1403_v18 = vpack.c.bf16 %v1189_v23, %v1039_v17  ;;  %9480 = vst [vmem:[#allocation100_spill] sm:$0xff] %v6628_v61  ;;  %9481 = vst [vmem:[#allocation101_spill] sm:$0xff] %v6633_v30 }
 0x126   :  { %v1188_v40 = vmul.f32 %v6608_v20, %v1101_v60  ;;  %v951_v0 = vsel %vm936_vm5, %v6620_v57, %v907_v15 }
 0x127   :  { %v1038_v51 = vmul.f32 %v6613_v11, %v951_v0  ;;  %1500 = vmatprep.subr.bf16.mxu0 %v1403_v18  ;;  %v6644_v18 = vrot.slane %v6246_v28, %v5936_v6 }
 0x128   :  { %v532_v39 = vpop.permute.xlu1 %531 }
 0x129   :  { %v536_v23 = vsel %vm535_vm3, %v532_v39, %v6493_v37  ;;  %v382_v17 = vpop.permute.xlu0 %381  ;;  %v1402_v60 = vpack.c.bf16 %v1188_v40, %v1038_v51  ;;  %9482 = vst [vmem:[#allocation102_spill] sm:$0xff] %v6644_v18 }
 0x12a   :  { %v652_v15 = vmul.f32 %v6628_v61, %v536_v23  ;;  %v386_v59 = vsel %vm385_vm2, %v382_v17, %v6463_v8 }
 0x12b   :  { %v502_v0 = vmul.f32 %v6633_v30, %v386_v59  ;;  %1501 = vmatpush1.bf16.msra.mxu0 %v1402_v60  ;;  %v6664_v60 = vrot.slane %v5882_v45, %v6317_v2  ;;  %v6669_v30 = vrot.slane %v5882_v45, %v6362_v33 }
 0x12c   :  { %v6651_v37 = vpop.permute.xlu1 %529 }
 0x12d   :  { %v537_v40 = vsel %vm535_vm3, %v6651_v37, %v532_v39  ;;  %v6656_v51 = vpop.permute.xlu0 %379  ;;  %v1385_v8 = vpack.c.bf16 %v652_v15, %v502_v0  ;;  %9484 = vst [vmem:[#allocation104_spill] sm:$0xff] %v6664_v60  ;;  %9485 = vst [vmem:[#allocation105_spill] sm:$0xff] %v6669_v30 }
 0x12e   :  { %v651_v23 = vmul.f32 %v6644_v18, %v537_v40  ;;  %v387_v59 = vsel %vm385_vm2, %v6656_v51, %v382_v17  ;;  %v6677_v17 = vsub.s32 4, %v5623_v13  ;;  %v6681_v40 = vrot.slane %v6273_v56, %v5923_v36 }
 0x12f   :  { %v501_v61 = vmul.f32 %v6649_v32, %v387_v59  ;;  %1783 = vmatprep.subr.bf16.mxu1 %v1385_v8  ;;  %v6697_v32 = vrot.slane %v6273_v56, %v5936_v6 }
 0x130   :  { %v1207_v39 = vpop.permute.xlu1 %1206  ;;  %9486 = vst [vmem:[#allocation106_spill] sm:$0xff] %v6681_v40  ;;  %v753_v11 = vmul.f32 %v6681_v40, %v5719_v41 }
 0x131   :  { %v1384_v53 = vpack.c.bf16 %v651_v23, %v501_v61  ;;  %v1250_v15 = vsel %vm1236_vm7, %v1207_v39, %v5889_v50  ;;  %v6674_v0 = vpop.permute.xlu0 %1204  ;;  %v6688_v61 = vsub.s32 5, %v5623_v13  ;;  %v6692_v50 = vrot.slane %v6292_v22, %v5923_v36  ;;  %9488 = vst [vmem:[#allocation108_spill] sm:$0xff] %v6697_v32 }
 0x132   :  { %v1339_v8 = vmul.f32 %v6664_v60, %v1250_v15  ;;  %v1251_v45 = vsel %vm1236_vm7, %v6674_v0, %v1207_v39  ;;  %v5370_v39 = vld [vmem:[%s9191_s1] sm:$0xff]  ;;  %v6716_v60 = vrot.slane %v6292_v22, %v5936_v6  ;;  %v752_v20 = vmul.f32 %v6697_v32, %v5931_v62 }
 0x133   :  { %1784 = vmatpush1.bf16.msra.mxu1 %v1384_v53  ;;  %9487 = vst [vmem:[#allocation107_spill] sm:$0xff] %v6692_v50  ;;  %v1338_v23 = vmul.f32 %v6669_v30, %v1251_v45  ;;  %v6703_v13 = vrot.slane %v5370_v39, %v6677_v17  ;;  %v6708_v45 = vrot.slane %v5370_v39, %v6688_v61 }
 0x134   :  { %v1419_v59 = vpack.c.bf16 %v1339_v8, %v1339_v8  ;;  %v61_v18 = vpop.permute.xlu1 %60  ;;  %9489 = vst [vmem:[#allocation109_spill] sm:$0xff] %v6716_v60 }
 0x135   :  { %v785_v53 = vpop.permute.xlu0 %784  ;;  %v1418_v15 = vpack.c.bf16 %v1338_v23, %v1338_v23  ;;  %v5371_v23 = vld [vmem:[%s9191_s1 + $0x10] sm:$0xff]  ;;  %v98_v41 = vsel %vm86_vm1, %v5668_v25, %v61_v18  ;;  %v97_v40 = vsel %vm86_vm1, %v61_v18, %v5989_v44 }
 0x136   :  { %v802_v8 = vsel %vm786_vm4, %v785_v53, %v6534_v58  ;;  %4787 = vmatprep.subr.msk.bf16.mxu0 %vm1445_vm8, %v1419_v59  ;;  %v6722_v30 = vrot.slane %v5371_v23, %v6677_v17  ;;  %v6730_v59 = vrot.slane %v5371_v23, %v6688_v61  ;;  %v6748_v23 = vrot.slane %v6403_v5, %v5923_v36 }
 0x137   :  { %v903_v39 = vmul.f32 %v6692_v50, %v802_v8  ;;  %v1447_v58 = vsel %vm1445_vm8, %v1418_v15, 0  ;;  %v6744_v15 = vrot.slane %v6408_v46, %v5923_v36  ;;  %v191_v44 = vmul.f32 %v6703_v13, %v98_v41 }
 0x138   :  { %1503 = vmatpush1.bf16.msra.mxu0 %v1447_v58  ;;  %v6737_v10 = vpop.permute.xlu1 %782  ;;  %9491 = vst [vmem:[#allocation111_spill] sm:$0xff] %v6748_v23 }
 0x139   :  { %v787_v25 = vsel %vm786_vm4, %v6737_v10, %v785_v53  ;;  %v212_v8 = vpop.permute.xlu0 %211  ;;  %v1401_v50 = vpack.c.bf16 %v903_v39, %v753_v11  ;;  %9490 = vst [vmem:[#allocation110_spill] sm:$0xff] %v6744_v15  ;;  %v192_v53 = vmul.f32 %v6708_v45, %v97_v40 }
 0x13a   :  { %v902_v62 = vmul.f32 %v6716_v60, %v787_v25  ;;  %v246_v18 = vsel %vm235_vm0, %v212_v8, %v5987_v55  ;;  %v247_v11 = vsel %vm235_vm0, %v5666_v24, %v212_v8 }
 0x13b   :  { %v341_v39 = vmul.f32 %v6722_v30, %v247_v11  ;;  %v342_v58 = vmul.f32 %v6730_v59, %v246_v18  ;;  %4788 = vmatmul.mubr.msk.bf16.vlgmr.msra.gmra.mrb[0].mxu0 %vm1441_vm9, %v5963_v48  ;;  %1785 = vmatprep.subr.bf16.mxu1 %v1401_v50 }
 0x13c   :  { %v1400_v41 = vpack.c.bf16 %v902_v62, %v752_v20  ;;  %v1085_v25 = vpop.permute.xlu1 %1084  ;;  %1608 = vmatprep.mubr.bf16.mxu0 %v9407_v47  ;;  %v5372_v20 = vld [vmem:[%s9191_s1 + $0x30] sm:$0xff]  ;;  %v5373_v62 = vld [vmem:[%s9191_s1 + $0x20] sm:$0xff] }
 0x13d   :  { %v1358_v60 = vpack.c.bf16 %v341_v39, %v191_v44  ;;  %v1102_v55 = vsel %vm1086_vm6, %v1085_v25, %v6615_v1  ;;  %v935_v24 = vpop.permute.xlu0 %934  ;;  %v1359_v8 = vpack.c.bf16 %v342_v58, %v192_v53  ;;  %v6775_v50 = vrot.slane %v5372_v20, %v6677_v17 }
 0x13e   :  { %v1203_v40 = vmul.f32 %v6744_v15, %v1102_v55  ;;  %v952_v18 = vsel %vm936_vm5, %v935_v24, %v6620_v57  ;;  %v6778_v44 = vrot.slane %v5372_v20, %v6688_v61  ;;  %1786 = vmatpush1.bf16.msra.mxu1 %v1400_v41  ;;  %v6785_v57 = vrot.slane %v5373_v62, %v6677_v17 }
 0x13f   :  { %v1053_v1 = vmul.f32 %v6748_v23, %v952_v18  ;;  %1576 = vmatprep.subr.bf16.mxu0 %v1359_v8  ;;  %v6788_v11 = vrot.slane %v5373_v62, %v6688_v61  ;;  %v6798_v8 = vrot.slane %v6408_v46, %v5936_v6 }
 0x140   :  { %9492 = vst [vmem:[#allocation112_spill] sm:$0xff] %v6778_v44  ;;  %1577 = vmatpush1.bf16.msra.mxu0 %v1358_v60  ;;  %v512_v53 = vpop.permute.xlu1 %511 }
 0x141   :  { %v546_v39 = vsel %vm535_vm3, %v512_v53, %v6039_v31  ;;  %v547_v58 = vsel %vm535_vm3, %v5745_v49, %v512_v53  ;;  %v362_v41 = vpop.permute.xlu0 %361  ;;  %v1417_v55 = vpack.c.bf16 %v1203_v40, %v1053_v1  ;;  %9493 = vst [vmem:[#allocation113_spill] sm:$0xff] %v6798_v8  ;;  %v6812_v1 = vrot.slane %v6403_v5, %v5936_v6 }
 0x142   :  { %v641_v18 = vmul.f32 %v6775_v50, %v547_v58  ;;  %v642_v20 = vmul.f32 %v6778_v44, %v546_v39  ;;  %v396_v60 = vsel %vm385_vm2, %v362_v41, %v6041_v38  ;;  %v397_v31 = vsel %vm385_vm2, %v5727_v43, %v362_v41  ;;  %v9508_v44 = vld [vmem:[#allocation16_spill] sm:$0xff] }
 0x143   :  { %v491_v49 = vmul.f32 %v6785_v57, %v397_v31  ;;  %v492_v40 = vmul.f32 %v6788_v11, %v396_v60  ;;  %1787 = vmatprep.subr.bf16.mxu1 %v1417_v55  ;;  %9494 = vst [vmem:[#allocation114_spill] sm:$0xff] %v6812_v1  ;;  %v6827_v55 = vrot.slane %v6491_v19, %v5923_v36 }
 0x144   :  { %v6814_v62 = vpop.permute.xlu1 %1082 }
 0x145   :  { %v1374_v53 = vpack.c.bf16 %v641_v18, %v491_v49  ;;  %v1087_v38 = vsel %vm1086_vm6, %v6814_v62, %v1085_v25  ;;  %v6819_v39 = vpop.permute.xlu0 %932  ;;  %v1375_v58 = vpack.c.bf16 %v642_v20, %v492_v40  ;;  %9495 = vst [vmem:[#allocation115_spill] sm:$0xff] %v6827_v55  ;;  %v6832_v18 = vrot.slane %v6491_v19, %v5936_v6  ;;  %v5374_v20 = vld [vmem:[%s9191_s1 + $0x40] sm:$0xff] }
 0x146   :  { %v1202_v43 = vmul.f32 %v6798_v8, %v1087_v38  ;;  %v937_v41 = vsel %vm936_vm5, %v6819_v39, %v935_v24  ;;  %v6838_v31 = vrot.slane %v5374_v20, %v6677_v17  ;;  %v6846_v40 = vrot.slane %v5374_v20, %v6688_v61 }
 0x147   :  { %v1052_v60 = vmul.f32 %v6812_v1, %v937_v41  ;;  %1578 = vmatprep.subr.bf16.mxu0 %v1375_v58  ;;  %9496 = vst [vmem:[#allocation116_spill] sm:$0xff] %v6832_v18  ;;  %v5375_v58 = vld [vmem:[%s9191_s1 + $0x60] sm:$0xff] }
 0x148   :  { %1579 = vmatpush1.bf16.msra.mxu0 %v1374_v53  ;;  %v1235_v25 = vpop.permute.xlu1 %1234  ;;  %9497 = vst [vmem:[#allocation117_spill] sm:$0xff] %v6846_v40  ;;  %v6869_v20 = vrot.slane %v5375_v58, %v6688_v61 }
 0x149   :  { %v1416_v24 = vpack.c.bf16 %v1202_v43, %v1052_v60  ;;  %v1252_v36 = vsel %vm1236_vm7, %v1235_v25, %v6674_v0  ;;  %v6843_v49 = vpop.permute.xlu0 %1232  ;;  %v6857_v0 = vrot.slane %v5375_v58, %v6677_v17  ;;  %v5376_v43 = vld [vmem:[%s9191_s1 + $0x50] sm:$0xff] }
 0x14a   :  { %v1353_v6 = vmul.f32 %v6827_v55, %v1252_v36  ;;  %v1237_v53 = vsel %vm1236_vm7, %v6843_v49, %v1235_v25  ;;  %v6863_v41 = vrot.slane %v5376_v43, %v6677_v17  ;;  %v6866_v60 = vrot.slane %v5376_v43, %v6688_v61  ;;  %v5377_v36 = vld [vmem:[%s9190_s0 + $0x20] sm:$0xff] }
 0x14b   :  { %v1352_v38 = vmul.f32 %v6832_v18, %v1237_v53  ;;  %1788 = vmatpush1.bf16.msra.mxu1 %v1416_v24  ;;  %9498 = vst [vmem:[#allocation118_spill] sm:$0xff] %v6857_v0  ;;  %v742_v53 = vmul.f32 %v5377_v36, %v6838_v31  ;;  %v5378_v55 = vld [vmem:[%s9191_s1 + $0x80] sm:$0xff]  ;;  %v5379_v36 = vld [vmem:[%s9190_s0 + $0x28] sm:$0xff] }
 0x14c   :  { %9499 = vst [vmem:[#allocation119_spill] sm:$0xff] %v6866_v60  ;;  %v1433_v25 = vpack.c.bf16 %v1353_v6, %v1353_v6  ;;  %v915_v24 = vpop.permute.xlu1 %914  ;;  %v6879_v18 = vrot.slane %v5378_v55, %v6677_v17  ;;  %v6885_v23 = vrot.slane %v5378_v55, %v6688_v61  ;;  %v743_v1 = vmul.f32 %v5379_v36, %v6846_v40  ;;  %v9502_v36 = vld [vmem:[#allocation42_spill] sm:$0xff] }
 0x14d   :  { %v1432_v43 = vpack.c.bf16 %v1352_v38, %v1352_v38  ;;  %v947_v6 = vsel %vm936_vm5, %v5842_v54, %v915_v24  ;;  %v765_v58 = vpop.permute.xlu0 %764  ;;  %v5380_v54 = vld [vmem:[%s9191_s1 + $0x70] sm:$0xff]  ;;  %9503 = vst [vmem:[#allocation42_spill] sm:$0xff] %v6916_v34 }
 0x14e   :  { %9500 = vst [vmem:[#allocation120_spill] sm:$0xff] %v6879_v18  ;;  %9501 = vst [vmem:[#allocation121_spill] sm:$0xff] %v6885_v23  ;;  %v796_v15 = vsel %vm786_vm4, %v765_v58, %v6085_v29  ;;  %v797_v38 = vsel %vm786_vm4, %v5799_v26, %v765_v58  ;;  %4801 = vmatprep.subr.msk.bf16.mxu1 %vm1445_vm8, %v1433_v25  ;;  %v6902_v55 = vrot.slane %v5380_v54, %v6677_v17 }
 0x14f   :  { %v6905_v8 = vrot.slane %v5380_v54, %v6688_v61  ;;  %v946_v29 = vsel %vm936_vm5, %v915_v24, %v9502_v36  ;;  %v892_v32 = vmul.f32 %v6863_v41, %v797_v38  ;;  %v893_v26 = vmul.f32 %v6866_v60, %v796_v15  ;;  %v9505_v24 = vld [vmem:[#allocation46_spill] sm:$0xff]  ;;  %v9506_v15 = vld [vmem:[#allocation21_spill] sm:$0xff] }
 0x150   :  { %v1489_v25 = vsel %vm1445_vm8, %v1432_v43, 0  ;;  %v1042_v58 = vmul.f32 %v6857_v0, %v947_v6  ;;  %v1215_v40 = vpop.permute.xlu1 %1214  ;;  %v6920_v54 = vrot.slane %v6174_v3, %v6317_v2 }
 0x151   :  { %1790 = vmatpush1.bf16.msra.mxu1 %v1489_v25  ;;  %v1390_v42 = vpack.c.bf16 %v892_v32, %v742_v53  ;;  %v1246_v38 = vsel %vm1236_vm7, %v1215_v40, %v9505_v24  ;;  %v1247_v43 = vsel %vm1236_vm7, %v9506_v15, %v1215_v40  ;;  %v1065_v6 = vpop.permute.xlu0 %1064  ;;  %v1391_v36 = vpack.c.bf16 %v893_v26, %v743_v1  ;;  %v9511_v26 = vld [vmem:[#allocation57_spill] sm:$0xff] }
 0x152   :  { %9504 = vst [vmem:[#allocation122_spill] sm:$0xff] %v6920_v54  ;;  %v1043_v25 = vmul.f32 %v6869_v20, %v946_v29  ;;  %v1342_v60 = vmul.f32 %v6879_v18, %v1247_v43  ;;  %v1096_v0 = vsel %vm1086_vm6, %v1065_v6, %v9507_v52  ;;  %v1097_v32 = vsel %vm1086_vm6, %v9508_v44, %v1065_v6  ;;  %v9513_v43 = vld [vmem:[#allocation25_spill] sm:$0xff] }
 0x153   :  { %v1343_v53 = vmul.f32 %v6885_v23, %v1246_v38  ;;  %v1192_v24 = vmul.f32 %v6902_v55, %v1097_v32  ;;  %v1193_v40 = vmul.f32 %v6905_v8, %v1096_v0  ;;  %1580 = vmatprep.subr.bf16.mxu0 %v1391_v36  ;;  %v6943_v1 = vrot.slane %v6179_v12, %v6362_v33  ;;  %v9514_v36 = vld [vmem:[#allocation58_spill] sm:$0xff] }
 0x154   :  { %4802 = vmatmul.mubr.msk.bf16.vlgmr.msra.gmra.mrb[12].mxu1 %vm1441_vm9, %v5963_v48  ;;  %1581 = vmatpush1.bf16.msra.mxu0 %v1390_v42  ;;  %v220_v52 = vpop.permute.xlu1 %219  ;;  %v6947_v29 = vrot.slane %v6174_v3, %v6362_v33  ;;  %v6955_v48 = vrot.slane %v6246_v28, %v6317_v2  ;;  %v1422_v42 = vpack.c.bf16 %v1342_v60, %v1342_v60 }
 0x155   :  { %9509 = vst [vmem:[#allocation46_spill] sm:$0xff] %v6943_v1  ;;  %2577 = vmatprep.mubr.bf16.mxu1 %v9407_v47  ;;  %v1406_v44 = vpack.c.bf16 %v1192_v24, %v1042_v58  ;;  %v242_v0 = vsel %vm235_vm0, %v220_v52, %v9511_v26  ;;  %v69_v38 = vpop.permute.xlu0 %68  ;;  %v1407_v15 = vpack.c.bf16 %v1193_v40, %v1043_v25  ;;  %v9516_v40 = vld [vmem:[#allocation22_spill] sm:$0xff] }
 0x156   :  { %9510 = vst [vmem:[#allocation21_spill] sm:$0xff] %v6947_v29  ;;  %9512 = vst [vmem:[#allocation47_spill] sm:$0xff] %v6955_v48  ;;  %v243_v6 = vsel %vm235_vm0, %v9513_v43, %v220_v52  ;;  %v93_v32 = vsel %vm86_vm1, %v69_v38, %v9514_v36  ;;  %v6965_v58 = vrot.slane %v6241_v27, %v6317_v2  ;;  %v1459_v18 = vsel %vm1445_vm8, %v1422_v42, 0 }
 0x157   :  { %v1423_v24 = vpack.c.bf16 %v1343_v53, %v1343_v53  ;;  %v346_v25 = vmul.f32 %v6916_v34, %v242_v0  ;;  %v94_v26 = vsel %vm86_vm1, %v9516_v40, %v69_v38  ;;  %v196_v60 = vmul.f32 %v6920_v54, %v93_v32  ;;  %1582 = vmatprep.subr.bf16.mxu0 %v1407_v15  ;;  %v9520_v40 = vld [vmem:[#allocation31_spill] sm:$0xff]  ;;  %v9521_v54 = vld [vmem:[#allocation28_spill] sm:$0xff] }
 0x158   :  { %9515 = vst [vmem:[#allocation16_spill] sm:$0xff] %v6965_v58  ;;  %1583 = vmatpush1.bf16.msra.mxu0 %v1406_v44  ;;  %v6974_v52 = vrot.slane %v6246_v28, %v6362_v33  ;;  %v520_v43 = vpop.permute.xlu1 %519  ;;  %v6978_v36 = vrot.slane %v6241_v27, %v6362_v33  ;;  %v345_v53 = vmul.f32 %v6943_v1, %v243_v6 }
 0x159   :  { %v542_v0 = vsel %vm535_vm3, %v520_v43, %v6294_v35  ;;  %v370_v38 = vpop.permute.xlu0 %369  ;;  %4791 = vmatprep.subr.msk.bf16.mxu0 %vm1445_vm8, %v1423_v24  ;;  %v6987_v44 = vrot.slane %v6292_v22, %v6317_v2  ;;  %v6991_v15 = vrot.slane %v6273_v56, %v6317_v2  ;;  %v195_v32 = vmul.f32 %v6947_v29, %v94_v26 }
 0x15a   :  { %9517 = vst [vmem:[#allocation57_spill] sm:$0xff] %v6974_v52  ;;  %v543_v6 = vsel %vm535_vm3, %v9520_v40, %v520_v43  ;;  %v392_v35 = vsel %vm385_vm2, %v370_v38, %v6296_v7  ;;  %v393_v24 = vsel %vm385_vm2, %v9521_v54, %v370_v38  ;;  %v646_v34 = vmul.f32 %v6955_v48, %v542_v0  ;;  %v9524_v38 = vld [vmem:[#allocation72_spill] sm:$0xff] }
 0x15b   :  { %9518 = vst [vmem:[#allocation25_spill] sm:$0xff] %v6987_v44  ;;  %9519 = vst [vmem:[#allocation58_spill] sm:$0xff] %v6991_v15  ;;  %v496_v23 = vmul.f32 %v6965_v58, %v392_v35  ;;  %v1363_v1 = vpack.c.bf16 %v346_v25, %v196_v60  ;;  %v7008_v43 = vrot.slane %v6273_v56, %v6362_v33  ;;  %v9526_v25 = vld [vmem:[#allocation36_spill] sm:$0xff]  ;;  %v9533_v58 = vld [vmem:[#allocation43_spill] sm:$0xff] }
 0x15c   :  { %1585 = vmatpush1.bf16.msra.mxu0 %v1459_v18  ;;  %v923_v26 = vpop.permute.xlu1 %922  ;;  %v645_v40 = vmul.f32 %v6974_v52, %v543_v6  ;;  %v495_v7 = vmul.f32 %v6978_v36, %v393_v24  ;;  %v1362_v54 = vpack.c.bf16 %v345_v53, %v195_v32  ;;  %v7014_v0 = vrot.slane %v6292_v22, %v6362_v33  ;;  %v5382_v32 = vld [vmem:[%s9190_s0 + $0x48] sm:$0xff]  ;;  %v5383_v24 = vld [vmem:[%s9190_s0 + $0x40] sm:$0xff] }
 0x15d   :  { %9522 = vst [vmem:[#allocation22_spill] sm:$0xff] %v7008_v43  ;;  %v773_v29 = vpop.permute.xlu0 %772  ;;  %1658 = vmatprep.subr.bf16.mxu0 %v1363_v1  ;;  %v7021_v42 = vrot.slane %v6408_v46, %v6317_v2  ;;  %v7030_v1 = vld [vmem:[%s9192_s2] sm:$0xf]  ;;  %v1379_v53 = vpack.c.bf16 %v646_v34, %v496_v23  ;;  %v747_v35 = vmul.f32 %v5382_v32, %v6991_v15 }
 0x15e   :  { %9523 = vst [vmem:[#allocation31_spill] sm:$0xff] %v7014_v0  ;;  %v792_v18 = vsel %vm786_vm4, %v773_v29, %v9524_v38  ;;  %v793_v60 = vsel %vm786_vm4, %v9526_v25, %v773_v29  ;;  %v7040_v29 = vrot.slane %v6403_v5, %v6317_v2  ;;  %v746_v38 = vmul.f32 %v5383_v24, %v7008_v43  ;;  %v9531_v24 = vld [vmem:[#allocation81_spill] sm:$0xff]  ;;  %v9532_v43 = vld [vmem:[#allocation50_spill] sm:$0xff] }
 0x15f   :  { %9525 = vst [vmem:[#allocation28_spill] sm:$0xff] %v7021_v42  ;;  %v897_v6 = vmul.f32 %v6987_v44, %v792_v18  ;;  %4792 = vmatmul.mubr.msk.bf16.vlgmr.msra.gmra.mrb[4].mxu0 %vm1441_vm9, %v7030_v1  ;;  %v1378_v34 = vpack.c.bf16 %v645_v40, %v495_v7  ;;  %v7049_v23 = vrot.slane %v6491_v19, %v6362_v33 }
 0x160   :  { %9527 = vst [vmem:[#allocation72_spill] sm:$0xff] %v7040_v29  ;;  %1659 = vmatpush1.bf16.msra.mxu0 %v1362_v54  ;;  %v1223_v18 = vpop.permute.xlu1 %1222  ;;  %1690 = vmatprep.mubr.bf16.mxu0 %v9407_v47  ;;  %v7053_v25 = vrot.slane %v6491_v19, %v6317_v2  ;;  %v7057_v32 = vrot.slane %v6408_v46, %v6362_v33 }
 0x161   :  { %9528 = vst [vmem:[#allocation36_spill] sm:$0xff] %v7049_v23  ;;  %v1073_v15 = vpop.permute.xlu0 %1072  ;;  %1660 = vmatprep.subr.bf16.mxu0 %v1379_v53  ;;  %v942_v54 = vsel %vm936_vm5, %v923_v26, %v9531_v24  ;;  %v896_v40 = vmul.f32 %v7014_v0, %v793_v60  ;;  %v1242_v7 = vsel %vm1236_vm7, %v1223_v18, %v6486_v21  ;;  %v9535_v0 = vld [vmem:[#allocation39_spill] sm:$0xff] }
 0x162   :  { %9529 = vst [vmem:[#allocation123_spill] sm:$0xff] %v7053_v25  ;;  %9530 = vst [vmem:[#allocation124_spill] sm:$0xff] %v7057_v32  ;;  %v1092_v2 = vsel %vm1086_vm6, %v1073_v15, %v6468_v9  ;;  %v1243_v44 = vsel %vm1236_vm7, %v9532_v43, %v1223_v18  ;;  %v1093_v53 = vsel %vm1086_vm6, %v9533_v58, %v1073_v15 }
 0x163   :  { %v1197_v24 = vmul.f32 %v7021_v42, %v1092_v2  ;;  %v1395_v48 = vpack.c.bf16 %v897_v6, %v747_v35  ;;  %v7078_v60 = vrot.slane %v6403_v5, %v6362_v33  ;;  %v943_v9 = vsel %vm936_vm5, %v9535_v0, %v923_v26  ;;  %v9576_v42 = vld [vmem:[#allocation3_spill] sm:$0xff] }
 0x164   :  { %1661 = vmatpush1.bf16.msra.mxu0 %v1378_v34  ;;  %v228_v21 = vpop.permute.xlu1 %227  ;;  %v1047_v52 = vmul.f32 %v7040_v29, %v942_v54  ;;  %v1394_v18 = vpack.c.bf16 %v896_v40, %v746_v38  ;;  %v1346_v58 = vmul.f32 %v7049_v23, %v1243_v44  ;;  %v1347_v15 = vmul.f32 %v7053_v25, %v1242_v7 }
 0x165   :  { %9534 = vst [vmem:[#allocation81_spill] sm:$0xff] %v7078_v60  ;;  %v77_v43 = vpop.permute.xlu0 %76  ;;  %1662 = vmatprep.subr.bf16.mxu0 %v1395_v48  ;;  %v1196_v6 = vmul.f32 %v7057_v32, %v1093_v53  ;;  %v7089_v33 = vrot.slane %v6179_v12, %v6688_v61  ;;  %v7093_v35 = vrot.slane %v6174_v3, %v6688_v61  ;;  %v9577_v32 = vld [vmem:[#allocation2_spill] sm:$0xff] }
 0x166   :  { %v1411_v26 = vpack.c.bf16 %v1197_v24, %v1047_v52  ;;  %v1046_v0 = vmul.f32 %v7078_v60, %v943_v9  ;;  %v238_v48 = vsel %vm235_vm0, %v228_v21, %v6578_v4  ;;  %v89_v44 = vsel %vm86_vm1, %v77_v43, %v6584_v16  ;;  %v9543_v24 = vld [vmem:[#allocation51_spill] sm:$0xff] }
 0x167   :  { %9536 = vst [vmem:[#allocation50_spill] sm:$0xff] %v7089_v33  ;;  %9537 = vst [vmem:[#allocation43_spill] sm:$0xff] %v7093_v35  ;;  %v7104_v38 = vrot.slane %v6179_v12, %v6677_v17  ;;  %v7108_v34 = vrot.slane %v6174_v3, %v6677_v17  ;;  %v7112_v52 = vrot.slane %v6246_v28, %v6688_v61  ;;  %v9542_v12 = vld [vmem:[#allocation54_spill] sm:$0xff] }
 0x168   :  { %1663 = vmatpush1.bf16.msra.mxu0 %v1394_v18  ;;  %v528_v54 = vpop.permute.xlu1 %527  ;;  %v1426_v4 = vpack.c.bf16 %v1346_v58, %v1346_v58  ;;  %v1427_v7 = vpack.c.bf16 %v1347_v15, %v1347_v15  ;;  %v1410_v2 = vpack.c.bf16 %v1196_v6, %v1046_v0  ;;  %v7116_v16 = vrot.slane %v6241_v27, %v6688_v61  ;;  %v9548_v0 = vld [vmem:[#allocation62_spill] sm:$0xff] }
 0x169   :  { %9538 = vst [vmem:[#allocation39_spill] sm:$0xff] %v7104_v38  ;;  %9539 = vst [vmem:[#allocation125_spill] sm:$0xff] %v7108_v34  ;;  %v378_v40 = vpop.permute.xlu0 %377  ;;  %1664 = vmatprep.subr.bf16.mxu0 %v1411_v26  ;;  %v239_v53 = vsel %vm235_vm0, %v9542_v12, %v228_v21  ;;  %v350_v3 = vmul.f32 %v7089_v33, %v238_v48  ;;  %v90_v9 = vsel %vm86_vm1, %v9543_v24, %v77_v43 }
 0x16a   :  { %9540 = vst [vmem:[#allocation126_spill] sm:$0xff] %v7112_v52  ;;  %9541 = vst [vmem:[#allocation127_spill] sm:$0xff] %v7116_v16  ;;  %v200_v18 = vmul.f32 %v7093_v35, %v89_v44  ;;  %v538_v58 = vsel %vm535_vm3, %v528_v54, %v6651_v37  ;;  %v388_v15 = vsel %vm385_vm2, %v378_v40, %v6656_v51  ;;  %v1471_v48 = vsel %vm1445_vm8, %v1426_v4, 0 }
 0x16b   :  { %v7134_v21 = vrot.slane %v6246_v28, %v6677_v17  ;;  %v7138_v6 = vrot.slane %v6241_v27, %v6677_v17  ;;  %v7142_v43 = vrot.slane %v6292_v22, %v6688_v61  ;;  %v7147_v37 = vrot.slane %v6273_v56, %v6688_v61 }
 0x16c   :  { %1665 = vmatpush1.bf16.msra.mxu0 %v1410_v2  ;;  %v349_v51 = vmul.f32 %v7104_v38, %v239_v53  ;;  %v199_v28 = vmul.f32 %v7108_v34, %v90_v9  ;;  %v539_v27 = vsel %vm535_vm3, %v9548_v0, %v528_v54  ;;  %v650_v44 = vmul.f32 %v7112_v52, %v538_v58  ;;  %v9549_v2 = vld [vmem:[#allocation59_spill] sm:$0xff]  ;;  %v931_v24 = vpop.permute.xlu1 %930  ;;  %v5385_v0 = vld [vmem:[%s9190_s0 + $0x60] sm:$0xff]  ;;  %v9574_v38 = vld [vmem:[#allocation68_spill] sm:$0xff] }
 0x16d   :  { %9544 = vst [vmem:[#allocation54_spill] sm:$0xff] %v7134_v21  ;;  %9545 = vst [vmem:[#allocation51_spill] sm:$0xff] %v7138_v6  ;;  %v781_v26 = vpop.permute.xlu0 %780  ;;  %4795 = vmatprep.subr.msk.bf16.mxu0 %vm1445_vm8, %v1427_v7  ;;  %v389_v7 = vsel %vm385_vm2, %v9549_v2, %v378_v40  ;;  %v500_v12 = vmul.f32 %v7116_v16, %v388_v15  ;;  %v1367_v33 = vpack.c.bf16 %v350_v3, %v200_v18 }
 0x16e   :  { %9546 = vst [vmem:[#allocation128_spill] sm:$0xff] %v7142_v43  ;;  %9547 = vst [vmem:[#allocation129_spill] sm:$0xff] %v7147_v37  ;;  %v788_v53 = vsel %vm786_vm4, %v781_v26, %v6737_v10  ;;  %v7165_v54 = vrot.slane %v6273_v56, %v6677_v17  ;;  %v7169_v4 = vrot.slane %v6292_v22, %v6677_v17  ;;  %v9553_v10 = vld [vmem:[#allocation67_spill] sm:$0xff] }
 0x16f   :  { %v1366_v40 = vpack.c.bf16 %v349_v51, %v199_v28  ;;  %v649_v58 = vmul.f32 %v7134_v21, %v539_v27  ;;  %v499_v3 = vmul.f32 %v7138_v6, %v389_v7  ;;  %v7175_v18 = vrot.slane %v6408_v46, %v6688_v61  ;;  %v9573_v21 = vld [vmem:[#allocation69_spill] sm:$0xff] }
 0x170   :  { %1667 = vmatpush1.bf16.msra.mxu0 %v1471_v48  ;;  %9550 = vst [vmem:[#allocation62_spill] sm:$0xff] %v7165_v54  ;;  %9551 = vst [vmem:[#allocation59_spill] sm:$0xff] %v7169_v4  ;;  %v789_v56 = vsel %vm786_vm4, %v9553_v10, %v781_v26  ;;  %v901_v15 = vmul.f32 %v7142_v43, %v788_v53  ;;  %v1383_v22 = vpack.c.bf16 %v650_v44, %v500_v12  ;;  %v1231_v44 = vpop.permute.xlu1 %1230 }
 0x171   :  { %v1081_v9 = vpop.permute.xlu0 %1080  ;;  %1740 = vmatprep.subr.bf16.mxu0 %v1367_v33  ;;  %9552 = vst [vmem:[#allocation130_spill] sm:$0xff] %v7175_v18  ;;  %v5384_v33 = vld [vmem:[%s9190_s0 + $0x68] sm:$0xff]  ;;  %v7193_v26 = vrot.slane %v6403_v5, %v6688_v61  ;;  %v750_v27 = vmul.f32 %v5385_v0, %v7165_v54  ;;  %v7201_v48 = vrot.slane %v6491_v19, %v6677_v17 }
 0x172   :  { %v751_v51 = vmul.f32 %v5384_v33, %v7147_v37  ;;  %v1088_v28 = vsel %vm1086_vm6, %v1081_v9, %v6814_v62  ;;  %v1382_v62 = vpack.c.bf16 %v649_v58, %v499_v3  ;;  %v938_v2 = vsel %vm936_vm5, %v931_v24, %v6819_v39 }
 0x173   :  { %4796 = vmatmul.mubr.msk.bf16.vlgmr.msra.gmra.mrb[8].mxu0 %vm1441_vm9, %v7030_v1  ;;  %9554 = vst [vmem:[#allocation67_spill] sm:$0xff] %v7193_v26  ;;  %9555 = vst [vmem:[#allocation131_spill] sm:$0xff] %v7201_v48  ;;  %v900_v7 = vmul.f32 %v7169_v4, %v789_v56  ;;  %v7209_v12 = vrot.slane %v6408_v46, %v6677_v17  ;;  %v7213_v53 = vrot.slane %v6491_v19, %v6688_v61  ;;  %v9560_v61 = vld [vmem:[#allocation75_spill] sm:$0xff] }
 0x174   :  { %1741 = vmatpush1.bf16.msra.mxu0 %v1366_v40  ;;  %1772 = vmatprep.mubr.bf16.mxu0 %v9407_v47  ;;  %v9558_v40 = vld [vmem:[#allocation78_spill] sm:$0xff]  ;;  %v1201_v58 = vmul.f32 %v7175_v18, %v1088_v28  ;;  %v1399_v3 = vpack.c.bf16 %v901_v15, %v751_v51  ;;  %v7221_v39 = vrot.slane %v6403_v5, %v6677_v17 }
 0x175   :  { %1742 = vmatprep.subr.bf16.mxu0 %v1383_v22  ;;  %9556 = vst [vmem:[#allocation132_spill] sm:$0xff] %v7209_v12  ;;  %9557 = vst [vmem:[#allocation133_spill] sm:$0xff] %v7213_v53  ;;  %v1089_v10 = vsel %vm1086_vm6, %v9558_v40, %v1081_v9  ;;  %v1238_v46 = vsel %vm1236_vm7, %v1231_v44, %v6843_v49  ;;  %v1239_v19 = vsel %vm1236_vm7, %v6508_v63, %v1231_v44 }
 0x176   :  { %9559 = vst [vmem:[#allocation78_spill] sm:$0xff] %v7221_v39  ;;  %v939_v9 = vsel %vm936_vm5, %v9560_v61, %v931_v24  ;;  %v1051_v56 = vmul.f32 %v7193_v26, %v938_v2  ;;  %v1398_v15 = vpack.c.bf16 %v900_v7, %v750_v27  ;;  %v1200_v5 = vmul.f32 %v7209_v12, %v1089_v10 }
 0x177   :  { %v1350_v17 = vmul.f32 %v7201_v48, %v1239_v19  ;;  %v1351_v22 = vmul.f32 %v7213_v53, %v1238_v46  ;;  %v1050_v33 = vmul.f32 %v7221_v39, %v939_v9 }
 0x178   :  { %1743 = vmatpush1.bf16.msra.mxu0 %v1382_v62  ;;  %v1415_v49 = vpack.c.bf16 %v1201_v58, %v1051_v56 }
 0x179   :  { %1744 = vmatprep.subr.bf16.mxu0 %v1399_v3  ;;  %v1414_v51 = vpack.c.bf16 %v1200_v5, %v1050_v33  ;;  %v1430_v0 = vpack.c.bf16 %v1350_v17, %v1350_v17  ;;  %v1431_v24 = vpack.c.bf16 %v1351_v22, %v1351_v22 }
 0x17b   :  { %v1483_v27 = vsel %vm1445_vm8, %v1430_v0, 0 }
 0x17c   :  { %1745 = vmatpush1.bf16.msra.mxu0 %v1398_v15 }
 0x17d   :  { %1746 = vmatprep.subr.bf16.mxu0 %v1415_v49  ;;  %v1569_v63 = vpop.f32.mrb[0].mxu1 }
 0x17e   :  { %v1571_v28 = vpop.f32.mrb[1].mxu1 }
 0x17f   :  { %v1573_v44 = vpop.f32.mrb[2].mxu1 }
 0x180   :  { %1747 = vmatpush1.bf16.msra.mxu0 %v1414_v51  ;;  %v1574_v62 = vpop.f32.mrb[3].mxu1 }
 0x181   :  { %4799 = vmatprep.subr.msk.bf16.mxu0 %vm1445_vm8, %v1431_v24 }
 0x184   :  { %1749 = vmatpush1.bf16.msra.mxu0 %v1483_v27 }
 0x186   :  { %v7250_v61 = vpop.permute.xlu0 %1438 }
 0x187   :  { %4800 = vmatmul.mubr.msk.bf16.vlgmr.msra.gmra.mrb[12].mxu0 %vm1441_vm9, %v7030_v1  ;;  %v1570_v22 = vadd.f32 %v1569_v63, %v7250_v61  ;;  %v1572_v62 = vadd.f32 %v1571_v28, %v7250_v61 }
 0x188   :  { %2536 = vmatprep.mubr.bf16.mxu0 %v9407_v47 }
 0x189   :  { %v7260_v49 = vmax.f32 %v1570_v22, 0.0 }
 0x1ad   :  { %v7242_v2 = vpop.f32.mrb[4].mxu1 }
 0x1ae   :  { %v7244_v7 = vpop.f32.mrb[5].mxu1  ;;  %v1652_v22 = vadd.f32 %v7242_v2, %v7250_v61 }
 0x1af   :  { %v1655_v40 = vpop.f32.mrb[6].mxu1 }
 0x1b0   :  { %v1656_v10 = vpop.f32.mrb[7].mxu1 }
 0x1ee   :  { %v7246_v58 = vpop.f32.mrb[8].mxu1 }
 0x1ef   :  { %v7248_v3 = vpop.f32.mrb[9].mxu1  ;;  %v1734_v26 = vadd.f32 %v7246_v58, %v7250_v61 }
 0x1f0   :  { %v1737_v46 = vpop.f32.mrb[10].mxu1 }
 0x1f1   :  { %v1738_v19 = vpop.f32.mrb[11].mxu1  ;;  %v7302_v46 = vmax.f32 %v1572_v62, 0.0  ;;  %v7355_v62 = vmax.f32 %v1652_v22, 0.0 }
 0x20e   :  { %v1528_v9 = vpop.f32.mrb[0].mxu0 }
 0x20f   :  { %v1529_v56 = vadd.f32 %v1528_v9, %v7250_v61  ;;  %v1530_v1 = vpop.f32.mrb[1].mxu0 }
 0x210   :  { %v1532_v15 = vpop.f32.mrb[2].mxu0  ;;  %v1531_v0 = vadd.f32 %v1530_v1, %v7250_v61 }
 0x211   :  { %v7253_v5 = vmax.f32 %v1529_v56, 0.0  ;;  %v1533_v17 = vpop.f32.mrb[3].mxu0 }
 0x212   :  { %v7291_v44 = vmax.f32 %v1531_v0, 0.0 }
 0x213   :  { %9561 = vst [vmem:[#allocation75_spill] sm:$0xff] %v7253_v5  ;;  %1902 = vrot.lane.b32.xlu0 %v7253_v5, %s5387_s15  ;;  %1838 = vrot.lane.b32.xlu1 %v7253_v5, %s5388_s16 }
 0x217   :  { %1842 = vrot.lane.b32.xlu0 %v7260_v49, %s5388_s16  ;;  %1906 = vrot.lane.b32.xlu1 %v7260_v49, %s5387_s15 }
 0x21b   :  { %1966 = vrot.lane.b32.xlu0 %v7253_v5, %s5389_s21  ;;  %2034 = vrot.lane.b32.xlu1 %v7260_v49, %s5390_s22 }
 0x21f   :  { %2030 = vrot.lane.b32.xlu0 %v7253_v5, %s5390_s22  ;;  %2114 = vrot.lane.b32.xlu1 %v7260_v49, %s5391_s25 }
 0x223   :  { %1970 = vrot.lane.b32.xlu0 %v7260_v49, %s5389_s21  ;;  %2174 = vrot.lane.b32.xlu1 %v7253_v5, %s5392_s26 }
 0x227   :  { %v7278_v33 = vpop.f32.mrb[12].mxu1  ;;  %2110 = vrot.lane.b32.xlu0 %v7253_v5, %s5391_s25  ;;  %2302 = vrot.lane.b32.xlu1 %v7253_v5, %s5394_s28 }
 0x228   :  { %v7280_v63 = vpop.f32.mrb[13].mxu1 }
 0x229   :  { %v1819_v51 = vpop.f32.mrb[14].mxu1  ;;  %v1818_v58 = vadd.f32 %v7280_v63, %v7250_v61 }
 0x22a   :  { %v1820_v24 = vpop.f32.mrb[15].mxu1 }
 0x22b   :  { %2178 = vrot.lane.b32.xlu0 %v7260_v49, %s5392_s26  ;;  %2306 = vrot.lane.b32.xlu1 %v7260_v49, %s5394_s28  ;;  %v7480_v52 = vmax.f32 %v1818_v58, 0.0 }
 0x22d   :  { %9571 = vst [vmem:[#allocation143_spill] sm:$0xff] %v7480_v52 }
 0x22f   :  { %2242 = vrot.lane.b32.xlu0 %v7260_v49, %s5393_s27  ;;  %1840 = vrot.lane.b32.xlu1 %v7291_v44, %s5388_s16 }
 0x232   :  { %v1610_v27 = vpop.f32.mrb[4].mxu0 }
 0x233   :  { %v1612_v40 = vpop.f32.mrb[5].mxu0  ;;  %2238 = vrot.lane.b32.xlu0 %v7253_v5, %s5393_s27  ;;  %1904 = vrot.lane.b32.xlu1 %v7291_v44, %s5387_s15  ;;  %v1611_v1 = vadd.f32 %v1610_v27, %v7250_v61 }
 0x234   :  { %v1614_v10 = vpop.f32.mrb[6].mxu0  ;;  %v1613_v2 = vadd.f32 %v1612_v40, %v7250_v61 }
 0x235   :  { %v1615_v19 = vpop.f32.mrb[7].mxu0  ;;  %v7331_v17 = vmax.f32 %v1611_v1, 0.0 }
 0x236   :  { %v7370_v10 = vmax.f32 %v1613_v2, 0.0  ;;  %v1654_v19 = vadd.f32 %v7244_v7, %v7250_v61 }
 0x237   :  { %1908 = vrot.lane.b32.xlu0 %v7302_v46, %s5387_s15  ;;  %1844 = vrot.lane.b32.xlu1 %v7302_v46, %s5388_s16 }
 0x238   :  { %9562 = vst [vmem:[#allocation134_spill] sm:$0xff] %v7370_v10  ;;  %v7382_v40 = vmax.f32 %v1654_v19, 0.0 }
 0x23b   :  { %2036 = vrot.lane.b32.xlu0 %v7302_v46, %s5390_s22  ;;  %1968 = vrot.lane.b32.xlu1 %v7291_v44, %s5389_s21 }
 0x23f   :  { %2112 = vrot.lane.b32.xlu0 %v7291_v44, %s5391_s25  ;;  %2032 = vrot.lane.b32.xlu1 %v7291_v44, %s5390_s22 }
 0x243   :  { %2180 = vrot.lane.b32.xlu0 %v7302_v46, %s5392_s26  ;;  %1972 = vrot.lane.b32.xlu1 %v7302_v46, %s5389_s21 }
 0x246   :  { %v1692_v28 = vpop.f32.mrb[8].mxu0 }
 0x247   :  { %v7320_v9 = vpop.f32.mrb[9].mxu0  ;;  %2304 = vrot.lane.b32.xlu0 %v7291_v44, %s5394_s28  ;;  %2116 = vrot.lane.b32.xlu1 %v7302_v46, %s5391_s25  ;;  %v1693_v1 = vadd.f32 %v1692_v28, %v7250_v61 }
 0x248   :  { %v1696_v56 = vpop.f32.mrb[10].mxu0  ;;  %v1695_v48 = vadd.f32 %v7320_v9, %v7250_v61  ;;  %v7461_v9 = vmax.f32 %v1734_v26, 0.0 }
 0x249   :  { %v1697_v15 = vpop.f32.mrb[11].mxu0 }
 0x24a   :  { %v7455_v39 = vmax.f32 %v1695_v48, 0.0  ;;  %9570 = vst [vmem:[#allocation142_spill] sm:$0xff] %v7461_v9  ;;  %v1736_v48 = vadd.f32 %v7248_v3, %v7250_v61 }
 0x24b   :  { %2308 = vrot.lane.b32.xlu0 %v7302_v46, %s5394_s28  ;;  %2176 = vrot.lane.b32.xlu1 %v7291_v44, %s5392_s26 }
 0x24c   :  { %9567 = vst [vmem:[#allocation139_spill] sm:$0xff] %v7455_v39  ;;  %v7484_v6 = vmax.f32 %v1736_v48, 0.0 }
 0x24f   :  { %2118 = vrot.lane.b32.xlu0 %v7331_v17, %s5391_s25  ;;  %2240 = vrot.lane.b32.xlu1 %v7291_v44, %s5393_s27 }
 0x253   :  { %2246 = vrot.lane.b32.xlu0 %v7331_v17, %s5393_s27  ;;  %2244 = vrot.lane.b32.xlu1 %v7302_v46, %s5393_s27 }
 0x257   :  { %1846 = vrot.lane.b32.xlu0 %v7331_v17, %s5388_s16  ;;  %2182 = vrot.lane.b32.xlu1 %v7331_v17, %s5392_s26 }
 0x25a   :  { %v7347_v51 = vpop.f32.mrb[12].mxu0 }
 0x25b   :  { %v7349_v0 = vpop.f32.mrb[13].mxu0  ;;  %1910 = vrot.lane.b32.xlu0 %v7331_v17, %s5387_s15  ;;  %2310 = vrot.lane.b32.xlu1 %v7331_v17, %s5394_s28 }
 0x25c   :  { %v1778_v24 = vpop.f32.mrb[14].mxu0 }
 0x25d   :  { %v1779_v27 = vpop.f32.mrb[15].mxu0  ;;  %v7417_v24 = vmax.f32 %v1693_v1, 0.0 }
 0x25f   :  { %1850 = vrot.lane.b32.xlu0 %v7355_v62, %s5388_s16  ;;  %2122 = vrot.lane.b32.xlu1 %v7355_v62, %s5391_s25  ;;  %9563 = vst [vmem:[#allocation135_spill] sm:$0xff] %v7417_v24 }
 0x263   :  { %1914 = vrot.lane.b32.xlu0 %v7355_v62, %s5387_s15  ;;  %2186 = vrot.lane.b32.xlu1 %v7355_v62, %s5392_s26 }
 0x267   :  { %1974 = vrot.lane.b32.xlu0 %v7331_v17, %s5389_s21  ;;  %2250 = vrot.lane.b32.xlu1 %v7355_v62, %s5393_s27 }
 0x26b   :  { %2038 = vrot.lane.b32.xlu0 %v7331_v17, %s5390_s22  ;;  %1848 = vrot.lane.b32.xlu1 %v7370_v10, %s5388_s16 }
 0x26f   :  { %1978 = vrot.lane.b32.xlu0 %v7355_v62, %s5389_s21  ;;  %1912 = vrot.lane.b32.xlu1 %v7370_v10, %s5387_s15 }
 0x273   :  { %2042 = vrot.lane.b32.xlu0 %v7355_v62, %s5390_s22  ;;  %1852 = vrot.lane.b32.xlu1 %v7382_v40, %s5388_s16 }
 0x277   :  { %2120 = vrot.lane.b32.xlu0 %v7370_v10, %s5391_s25  ;;  %1916 = vrot.lane.b32.xlu1 %v7382_v40, %s5387_s15 }
 0x27b   :  { %2124 = vrot.lane.b32.xlu0 %v7382_v40, %s5391_s25  ;;  %1976 = vrot.lane.b32.xlu1 %v7370_v10, %s5389_s21 }
 0x27f   :  { %2184 = vrot.lane.b32.xlu0 %v7370_v10, %s5392_s26  ;;  %2040 = vrot.lane.b32.xlu1 %v7370_v10, %s5390_s22 }
 0x283   :  { %2248 = vrot.lane.b32.xlu0 %v7370_v10, %s5393_s27  ;;  %1980 = vrot.lane.b32.xlu1 %v7382_v40, %s5389_s21 }
 0x285   :  { %v7404_v7 = vpop.permute.xlu0 %1902  ;;  %v7406_v56 = vpop.permute.xlu1 %1838 }
 0x287   :  { %2188 = vrot.lane.b32.xlu0 %v7382_v40, %s5392_s26  ;;  %2044 = vrot.lane.b32.xlu1 %v7382_v40, %s5390_s22 }
 0x289   :  { %v1843_v15 = vpop.permute.xlu0 %1842  ;;  %v1907_v22 = vpop.permute.xlu1 %1906 }
 0x28b   :  { %2252 = vrot.lane.b32.xlu0 %v7382_v40, %s5393_s27  ;;  %2314 = vrot.lane.b32.xlu1 %v7355_v62, %s5394_s28 }
 0x28d   :  { %v7419_v27 = vpop.permute.xlu0 %1966  ;;  %v7421_v2 = vpop.permute.xlu1 %2034 }
 0x28f   :  { %2312 = vrot.lane.b32.xlu0 %v7370_v10, %s5394_s28  ;;  %2126 = vrot.lane.b32.xlu1 %v7417_v24, %s5391_s25 }
 0x291   :  { %v7427_v28 = vpop.permute.xlu0 %2030  ;;  %v7429_v19 = vpop.permute.xlu1 %2114 }
 0x293   :  { %2316 = vrot.lane.b32.xlu0 %v7382_v40, %s5394_s28  ;;  %2190 = vrot.lane.b32.xlu1 %v7417_v24, %s5392_s26 }
 0x295   :  { %v7435_v1 = vpop.permute.xlu0 %1970  ;;  %v7437_v53 = vpop.permute.xlu1 %2174 }
 0x296   :  { %9564 = vst [vmem:[#allocation136_spill] sm:$0xff] %v7437_v53 }
 0x297   :  { %1854 = vrot.lane.b32.xlu0 %v7417_v24, %s5388_s16  ;;  %2254 = vrot.lane.b32.xlu1 %v7417_v24, %s5393_s27 }
 0x299   :  { %v7445_v18 = vpop.permute.xlu0 %2110  ;;  %v7447_v12 = vpop.permute.xlu1 %2302 }
 0x29a   :  { %9565 = vst [vmem:[#allocation137_spill] sm:$0xff] %v7445_v18  ;;  %9566 = vst [vmem:[#allocation138_spill] sm:$0xff] %v7447_v12 }
 0x29b   :  { %1918 = vrot.lane.b32.xlu0 %v7417_v24, %s5387_s15  ;;  %2318 = vrot.lane.b32.xlu1 %v7417_v24, %s5394_s28 }
 0x29d   :  { %v7457_v54 = vpop.permute.xlu0 %2178  ;;  %v7459_v37 = vpop.permute.xlu1 %2306 }
 0x29e   :  { %9568 = vst [vmem:[#allocation140_spill] sm:$0xff] %v7457_v54  ;;  %9569 = vst [vmem:[#allocation141_spill] sm:$0xff] %v7459_v37 }
 0x29f   :  { %1858 = vrot.lane.b32.xlu0 %v7461_v9, %s5388_s16  ;;  %1856 = vrot.lane.b32.xlu1 %v7455_v39, %s5388_s16 }
 0x2a1   :  { %v7469_v43 = vpop.permute.xlu0 %2242  ;;  %v1841_v4 = vpop.permute.xlu1 %1840 }
 0x2a2   :  { %v1884_v26 = vsel %vm86_vm1, %v7406_v56, %v1841_v4  ;;  %v1883_v29 = vsel %vm86_vm1, %v1841_v4, %v1843_v15 }
 0x2a3   :  { %1922 = vrot.lane.b32.xlu0 %v7461_v9, %s5387_s15  ;;  %1920 = vrot.lane.b32.xlu1 %v7455_v39, %s5387_s15  ;;  %v1887_v35 = vmul.f32 %v1884_v26, %v9573_v21  ;;  %v9575_v26 = vld [vmem:[#allocation5_spill] sm:$0xff] }
 0x2a5   :  { %v7482_v16 = vpop.permute.xlu0 %2238  ;;  %v1905_v63 = vpop.permute.xlu1 %1904 }
 0x2a6   :  { %9572 = vst [vmem:[#allocation144_spill] sm:$0xff] %v7482_v16  ;;  %v1948_v3 = vsel %vm235_vm0, %v7404_v7, %v1905_v63  ;;  %v1947_v58 = vsel %vm235_vm0, %v1905_v63, %v1907_v22 }
 0x2a7   :  { %v1951_v25 = vmul.f32 %v1948_v3, %v9574_v38  ;;  %1868 = vrot.lane.b32.xlu0 %v7480_v52, %s5388_s16  ;;  %1860 = vrot.lane.b32.xlu1 %v7484_v6, %s5388_s16  ;;  %v1952_v3 = vmul.f32 %v1947_v58, %v9575_v26 }
 0x2a9   :  { %v7497_v34 = vpop.permute.xlu0 %1908  ;;  %v7499_v48 = vpop.permute.xlu1 %1844  ;;  %v2367_v23 = vpack.c.bf16 %v1951_v25, %v1887_v35  ;;  %v9578_v25 = vld [vmem:[#allocation4_spill] sm:$0xff] }
 0x2aa   :  { %v1946_v38 = vsel %vm235_vm0, %v1907_v22, %v7497_v34  ;;  %v1882_v21 = vsel %vm86_vm1, %v1843_v15, %v7499_v48  ;;  %v1888_v35 = vmul.f32 %v1883_v29, %v9578_v25 }
 0x2ab   :  { %v1953_v63 = vmul.f32 %v1946_v38, %v9576_v42  ;;  %v1889_v60 = vmul.f32 %v1882_v21, %v9577_v32  ;;  %1996 = vrot.lane.b32.xlu0 %v7480_v52, %s5389_s21  ;;  %1924 = vrot.lane.b32.xlu1 %v7484_v6, %s5387_s15  ;;  %v9579_v38 = vld [vmem:[#allocation8_spill] sm:$0xff] }
 0x2ac   :  { %2504 = vmatprep.subr.bf16.mxu0 %v2367_v23  ;;  %v2368_v10 = vpack.c.bf16 %v1952_v3, %v1888_v35  ;;  %v9580_v3 = vld [vmem:[#allocation7_spill] sm:$0xff]  ;;  %v9582_v35 = vld [vmem:[#allocation9_spill] sm:$0xff] }
 0x2ad   :  { %v7517_v4 = vpop.permute.xlu0 %2036  ;;  %v7519_v22 = vpop.permute.xlu1 %1968  ;;  %v2369_v15 = vpack.c.bf16 %v1953_v63, %v1889_v60  ;;  %v9581_v63 = vld [vmem:[#allocation6_spill] sm:$0xff] }
 0x2ae   :  { %v2074_v23 = vsel %vm535_vm3, %v7421_v2, %v7517_v4  ;;  %v2011_v60 = vsel %vm385_vm2, %v7519_v22, %v7435_v1 }
 0x2af   :  { %1982 = vrot.lane.b32.xlu0 %v7417_v24, %s5389_s21  ;;  %1932 = vrot.lane.b32.xlu1 %v7480_v52, %s5387_s15 }
 0x2b0   :  { %2545 = vmatprep.subr.bf16.mxu1 %v2369_v15  ;;  %v2016_v15 = vmul.f32 %v2011_v60, %v9582_v35  ;;  %v9587_v35 = vld [vmem:[#allocation10_spill] sm:$0xff] }
 0x2b1   :  { %2546 = vmatpush1.bf16.msra.mxu1 %v2368_v10  ;;  %v7525_v42 = vpop.permute.xlu0 %2112  ;;  %v7527_v32 = vpop.permute.xlu1 %2032 }
 0x2b2   :  { %v2075_v29 = vsel %vm535_vm3, %v7527_v32, %v7421_v2  ;;  %v2081_v2 = vmul.f32 %v2074_v23, %v9580_v3  ;;  %v9585_v3 = vld [vmem:[#allocation13_spill] sm:$0xff] }
 0x2b3   :  { %2046 = vrot.lane.b32.xlu0 %v7417_v24, %s5390_s22  ;;  %2060 = vrot.lane.b32.xlu1 %v7480_v52, %s5390_s22  ;;  %v2080_v21 = vmul.f32 %v2075_v29, %v9579_v38 }
 0x2b5   :  { %v2181_v10 = vpop.permute.xlu0 %2180  ;;  %v7545_v58 = vpop.permute.xlu1 %1972  ;;  %v2384_v53 = vpack.c.bf16 %v2080_v21, %v2016_v15  ;;  %v2097_v15 = vmul.f32 %v7302_v46, %v9587_v35  ;;  %v9590_v35 = vld [vmem:[#allocation20_spill] sm:$0xff] }
 0x2b6   :  { %v2010_v26 = vsel %vm385_vm2, %v7435_v1, %v7545_v58 }
 0x2b7   :  { %v2017_v25 = vmul.f32 %v2010_v26, %v9581_v63  ;;  %1986 = vrot.lane.b32.xlu0 %v7461_v9, %s5389_s21  ;;  %1984 = vrot.lane.b32.xlu1 %v7455_v39, %s5389_s21  ;;  %v9586_v63 = vld [vmem:[#allocation11_spill] sm:$0xff] }
 0x2b9   :  { %v7559_v24 = vpop.permute.xlu0 %2304  ;;  %v2117_v29 = vpop.permute.xlu1 %2116  ;;  %v2385_v38 = vpack.c.bf16 %v2081_v2, %v2017_v25 }
 0x2ba   :  { %9583 = vst [vmem:[#allocation69_spill] sm:$0xff] %v7559_v24  ;;  %v2154_v60 = vsel %vm786_vm4, %v7429_v19, %v2117_v29 }
 0x2bb   :  { %2050 = vrot.lane.b32.xlu0 %v7461_v9, %s5390_s22  ;;  %2547 = vmatprep.subr.bf16.mxu1 %v2385_v38  ;;  %v2160_v2 = vmul.f32 %v2154_v60, %v9585_v3  ;;  %v9588_v38 = vld [vmem:[#allocation12_spill] sm:$0xff] }
 0x2bc   :  { %2048 = vrot.lane.b32.xlu1 %v7455_v39, %s5390_s22  ;;  %2548 = vmatpush1.bf16.msra.mxu1 %v2384_v53  ;;  %v2096_v12 = vmul.f32 %v7260_v49, %v9588_v38  ;;  %v9591_v38 = vld [vmem:[#allocation18_spill] sm:$0xff] }
 0x2bd   :  { %v2309_v1 = vpop.permute.xlu0 %2308  ;;  %v7565_v23 = vpop.permute.xlu1 %2176 }
 0x2be   :  { %9584 = vst [vmem:[#allocation68_spill] sm:$0xff] %v7565_v23  ;;  %v9594_v23 = vld [vmem:[#allocation17_spill] sm:$0xff] }
 0x2bf   :  { %2128 = vrot.lane.b32.xlu0 %v7455_v39, %s5391_s25 }
 0x2c0   :  { %1988 = vrot.lane.b32.xlu1 %v7484_v6, %s5389_s21 }
 0x2c1   :  { %v7574_v21 = vpop.permute.xlu0 %2118  ;;  %v7576_v26 = vpop.permute.xlu1 %2240 }
 0x2c2   :  { %v2153_v53 = vsel %vm786_vm4, %v2117_v29, %v7574_v21  ;;  %v1775_v29 = vadd.f32 %v7347_v51, %v7250_v61 }
 0x2c3   :  { %v2161_v25 = vmul.f32 %v2153_v53, %v9586_v63  ;;  %2132 = vrot.lane.b32.xlu0 %v7484_v6, %s5391_s25  ;;  %v2400_v53 = vpack.c.bf16 %v2160_v2, %v2096_v12  ;;  %v2346_v63 = vsel %vm1236_vm7, %v7459_v37, %v2309_v1  ;;  %v2218_v12 = vsel %vm936_vm5, %v7457_v54, %v2181_v10  ;;  %v9592_v37 = vld [vmem:[#allocation15_spill] sm:$0xff] }
 0x2c4   :  { %2052 = vrot.lane.b32.xlu1 %v7484_v6, %s5390_s22  ;;  %v2224_v54 = vmul.f32 %v2218_v12, %v9594_v23 }
 0x2c5   :  { %v7591_v24 = vpop.permute.xlu0 %2246  ;;  %v2245_v60 = vpop.permute.xlu1 %2244  ;;  %v2401_v3 = vpack.c.bf16 %v2161_v25, %v2097_v15  ;;  %v7613_v25 = vmax.f32 %v1775_v29, 0.0  ;;  %v2352_v15 = vmul.f32 %v2346_v63, %v9590_v35 }
 0x2c6   :  { %v2282_v46 = vsel %vm1086_vm6, %v7469_v43, %v2245_v60  ;;  %v2281_v49 = vsel %vm1086_vm6, %v2245_v60, %v7591_v24 }
 0x2c7   :  { %2192 = vrot.lane.b32.xlu0 %v7455_v39, %s5392_s26  ;;  %2549 = vmatprep.subr.bf16.mxu1 %v2401_v3  ;;  %9589 = vst [vmem:[#allocation5_spill] sm:$0xff] %v7613_v25  ;;  %v2288_v3 = vmul.f32 %v2282_v46, %v9591_v38  ;;  %v2289_v5 = vmul.f32 %v2281_v49, %v9592_v37  ;;  %v9595_v38 = vld [vmem:[#allocation19_spill] sm:$0xff] }
 0x2c8   :  { %2130 = vrot.lane.b32.xlu1 %v7461_v9, %s5391_s25  ;;  %2550 = vmatpush1.bf16.msra.mxu1 %v2400_v53  ;;  %v9593_v53 = vld [vmem:[#allocation14_spill] sm:$0xff]  ;;  %v2432_v35 = vpack.c.bf16 %v2352_v15, %v2352_v15 }
 0x2c9   :  { %v1847_v51 = vpop.permute.xlu0 %1846  ;;  %v7611_v2 = vpop.permute.xlu1 %2182  ;;  %v2416_v37 = vpack.c.bf16 %v2288_v3, %v2224_v54 }
 0x2ca   :  { %v2217_v60 = vsel %vm936_vm5, %v2181_v10, %v7611_v2  ;;  %v1881_v29 = vsel %vm86_vm1, %v7499_v48, %v1847_v51 }
 0x2cb   :  { %v2225_v16 = vmul.f32 %v2217_v60, %v9593_v53  ;;  %2256 = vrot.lane.b32.xlu0 %v7455_v39, %s5393_s27  ;;  %v7639_v12 = vmul.f32 %v1881_v29, %v6703_v13 }
 0x2cc   :  { %2134 = vrot.lane.b32.xlu1 %v7613_v25, %s5391_s25 }
 0x2cd   :  { %v1911_v63 = vpop.permute.xlu0 %1910  ;;  %v7630_v46 = vpop.permute.xlu1 %2310  ;;  %v2417_v10 = vpack.c.bf16 %v2289_v5, %v2225_v16  ;;  %v7662_v5 = vld [vmem:[%s9194_s4] sm:$0xf] }
 0x2ce   :  { %v1945_v49 = vsel %vm235_vm0, %v7497_v34, %v1911_v63  ;;  %v2345_v23 = vsel %vm1236_vm7, %v2309_v1, %v7630_v46 }
 0x2cf   :  { %v7642_v48 = vmul.f32 %v1945_v49, %v6722_v30  ;;  %v2353_v60 = vmul.f32 %v2345_v23, %v9595_v38  ;;  %2196 = vrot.lane.b32.xlu0 %v7484_v6, %s5392_s26  ;;  %2551 = vmatprep.subr.bf16.mxu1 %v2417_v10  ;;  %v2463_v30 = vsel %vm1445_vm8, %v2432_v35, 0 }
 0x2d0   :  { %2194 = vrot.lane.b32.xlu1 %v7461_v9, %s5392_s26  ;;  %2552 = vmatpush1.bf16.msra.mxu1 %v2416_v37 }
 0x2d1   :  { %v2433_v16 = vpack.c.bf16 %v2353_v60, %v2353_v60  ;;  %v1851_v54 = vpop.permute.xlu0 %1850  ;;  %v7651_v13 = vpop.permute.xlu1 %2122 }
 0x2d3   :  { %2260 = vrot.lane.b32.xlu0 %v7484_v6, %s5393_s27  ;;  %4805 = vmatprep.subr.msk.bf16.mxu1 %vm1445_vm8, %v2433_v16 }
 0x2d4   :  { %2258 = vrot.lane.b32.xlu1 %v7461_v9, %s5393_s27  ;;  %2554 = vmatpush1.bf16.msra.mxu1 %v2463_v30 }
 0x2d5   :  { %v1915_v1 = vpop.permute.xlu0 %1914  ;;  %v7664_v15 = vpop.permute.xlu1 %2186 }
 0x2d7   :  { %2320 = vrot.lane.b32.xlu0 %v7455_v39, %s5394_s28  ;;  %4806 = vmatmul.mubr.msk.bf16.vlgmr.msra.gmra.mrb[16].mxu1 %vm1441_vm9, %v7662_v5 }
 0x2d8   :  { %2198 = vrot.lane.b32.xlu1 %v7613_v25, %s5392_s26  ;;  %2659 = vmatprep.mubr.bf16.mxu1 %v9407_v47 }
 0x2d9   :  { %v1975_v3 = vpop.permute.xlu0 %1974  ;;  %v7673_v53 = vpop.permute.xlu1 %2250 }
 0x2da   :  { %v2009_v29 = vsel %vm385_vm2, %v7545_v58, %v1975_v3  ;;  %v1816_v58 = vadd.f32 %v7278_v33, %v7250_v61 }
 0x2db   :  { %2324 = vrot.lane.b32.xlu0 %v7484_v6, %s5394_s28  ;;  %v7688_v23 = vmul.f32 %v2009_v29, %v6785_v57  ;;  %v1777_v57 = vadd.f32 %v7349_v0, %v7250_v61  ;;  %v9599_v61 = vld [vmem:[#allocation23_spill] sm:$0xff] }
 0x2dc   :  { %2262 = vrot.lane.b32.xlu1 %v7613_v25, %s5393_s27  ;;  %v7717_v33 = vmax.f32 %v1816_v58, 0.0 }
 0x2dd   :  { %v2039_v10 = vpop.permute.xlu0 %2038  ;;  %v1849_v35 = vpop.permute.xlu1 %1848  ;;  %v7723_v0 = vmax.f32 %v1777_v57, 0.0  ;;  %v9598_v57 = vld [vmem:[#allocation26_spill] sm:$0xff] }
 0x2de   :  { %v2073_v37 = vsel %vm535_vm3, %v7517_v4, %v2039_v10  ;;  %v1880_v49 = vsel %vm86_vm1, %v1847_v51, %v1849_v35  ;;  %9596 = vst [vmem:[#allocation3_spill] sm:$0xff] %v7717_v33 }
 0x2df   :  { %v7691_v38 = vmul.f32 %v2073_v37, %v6775_v50  ;;  %1862 = vrot.lane.b32.xlu0 %v7613_v25, %s5388_s16  ;;  %v7708_v16 = vmul.f32 %v1880_v49, %v6708_v45  ;;  %9597 = vst [vmem:[#allocation2_spill] sm:$0xff] %v7723_v0 }
 0x2e0   :  { %2322 = vrot.lane.b32.xlu1 %v7461_v9, %s5394_s28  ;;  %v9601_v9 = vld [vmem:[#allocation27_spill] sm:$0xff] }
 0x2e1   :  { %v7701_v60 = vpop.permute.xlu0 %1978  ;;  %v1913_v51 = vpop.permute.xlu1 %1912 }
 0x2e2   :  { %v1944_v50 = vsel %vm235_vm0, %v1911_v63, %v1913_v51  ;;  %v1943_v45 = vsel %vm235_vm0, %v1913_v51, %v1915_v1  ;;  %v1879_v63 = vsel %vm86_vm1, %v1849_v35, %v1851_v54  ;;  %v7753_v35 = vmul.f32 %v7331_v17, %v6838_v31 }
 0x2e3   :  { %v7711_v30 = vmul.f32 %v1944_v50, %v6730_v59  ;;  %1926 = vrot.lane.b32.xlu0 %v7613_v25, %s5387_s15  ;;  %v1956_v50 = vmul.f32 %v1943_v45, %v9598_v57  ;;  %v9600_v57 = vld [vmem:[#allocation24_spill] sm:$0xff] }
 0x2e4   :  { %2326 = vrot.lane.b32.xlu1 %v7613_v25, %s5394_s28 }
 0x2e5   :  { %v2043_v29 = vpop.permute.xlu0 %2042  ;;  %v7719_v37 = vpop.permute.xlu1 %1852 }
 0x2e6   :  { %v1878_v59 = vsel %vm86_vm1, %v1851_v54, %v7719_v37 }
 0x2e7   :  { %1866 = vrot.lane.b32.xlu0 %v7717_v33, %s5388_s16  ;;  %v1893_v54 = vmul.f32 %v1878_v59, %v9599_v61 }
 0x2e8   :  { %1864 = vrot.lane.b32.xlu1 %v7723_v0, %s5388_s16 }
 0x2e9   :  { %v2121_v49 = vpop.permute.xlu0 %2120  ;;  %v7736_v58 = vpop.permute.xlu1 %1916 }
 0x2ea   :  { %v7742_v51 = vsel %vm786_vm4, %v2121_v49, %v7651_v13  ;;  %v2152_v4 = vsel %vm786_vm4, %v7574_v21, %v2121_v49  ;;  %v1942_v34 = vsel %vm235_vm0, %v1915_v1, %v7736_v58  ;;  %v1892_v21 = vmul.f32 %v1879_v63, %v9601_v9  ;;  %v9602_v49 = vld [vmem:[#allocation112_spill] sm:$0xff] }
 0x2eb   :  { %v7756_v45 = vmul.f32 %v2152_v4, %v6863_v41  ;;  %v1957_v39 = vmul.f32 %v1942_v34, %v9600_v57  ;;  %1990 = vrot.lane.b32.xlu0 %v7613_v25, %s5389_s21 }
 0x2ec   :  { %1928 = vrot.lane.b32.xlu1 %v7723_v0, %s5387_s15  ;;  %v2372_v17 = vpack.c.bf16 %v1956_v50, %v1892_v21 }
 0x2ed   :  { %v2125_v61 = vpop.permute.xlu0 %2124  ;;  %v1977_v59 = vpop.permute.xlu1 %1976  ;;  %v2373_v31 = vpack.c.bf16 %v1957_v39, %v1893_v54 }
 0x2ee   :  { %v2008_v41 = vsel %vm385_vm2, %v1975_v3, %v1977_v59 }
 0x2ef   :  { %2054 = vrot.lane.b32.xlu0 %v7613_v25, %s5390_s22  ;;  %2627 = vmatprep.subr.bf16.mxu1 %v2373_v31  ;;  %v7781_v63 = vmul.f32 %v2008_v41, %v6788_v11  ;;  %v9603_v31 = vld [vmem:[#allocation118_spill] sm:$0xff] }
 0x2f0   :  { %1930 = vrot.lane.b32.xlu1 %v7717_v33, %s5387_s15  ;;  %2628 = vmatpush1.bf16.msra.mxu1 %v2372_v17 }
 0x2f1   :  { %v2185_v9 = vpop.permute.xlu0 %2184  ;;  %v2041_v34 = vpop.permute.xlu1 %2040 }
 0x2f2   :  { %v2215_v4 = vsel %vm936_vm5, %v2185_v9, %v7664_v15  ;;  %v2216_v39 = vsel %vm936_vm5, %v7611_v2, %v2185_v9  ;;  %v2072_v3 = vsel %vm535_vm3, %v2039_v10, %v2041_v34  ;;  %v2071_v10 = vsel %vm535_vm3, %v2041_v34, %v2043_v29  ;;  %v9616_v2 = vld [vmem:[#allocation41_spill] sm:$0xff] }
 0x2f3   :  { %v7784_v50 = vmul.f32 %v2072_v3, %v9602_v49  ;;  %1994 = vrot.lane.b32.xlu0 %v7717_v33, %s5389_s21  ;;  %v7803_v17 = vmul.f32 %v2216_v39, %v9603_v31  ;;  %v7806_v41 = vmul.f32 %v2215_v4, %v6869_v20  ;;  %v2007_v20 = vsel %vm385_vm2, %v1977_v59, %v7701_v60  ;;  %v9604_v39 = vld [vmem:[#allocation32_spill] sm:$0xff]  ;;  %v9606_v31 = vld [vmem:[#allocation30_spill] sm:$0xff] }
 0x2f4   :  { %1992 = vrot.lane.b32.xlu1 %v7723_v0, %s5389_s21  ;;  %v2084_v49 = vmul.f32 %v2071_v10, %v9604_v39 }
 0x2f5   :  { %v2249_v54 = vpop.permute.xlu0 %2248  ;;  %v7790_v57 = vpop.permute.xlu1 %1980 }
 0x2f6   :  { %v2279_v11 = vsel %vm1086_vm6, %v2249_v54, %v7673_v53  ;;  %v2280_v21 = vsel %vm1086_vm6, %v7591_v24, %v2249_v54  ;;  %v2006_v24 = vsel %vm385_vm2, %v7701_v60, %v7790_v57  ;;  %v9607_v60 = vld [vmem:[#allocation33_spill] sm:$0xff] }
 0x2f7   :  { %v7809_v9 = vmul.f32 %v2280_v21, %v6902_v55  ;;  %v7812_v3 = vmul.f32 %v2279_v11, %v6905_v8  ;;  %2136 = vrot.lane.b32.xlu0 %v7723_v0, %s5391_s25  ;;  %v9605_v11 = vld [vmem:[#allocation29_spill] sm:$0xff]  ;;  %v2020_v59 = vmul.f32 %v2007_v20, %v9607_v60 }
 0x2f8   :  { %2056 = vrot.lane.b32.xlu1 %v7723_v0, %s5390_s22  ;;  %v2021_v21 = vmul.f32 %v2006_v24, %v9605_v11 }
 0x2f9   :  { %v2189_v8 = vpop.permute.xlu0 %2188  ;;  %v7827_v34 = vpop.permute.xlu1 %2044  ;;  %v2388_v39 = vpack.c.bf16 %v2084_v49, %v2020_v59  ;;  %v9610_v49 = vld [vmem:[#allocation35_spill] sm:$0xff]  ;;  %v9612_v59 = vld [vmem:[#allocation37_spill] sm:$0xff] }
 0x2fa   :  { %v2070_v54 = vsel %vm535_vm3, %v2043_v29, %v7827_v34  ;;  %v2150_v29 = vsel %vm786_vm4, %v7651_v13, %v2125_v61 }
 0x2fb   :  { %v2085_v1 = vmul.f32 %v2070_v54, %v9606_v31  ;;  %2140 = vrot.lane.b32.xlu0 %v7480_v52, %s5391_s25  ;;  %v9609_v54 = vld [vmem:[#allocation38_spill] sm:$0xff] }
 0x2fc   :  { %2058 = vrot.lane.b32.xlu1 %v7717_v33, %s5390_s22  ;;  %v2164_v11 = vmul.f32 %v2150_v29, %v9609_v54  ;;  %v9611_v31 = vld [vmem:[#allocation34_spill] sm:$0xff] }
 0x2fd   :  { %v2253_v55 = vpop.permute.xlu0 %2252  ;;  %v7842_v4 = vpop.permute.xlu1 %2314  ;;  %v2389_v10 = vpack.c.bf16 %v2085_v1, %v2021_v21  ;;  %v2101_v60 = vmul.f32 %v7382_v40, %v9611_v31  ;;  %v2214_v40 = vsel %vm936_vm5, %v7664_v15, %v2189_v8  ;;  %v9614_v31 = vld [vmem:[#allocation48_spill] sm:$0xff] }
 0x2fe   :  { %v9617_v15 = vld [vmem:[#allocation44_spill] sm:$0xff] }
 0x2ff   :  { %2202 = vrot.lane.b32.xlu0 %v7717_v33, %s5392_s26  ;;  %2629 = vmatprep.subr.bf16.mxu1 %v2389_v10  ;;  %v2100_v10 = vmul.f32 %v7355_v62, %v9612_v59 }
 0x300   :  { %2138 = vrot.lane.b32.xlu1 %v7717_v33, %s5391_s25  ;;  %2630 = vmatpush1.bf16.msra.mxu1 %v2388_v39 }
 0x301   :  { %v7851_v24 = vpop.permute.xlu0 %2312  ;;  %v7853_v20 = vpop.permute.xlu1 %2126  ;;  %v2404_v54 = vpack.c.bf16 %v2164_v11, %v2100_v10  ;;  %v9615_v10 = vld [vmem:[#allocation40_spill] sm:$0xff] }
 0x302   :  { %9608 = vst [vmem:[#allocation4_spill] sm:$0xff] %v7853_v20  ;;  %v7860_v1 = vsel %vm1236_vm7, %v7630_v46, %v7851_v24  ;;  %v2149_v13 = vsel %vm786_vm4, %v2125_v61, %v7853_v20  ;;  %v2278_v61 = vsel %vm1086_vm6, %v7673_v53, %v2253_v55 }
 0x303   :  { %v2165_v21 = vmul.f32 %v2149_v13, %v9610_v49  ;;  %2266 = vrot.lane.b32.xlu0 %v7717_v33, %s5393_s27  ;;  %v9613_v49 = vld [vmem:[#allocation45_spill] sm:$0xff] }
 0x304   :  { %2200 = vrot.lane.b32.xlu1 %v7723_v0, %s5392_s26 }
 0x305   :  { %v2317_v46 = vpop.permute.xlu0 %2316  ;;  %v7874_v39 = vpop.permute.xlu1 %2190  ;;  %v2405_v29 = vpack.c.bf16 %v2165_v21, %v2101_v60  ;;  %v2292_v21 = vmul.f32 %v2278_v61, %v9613_v49 }
 0x306   :  { %v2342_v13 = vsel %vm1236_vm7, %v7842_v4, %v2317_v46  ;;  %v2213_v62 = vsel %vm936_vm5, %v2189_v8, %v7874_v39  ;;  %v2228_v8 = vmul.f32 %v2214_v40, %v9617_v15  ;;  %v9619_v15 = vld [vmem:[#allocation46_spill] sm:$0xff] }
 0x307   :  { %2268 = vrot.lane.b32.xlu0 %v7480_v52, %s5393_s27  ;;  %2631 = vmatprep.subr.bf16.mxu1 %v2405_v29  ;;  %v2356_v60 = vmul.f32 %v2342_v13, %v9614_v31  ;;  %v2229_v29 = vmul.f32 %v2213_v62, %v9615_v10 }
 0x308   :  { %2264 = vrot.lane.b32.xlu1 %v7723_v0, %s5393_s27  ;;  %2632 = vmatpush1.bf16.msra.mxu1 %v2404_v54  ;;  %v2420_v49 = vpack.c.bf16 %v2292_v21, %v2228_v8 }
 0x309   :  { %v7892_v53 = vpop.permute.xlu0 %1854  ;;  %v7894_v11 = vpop.permute.xlu1 %2254  ;;  %v2436_v31 = vpack.c.bf16 %v2356_v60, %v2356_v60 }
 0x30a   :  { %v2277_v59 = vsel %vm1086_vm6, %v2253_v55, %v7894_v11  ;;  %v1877_v61 = vsel %vm86_vm1, %v7719_v37, %v7892_v53  ;;  %v2447_v55 = vld [vmem:[%s9195_s5] sm:$0xff] }
 0x30b   :  { %v2293_v54 = vmul.f32 %v2277_v59, %v9616_v2  ;;  %2330 = vrot.lane.b32.xlu0 %v7717_v33, %s5394_s28  ;;  %v9618_v59 = vld [vmem:[#allocation21_spill] sm:$0xff] }
 0x30c   :  { %2204 = vrot.lane.b32.xlu1 %v7480_v52, %s5392_s26  ;;  %v7927_v10 = vmul.f32 %v1877_v61, %v9618_v59  ;;  %v9620_v33 = vld [vmem:[#allocation49_spill] sm:$0xff] }
 0x30d   :  { %v7915_v13 = vpop.permute.xlu0 %1918  ;;  %v7917_v2 = vpop.permute.xlu1 %2318  ;;  %v2421_v62 = vpack.c.bf16 %v2293_v54, %v2229_v29  ;;  %v2475_v29 = vsel %vm1445_vm8, %v2436_v31, 0 }
 0x30e   :  { %v1941_v40 = vsel %vm235_vm0, %v7736_v58, %v7915_v13  ;;  %v2341_v37 = vsel %vm1236_vm7, %v2317_v46, %v7917_v2  ;;  %v9627_v58 = vld [vmem:[#allocation53_spill] sm:$0xff] }
 0x30f   :  { %v7930_v25 = vmul.f32 %v1941_v40, %v9619_v15  ;;  %v2357_v20 = vmul.f32 %v2341_v37, %v9620_v33  ;;  %2450 = vperm.xlu0 %5234, %v2447_v55   ;;  %2633 = vmatprep.subr.bf16.mxu1 %v2421_v62  ;;  %v9625_v40 = vld [vmem:[#allocation55_spill] sm:$0xff]  ;;  %v2076_v15 = vsel %vm535_vm3, %v7427_v28, %v7527_v32 }
 0x310   :  { %2328 = vrot.lane.b32.xlu1 %v7723_v0, %s5394_s28  ;;  %2634 = vmatpush1.bf16.msra.mxu1 %v2420_v49 }
 0x311   :  { %v2437_v21 = vpack.c.bf16 %v2357_v20, %v2357_v20  ;;  %v1859_v60 = vpop.permute.xlu0 %1858  ;;  %v7937_v46 = vpop.permute.xlu1 %1856 }
 0x312   :  { %v1875_v62 = vsel %vm86_vm1, %v7937_v46, %v1859_v60 }
 0x313   :  { %4809 = vmatprep.subr.msk.bf16.mxu1 %vm1445_vm8, %v2437_v21  ;;  %v9626_v21 = vld [vmem:[#allocation52_spill] sm:$0xff] }
 0x314   :  { %2332 = vrot.lane.b32.xlu1 %v7480_v52, %s5394_s28  ;;  %2636 = vmatpush1.bf16.msra.mxu1 %v2475_v29 }
 0x315   :  { %v1923_v33 = vpop.permute.xlu0 %1922  ;;  %v7943_v54 = vpop.permute.xlu1 %1920 }
 0x316   :  { %v1939_v61 = vsel %vm235_vm0, %v7943_v54, %v1923_v33 }
 0x317   :  { %4810 = vmatmul.mubr.msk.bf16.vlgmr.msra.gmra.mrb[20].mxu1 %vm1441_vm9, %v7662_v5  ;;  %v1960_v37 = vmul.f32 %v1939_v61, %v9625_v40 }
 0x318   :  { %2741 = vmatprep.mubr.bf16.mxu1 %v9407_v47 }
 0x319   :  { %v7948_v20 = vpop.permute.xlu0 %1868  ;;  %v7950_v8 = vpop.permute.xlu1 %1860 }
 0x31a   :  { %9621 = vst [vmem:[#allocation8_spill] sm:$0xff] %v7948_v20  ;;  %9622 = vst [vmem:[#allocation7_spill] sm:$0xff] %v7950_v8  ;;  %v1874_v55 = vsel %vm86_vm1, %v1859_v60, %v7950_v8  ;;  %v9628_v60 = vld [vmem:[#allocation56_spill] sm:$0xff]  ;;  %v1885_v61 = vsel %vm86_vm1, %v7948_v20, %v7406_v56  ;;  %v9632_v8 = vld [vmem:[#allocation79_spill] sm:$0xff] }
 0x31b   :  { %v1897_v29 = vmul.f32 %v1874_v55, %v9626_v21  ;;  %v1896_v52 = vmul.f32 %v1875_v62, %v9628_v60  ;;  %v9629_v55 = vld [vmem:[#allocation80_spill] sm:$0xff]  ;;  %v9631_v60 = vld [vmem:[#allocation74_spill] sm:$0xff] }
 0x31c   :  { %v2079_v21 = vmul.f32 %v2076_v15, %v9629_v55  ;;  %v9636_v55 = vld [vmem:[#allocation84_spill] sm:$0xff] }
 0x31d   :  { %v7961_v49 = vpop.permute.xlu0 %1996  ;;  %v7963_v31 = vpop.permute.xlu1 %1924 }
 0x31e   :  { %9623 = vst [vmem:[#allocation6_spill] sm:$0xff] %v7961_v49  ;;  %9624 = vst [vmem:[#allocation9_spill] sm:$0xff] %v7963_v31  ;;  %v1938_v59 = vsel %vm235_vm0, %v1923_v33, %v7963_v31  ;;  %v2012_v33 = vsel %vm385_vm2, %v7419_v27, %v7519_v22 }
 0x31f   :  { %v1961_v0 = vmul.f32 %v1938_v59, %v9627_v58  ;;  %v2376_v58 = vpack.c.bf16 %v1960_v37, %v1896_v52  ;;  %v9630_v59 = vld [vmem:[#allocation73_spill] sm:$0xff]  ;;  %v2015_v22 = vmul.f32 %v2012_v33, %v9632_v8  ;;  %v2156_v8 = vsel %vm786_vm4, %v7445_v18, %v7525_v42 }
 0x320   :  { %v1886_v56 = vmul.f32 %v1885_v61, %v9630_v59  ;;  %v9634_v61 = vld [vmem:[#allocation91_spill] sm:$0xff] }
 0x321   :  { %v7984_v40 = vpop.permute.xlu0 %1982  ;;  %v7986_v31 = vpop.permute.xlu1 %1932  ;;  %v2377_v32 = vpack.c.bf16 %v1961_v0, %v1897_v29  ;;  %v2155_v0 = vsel %vm786_vm4, %v7525_v42, %v7429_v19  ;;  %v2383_v29 = vpack.c.bf16 %v2079_v21, %v2015_v22  ;;  %v9639_v22 = vld [vmem:[#allocation90_spill] sm:$0xff] }
 0x322   :  { %v1949_v62 = vsel %vm235_vm0, %v7986_v31, %v7404_v7  ;;  %v2005_v52 = vsel %vm385_vm2, %v7790_v57, %v7984_v40  ;;  %v2013_v7 = vsel %vm385_vm2, %v7961_v49, %v7419_v27  ;;  %v2159_v33 = vmul.f32 %v2155_v0, %v9634_v61  ;;  %v9640_v0 = vld [vmem:[#allocation140_spill] sm:$0xff] }
 0x323   :  { %v1950_v20 = vmul.f32 %v1949_v62, %v9631_v60  ;;  %2709 = vmatprep.subr.bf16.mxu1 %v2377_v32  ;;  %v8022_v27 = vmul.f32 %v2005_v52, %v6978_v36  ;;  %v2014_v21 = vmul.f32 %v2013_v7, %v9636_v55  ;;  %v9641_v52 = vld [vmem:[#allocation68_spill] sm:$0xff]  ;;  %v9644_v55 = vld [vmem:[#allocation89_spill] sm:$0xff] }
 0x324   :  { %2710 = vmatpush1.bf16.msra.mxu1 %v2376_v58  ;;  %v9637_v58 = vld [vmem:[#allocation85_spill] sm:$0xff]  ;;  %v9642_v7 = vld [vmem:[#allocation144_spill] sm:$0xff] }
 0x325   :  { %v2366_v37 = vpack.c.bf16 %v1950_v20, %v1886_v56  ;;  %v8008_v15 = vpop.permute.xlu0 %2046  ;;  %v8018_v57 = vpop.permute.xlu1 %2060  ;;  %v9635_v20 = vld [vmem:[#allocation57_spill] sm:$0xff]  ;;  %v9638_v56 = vld [vmem:[#allocation88_spill] sm:$0xff] }
 0x326   :  { %v2069_v19 = vsel %vm535_vm3, %v7827_v34, %v8008_v15  ;;  %9633 = vst [vmem:[#allocation13_spill] sm:$0xff] %v8018_v57  ;;  %v2077_v42 = vsel %vm535_vm3, %v8018_v57, %v7427_v28  ;;  %v2283_v34 = vsel %vm1086_vm6, %v7576_v26, %v7469_v43  ;;  %v2095_v60 = vmul.f32 %v7291_v44, %v9638_v56  ;;  %v9643_v61 = vld [vmem:[#allocation96_spill] sm:$0xff]  ;;  %v9645_v44 = vld [vmem:[#allocation75_spill] sm:$0xff]  ;;  %v9647_v56 = vld [vmem:[#allocation69_spill] sm:$0xff] }
 0x327   :  { %v8025_v32 = vmul.f32 %v2069_v19, %v9635_v20  ;;  %2505 = vmatpush1.bf16.msra.mxu0 %v2366_v37  ;;  %v2078_v62 = vmul.f32 %v2077_v42, %v9637_v58  ;;  %v2158_v28 = vmul.f32 %v2156_v8, %v9639_v22  ;;  %v2219_v37 = vsel %vm936_vm5, %v9641_v52, %v9640_v0  ;;  %v9646_v8 = vld [vmem:[#allocation141_spill] sm:$0xff]  ;;  %v9649_v0 = vld [vmem:[#allocation136_spill] sm:$0xff] }
 0x328   :  { %2506 = vmatprep.subr.bf16.mxu0 %v2383_v29  ;;  %v2284_v29 = vsel %vm1086_vm6, %v9642_v7, %v7576_v26  ;;  %v2287_v20 = vmul.f32 %v2283_v34, %v9643_v61  ;;  %v2399_v42 = vpack.c.bf16 %v2159_v33, %v2095_v60  ;;  %v2094_v58 = vmul.f32 %v9645_v44, %v9644_v55  ;;  %v9650_v33 = vld [vmem:[#allocation97_spill] sm:$0xff]  ;;  %v9651_v55 = vld [vmem:[#allocation98_spill] sm:$0xff]  ;;  %v9653_v57 = vld [vmem:[#allocation104_spill] sm:$0xff] }
 0x329   :  { %v1987_v59 = vpop.permute.xlu0 %1986  ;;  %v2382_v43 = vpack.c.bf16 %v2078_v62, %v2014_v21  ;;  %v8046_v19 = vpop.permute.xlu1 %1984  ;;  %v2347_v22 = vsel %vm1236_vm7, %v9647_v56, %v9646_v8  ;;  %v9648_v21 = vld [vmem:[#allocation138_spill] sm:$0xff]  ;;  %v2220_v26 = vsel %vm936_vm5, %v9649_v0, %v9641_v52  ;;  %v2223_v34 = vmul.f32 %v2219_v37, %v9650_v33  ;;  %v9652_v8 = vld [vmem:[#allocation105_spill] sm:$0xff] }
 0x32a   :  { %v2348_v62 = vsel %vm1236_vm7, %v9648_v21, %v9647_v56  ;;  %v2398_v61 = vpack.c.bf16 %v2158_v28, %v2094_v58  ;;  %v2286_v44 = vmul.f32 %v2284_v29, %v9651_v55  ;;  %v2351_v18 = vmul.f32 %v2347_v22, %v9653_v57  ;;  %v9658_v55 = vld [vmem:[#allocation64_spill] sm:$0xff] }
 0x32b   :  { %2507 = vmatpush1.bf16.msra.mxu0 %v2382_v43  ;;  %v2350_v7 = vmul.f32 %v2348_v62, %v9652_v8  ;;  %v2415_v56 = vpack.c.bf16 %v2287_v20, %v2223_v34  ;;  %v9654_v43 = vld [vmem:[#allocation99_spill] sm:$0xff]  ;;  %v2003_v58 = vsel %vm385_vm2, %v8046_v19, %v1987_v59  ;;  %v9657_v34 = vld [vmem:[#allocation61_spill] sm:$0xff] }
 0x32c   :  { %2508 = vmatprep.subr.bf16.mxu0 %v2399_v42  ;;  %v2222_v21 = vmul.f32 %v2220_v26, %v9654_v43  ;;  %v2431_v28 = vpack.c.bf16 %v2351_v18, %v2351_v18  ;;  %v9656_v26 = vld [vmem:[#allocation60_spill] sm:$0xff] }
 0x32d   :  { %v2051_v60 = vpop.permute.xlu0 %2050  ;;  %v2430_v42 = vpack.c.bf16 %v2350_v7, %v2350_v7  ;;  %v9655_v7 = vld [vmem:[#allocation63_spill] sm:$0xff] }
 0x32e   :  { %v8069_v36 = vpop.permute.xlu1 %2048  ;;  %v2414_v52 = vpack.c.bf16 %v2286_v44, %v2222_v21  ;;  %v2024_v44 = vmul.f32 %v2003_v58, %v9658_v55  ;;  %v9664_v58 = vpack.c.bf16 %v7784_v50, %v7781_v63  ;;  %v2343_v50 = vsel %vm1236_vm7, %v7851_v24, %v7842_v4  ;;  %v9673_v4 = vld [vmem:[#allocation120_spill] sm:$0xff] }
 0x32f   :  { %2509 = vmatpush1.bf16.msra.mxu0 %v2398_v61  ;;  %v2067_v29 = vsel %vm535_vm3, %v8069_v36, %v2051_v60  ;;  %v2457_v62 = vsel %vm1445_vm8, %v2430_v42, 0  ;;  %v9669_v55 = vpack.c.bf16 %v7691_v38, %v7688_v23  ;;  %v2354_v24 = vmul.f32 %v7860_v1, %v9673_v4 }
 0x330   :  { %2510 = vmatprep.subr.bf16.mxu0 %v2415_v56  ;;  %v2088_v18 = vmul.f32 %v2067_v29, %v9655_v7  ;;  %v9660_v56 = vld [vmem:[#allocation119_spill] sm:$0xff]  ;;  %v9663_v29 = vld [vmem:[#allocation134_spill] sm:$0xff]  ;;  %v9675_v38 = vpack.c.bf16 %v7756_v45, %v7753_v35  ;;  %v1876_v1 = vsel %vm86_vm1, %v7892_v53, %v7937_v46  ;;  %v2068_v35 = vsel %vm535_vm3, %v8008_v15, %v8069_v36 }
 0x331   :  { %v8074_v49 = vpop.permute.xlu0 %2128  ;;  %v2163_v43 = vmul.f32 %v7742_v51, %v9660_v56  ;;  %v9662_v51 = vld [vmem:[#allocation117_spill] sm:$0xff]  ;;  %v9671_v56 = vld [vmem:[#allocation70_spill] sm:$0xff]  ;;  %v9678_v45 = vpack.c.bf16 %v7809_v9, %v7803_v17  ;;  %v2004_v53 = vsel %vm385_vm2, %v7984_v40, %v8046_v19 }
 0x332   :  { %v8076_v37 = vpop.permute.xlu1 %1988 }
 0x333   :  { %2511 = vmatpush1.bf16.msra.mxu0 %v2414_v52  ;;  %v2002_v57 = vsel %vm385_vm2, %v1987_v59, %v8076_v37  ;;  %v9659_v59 = vpack.c.bf16 %v7711_v30, %v7708_v16  ;;  %v9661_v30 = vpack.c.bf16 %v7642_v48, %v7639_v12  ;;  %v9665_v12 = vld [vmem:[#allocation81_spill] sm:$0xff] }
 0x334   :  { %4803 = vmatprep.subr.msk.bf16.mxu0 %vm1445_vm8, %v2431_v28  ;;  %v2025_v33 = vmul.f32 %v2002_v57, %v9656_v26  ;;  %v2392_v28 = vpack.c.bf16 %v2088_v18, %v2024_v44  ;;  %v2099_v57 = vmul.f32 %v9663_v29, %v9662_v51  ;;  %v9670_v44 = vld [vmem:[#allocation65_spill] sm:$0xff]  ;;  %v9676_v29 = vpack.c.bf16 %v7812_v3, %v7806_v41  ;;  %v9679_v41 = vld [vmem:[#allocation122_spill] sm:$0xff] }
 0x335   :  { %v2133_v20 = vpop.permute.xlu0 %2132  ;;  %v1895_v3 = vmul.f32 %v1876_v1, %v9679_v41  ;;  %v9692_v1 = vld [vmem:[#allocation82_spill] sm:$0xff]  ;;  %v9695_v41 = vld [vmem:[#allocation72_spill] sm:$0xff] }
 0x336   :  { %v8088_v22 = vpop.permute.xlu1 %2052 }
 0x337   :  { %v2066_v21 = vsel %vm535_vm3, %v2051_v60, %v8088_v22  ;;  %2513 = vmatpush1.bf16.msra.mxu0 %v2457_v62  ;;  %v9666_v62 = vld [vmem:[#allocation71_spill] sm:$0xff] }
 0x338   :  { %v2089_v61 = vmul.f32 %v2066_v21, %v9657_v34  ;;  %2586 = vmatprep.subr.bf16.mxu0 %v9659_v59  ;;  %v2403_v21 = vpack.c.bf16 %v2163_v43, %v2099_v57  ;;  %v2105_v59 = vmul.f32 %v7484_v6, %v9670_v44  ;;  %v9672_v43 = vld [vmem:[#allocation142_spill] sm:$0xff]  ;;  %v1940_v6 = vsel %vm235_vm0, %v7915_v13, %v7943_v54 }
 0x339   :  { %v8101_v8 = vpop.permute.xlu0 %2192  ;;  %v9677_v13 = vld [vmem:[#allocation42_spill] sm:$0xff] }
 0x33a   :  { %v2131_v52 = vpop.permute.xlu1 %2130  ;;  %v2393_v60 = vpack.c.bf16 %v2089_v61, %v2025_v33  ;;  %4804 = vmatmul.mubr.msk.bf16.vlgmr.msra.gmra.mrb[16].mxu0 %vm1441_vm9, %v7662_v5  ;;  %v2212_v42 = vsel %vm936_vm5, %v7874_v39, %v8101_v8  ;;  %v9667_v33 = vld [vmem:[#allocation124_spill] sm:$0xff]  ;;  %v1959_v54 = vmul.f32 %v1940_v6, %v9677_v13 }
 0x33b   :  { %v2146_v16 = vsel %vm786_vm4, %v2131_v52, %v2133_v20  ;;  %2587 = vmatpush1.bf16.msra.mxu0 %v9661_v30  ;;  %2618 = vmatprep.mubr.bf16.mxu0 %v9407_v47  ;;  %v8128_v48 = vmul.f32 %v2212_v42, %v9665_v12  ;;  %v9674_v30 = vld [vmem:[#allocation121_spill] sm:$0xff]  ;;  %v2147_v15 = vsel %vm786_vm4, %v8074_v49, %v2131_v52 }
 0x33c   :  { %2711 = vmatprep.subr.bf16.mxu1 %v2393_v60  ;;  %2588 = vmatprep.subr.bf16.mxu0 %v9664_v58  ;;  %v2168_v26 = vmul.f32 %v2146_v16, %v9666_v62  ;;  %v2104_v60 = vmul.f32 %v9672_v43, %v9671_v56  ;;  %v2355_v51 = vmul.f32 %v2343_v50, %v9674_v30  ;;  %v9680_v62 = vld [vmem:[#allocation47_spill] sm:$0xff]  ;;  %v9682_v50 = vld [vmem:[#allocation4_spill] sm:$0xff] }
 0x33d   :  { %2712 = vmatpush1.bf16.msra.mxu1 %v2392_v28  ;;  %v2257_v7 = vpop.permute.xlu0 %2256  ;;  %v2375_v9 = vpack.c.bf16 %v1959_v54, %v1895_v3  ;;  %v2148_v52 = vsel %vm786_vm4, %v9682_v50, %v8074_v49  ;;  %v9685_v56 = vld [vmem:[#allocation139_spill] sm:$0xff]  ;;  %v9687_v30 = vld [vmem:[#allocation76_spill] sm:$0xff]  ;;  %v9700_v50 = vld [vmem:[#allocation9_spill] sm:$0xff] }
 0x33e   :  { %v2276_v39 = vsel %vm1086_vm6, %v7894_v11, %v2257_v7  ;;  %v8124_v18 = vpop.permute.xlu1 %2134  ;;  %v9668_v11 = vld [vmem:[#allocation66_spill] sm:$0xff]  ;;  %v2408_v23 = vpack.c.bf16 %v2168_v26, %v2104_v60  ;;  %v2087_v26 = vmul.f32 %v2068_v35, %v9680_v62  ;;  %v9696_v62 = vld [vmem:[#allocation7_spill] sm:$0xff] }
 0x33f   :  { %v8132_v34 = vmul.f32 %v2276_v39, %v9667_v33  ;;  %v2145_v63 = vsel %vm786_vm4, %v2133_v20, %v8124_v18  ;;  %2589 = vmatpush1.bf16.msra.mxu0 %v9669_v55  ;;  %v2434_v39 = vpack.c.bf16 %v2354_v24, %v2354_v24  ;;  %v9681_v33 = vld [vmem:[#allocation16_spill] sm:$0xff] }
 0x340   :  { %v2169_v61 = vmul.f32 %v2145_v63, %v9668_v11  ;;  %2590 = vmatprep.subr.bf16.mxu0 %v2403_v21  ;;  %v2435_v21 = vpack.c.bf16 %v2355_v51, %v2355_v51  ;;  %v2023_v63 = vmul.f32 %v2004_v53, %v9681_v33  ;;  %v9683_v11 = vld [vmem:[#allocation25_spill] sm:$0xff] }
 0x341   :  { %v2422_v20 = vpack.c.bf16 %v8132_v34, %v8128_v48  ;;  %v2197_v28 = vpop.permute.xlu0 %2196  ;;  %v2469_v17 = vsel %vm1445_vm8, %v2434_v39, 0  ;;  %v9706_v34 = vld [vmem:[#allocation43_spill] sm:$0xff] }
 0x342   :  { %v2195_v42 = vpop.permute.xlu1 %2194  ;;  %v2409_v16 = vpack.c.bf16 %v2169_v61, %v2105_v59  ;;  %v2167_v61 = vmul.f32 %v2147_v15, %v9683_v11  ;;  %v9684_v59 = vld [vmem:[#allocation58_spill] sm:$0xff]  ;;  %v2391_v49 = vpack.c.bf16 %v2087_v26, %v2023_v63  ;;  %v9699_v63 = vld [vmem:[#allocation36_spill] sm:$0xff] }
 0x343   :  { %2591 = vmatpush1.bf16.msra.mxu0 %v9675_v38  ;;  %v2210_v55 = vsel %vm936_vm5, %v2195_v42, %v2197_v28  ;;  %v2103_v43 = vmul.f32 %v9685_v56, %v9684_v59  ;;  %v9690_v38 = vld [vmem:[#allocation22_spill] sm:$0xff]  ;;  %v9702_v59 = vld [vmem:[#allocation123_spill] sm:$0xff] }
 0x344   :  { %2713 = vmatprep.subr.bf16.mxu1 %v2409_v16  ;;  %2592 = vmatprep.subr.bf16.mxu0 %v9676_v29  ;;  %v9686_v16 = vld [vmem:[#allocation83_spill] sm:$0xff] }
 0x345   :  { %2714 = vmatpush1.bf16.msra.mxu1 %v2408_v23  ;;  %v2261_v57 = vpop.permute.xlu0 %2260  ;;  %v9688_v23 = vld [vmem:[#allocation77_spill] sm:$0xff]  ;;  %v9691_v29 = vld [vmem:[#allocation135_spill] sm:$0xff] }
 0x346   :  { %v2259_v58 = vpop.permute.xlu1 %2258 }
 0x347   :  { %2593 = vmatpush1.bf16.msra.mxu0 %v9678_v45  ;;  %v2274_v36 = vsel %vm1086_vm6, %v2259_v58, %v2261_v57  ;;  %v2275_v60 = vsel %vm1086_vm6, %v2257_v7, %v2259_v58  ;;  %v9689_v7 = vpack.c.bf16 %v7930_v25, %v7927_v10  ;;  %v2232_v58 = vmul.f32 %v2210_v55, %v9692_v1  ;;  %v9705_v1 = vld [vmem:[#allocation8_spill] sm:$0xff] }
 0x348   :  { %4807 = vmatprep.subr.msk.bf16.mxu0 %vm1445_vm8, %v2435_v21  ;;  %v2296_v4 = vmul.f32 %v2274_v36, %v9686_v16  ;;  %v9693_v21 = vld [vmem:[#allocation31_spill] sm:$0xff]  ;;  %v2407_v45 = vpack.c.bf16 %v2167_v61, %v2103_v43  ;;  %v9698_v36 = vpack.c.bf16 %v8025_v32, %v8022_v27  ;;  %v9701_v61 = vld [vmem:[#allocation125_spill] sm:$0xff] }
 0x349   :  { %v2321_v12 = vpop.permute.xlu0 %2320  ;;  %v2166_v13 = vmul.f32 %v2148_v52, %v9693_v21  ;;  %v9703_v27 = vld [vmem:[#allocation39_spill] sm:$0xff] }
 0x34a   :  { %v8182_v46 = vpop.permute.xlu1 %2198  ;;  %v2424_v25 = vpack.c.bf16 %v2296_v4, %v2232_v58  ;;  %v2340_v10 = vsel %vm1236_vm7, %v7917_v2, %v2321_v12  ;;  %v9704_v16 = vld [vmem:[#allocation87_spill] sm:$0xff]  ;;  %v9707_v58 = vld [vmem:[#allocation50_spill] sm:$0xff] }
 0x34b   :  { %2595 = vmatpush1.bf16.msra.mxu0 %v2469_v17  ;;  %v2209_v40 = vsel %vm936_vm5, %v2197_v28, %v8182_v46  ;;  %v2211_v28 = vsel %vm936_vm5, %v8101_v8, %v2195_v42  ;;  %v9694_v8 = vld [vmem:[#allocation28_spill] sm:$0xff]  ;;  %v9697_v17 = vld [vmem:[#allocation86_spill] sm:$0xff] }
 0x34c   :  { %2668 = vmatprep.subr.bf16.mxu0 %v2375_v9  ;;  %v2233_v51 = vmul.f32 %v2209_v40, %v9687_v30  ;;  %v2295_v42 = vmul.f32 %v2275_v60, %v9694_v8  ;;  %v2231_v3 = vmul.f32 %v2211_v28, %v9695_v41  ;;  %v2358_v40 = vmul.f32 %v2340_v10, %v9699_v63  ;;  %v9710_v10 = vld [vmem:[#allocation94_spill] sm:$0xff] }
 0x34d   :  { %v2325_v19 = vpop.permute.xlu0 %2324 }
 0x34e   :  { %v8202_v44 = vpop.permute.xlu1 %2262  ;;  %4808 = vmatmul.mubr.msk.bf16.vlgmr.msra.gmra.mrb[20].mxu0 %vm1441_vm9, %v7662_v5 }
 0x34f   :  { %v2273_v24 = vsel %vm1086_vm6, %v2261_v57, %v8202_v44  ;;  %2669 = vmatpush1.bf16.msra.mxu0 %v9689_v7  ;;  %2700 = vmatprep.mubr.bf16.mxu0 %v9407_v47  ;;  %v2102_v57 = vmul.f32 %v9691_v29, %v9690_v38 }
 0x350   :  { %v2297_v6 = vmul.f32 %v2273_v24, %v9688_v23  ;;  %2670 = vmatprep.subr.bf16.mxu0 %v2391_v49 }
 0x351   :  { %v1863_v39 = vpop.permute.xlu0 %1862  ;;  %v2406_v33 = vpack.c.bf16 %v2166_v13, %v2102_v57 }
 0x352   :  { %v2323_v54 = vpop.permute.xlu1 %2322  ;;  %v2425_v35 = vpack.c.bf16 %v2297_v6, %v2233_v51  ;;  %v1873_v26 = vsel %vm86_vm1, %v9696_v62, %v1863_v39  ;;  %v2438_v51 = vpack.c.bf16 %v2358_v40, %v2358_v40  ;;  %v9711_v62 = vld [vmem:[#allocation92_spill] sm:$0xff] }
 0x353   :  { %v2338_v53 = vsel %vm1236_vm7, %v2323_v54, %v2325_v19  ;;  %v2339_v15 = vsel %vm1236_vm7, %v2321_v12, %v2323_v54  ;;  %2671 = vmatpush1.bf16.msra.mxu0 %v9698_v36  ;;  %v2423_v12 = vpack.c.bf16 %v2295_v42, %v2231_v3  ;;  %v1898_v55 = vmul.f32 %v1873_v26, %v9701_v61  ;;  %v9708_v54 = vld [vmem:[#allocation93_spill] sm:$0xff]  ;;  %v9709_v3 = vld [vmem:[#allocation95_spill] sm:$0xff] }
 0x354   :  { %v2360_v9 = vmul.f32 %v2338_v53, %v9697_v17  ;;  %2715 = vmatprep.subr.bf16.mxu1 %v2425_v35  ;;  %2672 = vmatprep.subr.bf16.mxu0 %v2407_v45  ;;  %v2359_v56 = vmul.f32 %v2339_v15, %v9702_v59  ;;  %v2481_v57 = vsel %vm1445_vm8, %v2438_v51, 0  ;;  %v9715_v59 = vld [vmem:[#allocation127_spill] sm:$0xff] }
 0x355   :  { %2716 = vmatpush1.bf16.msra.mxu1 %v2424_v25  ;;  %v1927_v2 = vpop.permute.xlu0 %1926  ;;  %v9719_v51 = vld [vmem:[#allocation103_spill] sm:$0xff] }
 0x356   :  { %v1937_v52 = vsel %vm235_vm0, %v9700_v50, %v1927_v2  ;;  %v8247_v11 = vpop.permute.xlu1 %2326  ;;  %v2440_v60 = vpack.c.bf16 %v2360_v9, %v2360_v9  ;;  %v2439_v23 = vpack.c.bf16 %v2359_v56, %v2359_v56 }
 0x357   :  { %v1962_v32 = vmul.f32 %v1937_v52, %v9703_v27  ;;  %v2337_v43 = vsel %vm1236_vm7, %v2325_v19, %v8247_v11  ;;  %2673 = vmatpush1.bf16.msra.mxu0 %v2406_v33  ;;  %v9713_v52 = vld [vmem:[#allocation51_spill] sm:$0xff]  ;;  %v9716_v27 = vld [vmem:[#allocation126_spill] sm:$0xff] }
 0x358   :  { %v2361_v4 = vmul.f32 %v2337_v43, %v9704_v16  ;;  %2674 = vmatprep.subr.bf16.mxu0 %v2423_v12  ;;  %v2487_v6 = vsel %vm1445_vm8, %v2440_v60, 0  ;;  %v9717_v16 = vld [vmem:[#allocation137_spill] sm:$0xff] }
 0x359   :  { %v2378_v24 = vpack.c.bf16 %v1962_v32, %v1898_v55  ;;  %v1867_v49 = vpop.permute.xlu0 %1866  ;;  %v9714_v55 = vld [vmem:[#allocation6_spill] sm:$0xff] }
 0x35a   :  { %v2441_v28 = vpack.c.bf16 %v2361_v4, %v2361_v4  ;;  %v1865_v30 = vpop.permute.xlu1 %1864  ;;  %v1870_v48 = vsel %vm86_vm1, %v1867_v49, %v9705_v1  ;;  %v9722_v1 = vld [vmem:[#allocation102_spill] sm:$0xff] }
 0x35b   :  { %2675 = vmatpush1.bf16.msra.mxu0 %v2422_v20  ;;  %v1872_v19 = vsel %vm86_vm1, %v1863_v39, %v1865_v30  ;;  %v1871_v39 = vsel %vm86_vm1, %v1865_v30, %v1867_v49  ;;  %v1901_v35 = vmul.f32 %v1870_v48, %v9708_v54  ;;  %vm4710_vm1 = vcmask 261120  }
 0x35c   :  { %4813 = vmatprep.subr.msk.bf16.mxu1 %vm1445_vm8, %v2441_v28  ;;  %4811 = vmatprep.subr.msk.bf16.mxu0 %vm1445_vm8, %v2439_v23  ;;  %v1899_v20 = vmul.f32 %v1872_v19, %v9706_v34  ;;  %v1900_v25 = vmul.f32 %v1871_v39, %v9709_v3  ;;  %v9718_v28 = vld [vmem:[#allocation101_spill] sm:$0xff]  ;;  %v9723_v34 = vld [vmem:[#allocation100_spill] sm:$0xff]  ;;  %v9728_v3 = vld [vmem:[#allocation3_spill] sm:$0xff] }
 0x35d   :  { %2718 = vmatpush1.bf16.msra.mxu1 %v2487_v6  ;;  %v1991_v7 = vpop.permute.xlu0 %1990  ;;  %v9720_v6 = vld [vmem:[#allocation13_spill] sm:$0xff] }
 0x35e   :  { %v1929_v38 = vpop.permute.xlu1 %1928 }
 0x35f   :  { %v1936_v29 = vsel %vm235_vm0, %v1927_v2, %v1929_v38  ;;  %2677 = vmatpush1.bf16.msra.mxu0 %v2481_v57  ;;  %v2001_v2 = vsel %vm385_vm2, %v8076_v37, %v1991_v7 }
 0x360   :  { %v1963_v21 = vmul.f32 %v1936_v29, %v9707_v58  ;;  %4814 = vmatmul.mubr.msk.bf16.vlgmr.msra.gmra.mrb[24].mxu1 %vm1441_vm9, %v7662_v5  ;;  %v2026_v12 = vmul.f32 %v2001_v2, %v9713_v52  ;;  %v9721_v29 = vld [vmem:[#allocation107_spill] sm:$0xff]  ;;  %v9733_v2 = vld [vmem:[#allocation62_spill] sm:$0xff] }
 0x361   :  { %v2055_v13 = vpop.permute.xlu0 %2054  ;;  %2823 = vmatprep.mubr.bf16.mxu1 %v9407_v47 }
 0x362   :  { %v1931_v8 = vpop.permute.xlu1 %1930  ;;  %v2379_v42 = vpack.c.bf16 %v1963_v21, %v1899_v20  ;;  %4812 = vmatmul.mubr.msk.bf16.vlgmr.msra.gmra.mrb[24].mxu0 %vm1441_vm9, %v7662_v5  ;;  %v2065_v36 = vsel %vm535_vm3, %v8088_v22, %v2055_v13 }
 0x363   :  { %v1934_v45 = vsel %vm235_vm0, %v1931_v8, %v7986_v31  ;;  %v1935_v41 = vsel %vm235_vm0, %v1929_v38, %v1931_v8  ;;  %2782 = vmatprep.mubr.bf16.mxu0 %v9407_v47  ;;  %v9712_v47 = vld [vmem:[#allocation54_spill] sm:$0xff]  ;;  %vm5397_vm0 = vmmov 0  }
 0x364   :  { %v1964_v53 = vmul.f32 %v1935_v41, %v9710_v10  ;;  %v1965_v26 = vmul.f32 %v1934_v45, %v9711_v62  ;;  %2750 = vmatprep.subr.bf16.mxu0 %v2379_v42  ;;  %v2090_v40 = vmul.f32 %v2065_v36, %v9712_v47  ;;  %v9724_v8 = vld [vmem:[#allocation106_spill] sm:$0xff]  ;;  %v9725_v42 = vld [vmem:[#allocation143_spill] sm:$0xff]  ;;  %v9727_v41 = vld [vmem:[#allocation108_spill] sm:$0xff] }
 0x365   :  { %2751 = vmatpush1.bf16.msra.mxu0 %v2378_v24  ;;  %v1995_v15 = vpop.permute.xlu0 %1994  ;;  %v2109_v54 = vmul.f32 %v9725_v42, %v9724_v8  ;;  %v9744_v42 = vld [vmem:[#allocation131_spill] sm:$0xff] }
 0x366   :  { %v2380_v17 = vpack.c.bf16 %v1964_v53, %v1900_v25  ;;  %v1993_v9 = vpop.permute.xlu1 %1992  ;;  %v2381_v31 = vpack.c.bf16 %v1965_v26, %v1901_v35  ;;  %v1998_v22 = vsel %vm385_vm2, %v1995_v15, %v9714_v55  ;;  %v2394_v60 = vpack.c.bf16 %v2090_v40, %v2026_v12  ;;  %v9726_v35 = vld [vmem:[#allocation59_spill] sm:$0xff]  ;;  %v9729_v53 = vld [vmem:[#allocation128_spill] sm:$0xff]  ;;  %v9730_v26 = vld [vmem:[#allocation109_spill] sm:$0xff] }
 0x367   :  { %v2000_v33 = vsel %vm385_vm2, %v1991_v7, %v1993_v9  ;;  %v1999_v37 = vsel %vm385_vm2, %v1993_v9, %v1995_v15  ;;  %v2029_v30 = vmul.f32 %v1998_v22, %v9718_v28  ;;  %v9731_v9 = vld [vmem:[#allocation129_spill] sm:$0xff]  ;;  %v9739_v28 = vld [vmem:[#allocation144_spill] sm:$0xff] }
 0x368   :  { %2791 = vmatprep.subr.bf16.mxu1 %v2381_v31  ;;  %v2027_v56 = vmul.f32 %v2000_v33, %v9715_v59  ;;  %v2028_v23 = vmul.f32 %v1999_v37, %v9719_v51  ;;  %v9732_v31 = vld [vmem:[#allocation2_spill] sm:$0xff]  ;;  %v9734_v33 = vld [vmem:[#allocation5_spill] sm:$0xff] }
 0x369   :  { %2792 = vmatpush1.bf16.msra.mxu1 %v2380_v17  ;;  %v2137_v63 = vpop.permute.xlu0 %2136  ;;  %v2107_v36 = vmul.f32 %v9732_v31, %v9731_v9  ;;  %v2106_v47 = vmul.f32 %v9734_v33, %v9733_v2 }
 0x36a   :  { %v2057_v50 = vpop.permute.xlu1 %2056  ;;  %v2144_v38 = vsel %vm786_vm4, %v8124_v18, %v2137_v63  ;;  %v2108_v18 = vmul.f32 %v9728_v3, %v9727_v41 }
 0x36b   :  { %v2064_v61 = vsel %vm535_vm3, %v2055_v13, %v2057_v50  ;;  %v2170_v45 = vmul.f32 %v2144_v38, %v9726_v35  ;;  %v9745_v35 = vld [vmem:[#allocation133_spill] sm:$0xff] }
 0x36c   :  { %v2091_v32 = vmul.f32 %v2064_v61, %v9716_v27  ;;  %v9735_v27 = vld [vmem:[#allocation78_spill] sm:$0xff] }
 0x36d   :  { %v2141_v43 = vpop.permute.xlu0 %2140  ;;  %v2410_v61 = vpack.c.bf16 %v2170_v45, %v2106_v47 }
 0x36e   :  { %v2157_v4 = vsel %vm786_vm4, %v2141_v43, %v9717_v16  ;;  %v2059_v24 = vpop.permute.xlu1 %2058  ;;  %v2395_v49 = vpack.c.bf16 %v2091_v32, %v2027_v56  ;;  %v9737_v16 = vld [vmem:[#allocation132_spill] sm:$0xff] }
 0x36f   :  { %v2062_v19 = vsel %vm535_vm3, %v2059_v24, %v9720_v6  ;;  %v2063_v7 = vsel %vm535_vm3, %v2057_v50, %v2059_v24  ;;  %v2173_v57 = vmul.f32 %v2157_v4, %v9721_v29  ;;  %v9738_v24 = vld [vmem:[#allocation130_spill] sm:$0xff] }
 0x370   :  { %v2092_v48 = vmul.f32 %v2063_v7, %v9722_v1  ;;  %v2093_v20 = vmul.f32 %v2062_v19, %v9723_v34  ;;  %2752 = vmatprep.subr.bf16.mxu0 %v2395_v49  ;;  %v9740_v7 = vld [vmem:[#allocation113_spill] sm:$0xff]  ;;  %v9741_v29 = vld [vmem:[#allocation110_spill] sm:$0xff]  ;;  %v9743_v34 = vld [vmem:[#allocation111_spill] sm:$0xff] }
 0x371   :  { %2753 = vmatpush1.bf16.msra.mxu0 %v2394_v60  ;;  %v2203_v58 = vpop.permute.xlu0 %2202  ;;  %v2413_v17 = vpack.c.bf16 %v2173_v57, %v2109_v54  ;;  %v9742_v1 = vld [vmem:[#allocation114_spill] sm:$0xff] }
 0x372   :  { %v2396_v21 = vpack.c.bf16 %v2092_v48, %v2028_v23  ;;  %v2139_v39 = vpop.permute.xlu1 %2138  ;;  %v2397_v13 = vpack.c.bf16 %v2093_v20, %v2029_v30 }
 0x373   :  { %v2142_v25 = vsel %vm786_vm4, %v2139_v39, %v2141_v43  ;;  %v2143_v10 = vsel %vm786_vm4, %v2137_v63, %v2139_v39  ;;  %v9736_v43 = vld [vmem:[#allocation67_spill] sm:$0xff] }
 0x374   :  { %v2171_v62 = vmul.f32 %v2143_v10, %v9729_v53  ;;  %v2172_v15 = vmul.f32 %v2142_v25, %v9730_v26  ;;  %2793 = vmatprep.subr.bf16.mxu1 %v2397_v13  ;;  %v9746_v10 = vld [vmem:[#allocation138_spill] sm:$0xff] }
 0x375   :  { %2794 = vmatpush1.bf16.msra.mxu1 %v2396_v21  ;;  %v2267_v40 = vpop.permute.xlu0 %2266 }
 0x376   :  { %v2412_v50 = vpack.c.bf16 %v2172_v15, %v2108_v18  ;;  %2795 = vmatprep.subr.bf16.mxu1 %v2413_v17  ;;  %v2201_v52 = vpop.permute.xlu1 %2200  ;;  %v2411_v12 = vpack.c.bf16 %v2171_v62, %v2107_v36  ;;  %v9747_v62 = vld [vmem:[#allocation116_spill] sm:$0xff]  ;;  %v9748_v15 = vld [vmem:[#allocation115_spill] sm:$0xff] }
 0x377   :  { %v2207_v63 = vsel %vm936_vm5, %v2201_v52, %v2203_v58  ;;  %v2208_v55 = vsel %vm936_vm5, %v8182_v46, %v2201_v52  ;;  %v5237_v52 = vld [vmem:[%s9196_s6 + $0xc0] sm:$0xff]  }
 0x378   :  { %2754 = vmatprep.subr.bf16.mxu0 %v2411_v12  ;;  %v2234_v32 = vmul.f32 %v2208_v55, %v9735_v27  ;;  %v2235_v60 = vmul.f32 %v2207_v63, %v9736_v43  ;;  %v5238_v12 = vld [vmem:[%s9196_s6 + $0x80] sm:$0xff]   ;;  %v5240_v63 = vld [vmem:[%s9196_s6 + $0x8] sm:$0xff]   ;;  %v5246_v27 = vld [vmem:[%s9196_s6 + $0x90] sm:$0xff]  }
 0x379   :  { %2755 = vmatpush1.bf16.msra.mxu0 %v2410_v61  ;;  %2796 = vmatpush1.bf16.msra.mxu1 %v2412_v50  ;;  %v2269_v22 = vpop.permute.xlu0 %2268  ;;  %v5236_v50 = vld [vmem:[%s9196_s6] sm:$0xff]   ;;  %v5239_v61 = vld [vmem:[%s9196_s6 + $0x48] sm:$0xff]   ;;  %v5248_v43 = vld [vmem:[%s9196_s6 + $0x18] sm:$0xff]  }
 0x37a   :  { %v2265_v37 = vpop.permute.xlu1 %2264  ;;  %v2270_v46 = vsel %vm1086_vm6, %v2267_v40, %v2269_v22  ;;  %v2285_v30 = vsel %vm1086_vm6, %v2269_v22, %v9739_v28  ;;  %v5241_v55 = vld [vmem:[%s9196_s6 + $0xc8] sm:$0xff]  }
 0x37b   :  { %v2271_v59 = vsel %vm1086_vm6, %v2265_v37, %v2267_v40  ;;  %v2272_v56 = vsel %vm1086_vm6, %v8202_v44, %v2265_v37  ;;  %v2300_v38 = vmul.f32 %v2270_v46, %v9740_v7  ;;  %v2301_v57 = vmul.f32 %v2285_v30, %v9741_v29  ;;  %v5242_v22 = vld [vmem:[%s9196_s6 + $0x88] sm:$0xff]   ;;  %v5243_v37 = vld [vmem:[%s9196_s6 + $0x50] sm:$0xff]   ;;  %v5254_v46 = vld [vmem:[%s9196_s6 + $0xa0] sm:$0xff]  }
 0x37c   :  { %v2298_v4 = vmul.f32 %v2272_v56, %v9737_v16  ;;  %v2299_v49 = vmul.f32 %v2271_v59, %v9738_v24  ;;  %v5244_v59 = vld [vmem:[%s9196_s6 + $0x10] sm:$0xff]   ;;  %v5250_v16 = vld [vmem:[%s9196_s6 + $0x98] sm:$0xff]   ;;  %v5252_v24 = vld [vmem:[%s9196_s6 + $0x20] sm:$0xff]  }
 0x37d   :  { %v2331_v21 = vpop.permute.xlu0 %2330  ;;  %v5245_v56 = vld [vmem:[%s9196_s6 + $0xd0] sm:$0xff]   ;;  %v5255_v28 = vld [vmem:[%s9196_s6 + $0x68] sm:$0xff]   ;;  %v5264_v29 = vld [vmem:[%s9196_s6 + $0x38] sm:$0xff]  }
 0x37e   :  { %v2426_v51 = vpack.c.bf16 %v2298_v4, %v2234_v32  ;;  %v2205_v23 = vpop.permute.xlu1 %2204  ;;  %v2427_v6 = vpack.c.bf16 %v2299_v49, %v2235_v60  ;;  %v5247_v32 = vld [vmem:[%s9196_s6 + $0x58] sm:$0xff]   ;;  %v5251_v4 = vld [vmem:[%s9196_s6 + $0x60] sm:$0xff]   ;;  %v5256_v30 = vld [vmem:[%s9196_s6 + $0x28] sm:$0xff]  }
 0x37f   :  { %v2206_v44 = vsel %vm936_vm5, %v2203_v58, %v2205_v23  ;;  %v2221_v19 = vsel %vm936_vm5, %v2205_v23, %v9649_v0  ;;  %v5249_v60 = vld [vmem:[%s9196_s6 + $0xd8] sm:$0xff]   ;;  %v5253_v49 = vld [vmem:[%s9196_s6 + $0xe0] sm:$0xff]   ;;  %v5258_v23 = vld [vmem:[%s9196_s6 + $0xa8] sm:$0xff]  }
 0x380   :  { %v2236_v48 = vmul.f32 %v2206_v44, %v9742_v1  ;;  %v2237_v20 = vmul.f32 %v2221_v19, %v9743_v34  ;;  %2756 = vmatprep.subr.bf16.mxu0 %v2427_v6  ;;  %v5259_v6 = vld [vmem:[%s9196_s6 + $0x70] sm:$0xff]   ;;  %v5266_v1 = vld [vmem:[%s9196_s6 + $0xb8] sm:$0xff]  }
 0x381   :  { %2757 = vmatpush1.bf16.msra.mxu0 %v2426_v51  ;;  %v5257_v51 = vld [vmem:[%s9196_s6 + $0xe8] sm:$0xff]   ;;  %v5260_v44 = vld [vmem:[%s9196_s6 + $0x30] sm:$0xff]  }
 0x382   :  { %v2428_v39 = vpack.c.bf16 %v2300_v38, %v2236_v48  ;;  %v2329_v13 = vpop.permute.xlu1 %2328  ;;  %v2429_v8 = vpack.c.bf16 %v2301_v57, %v2237_v20  ;;  %v5261_v19 = vld [vmem:[%s9196_s6 + $0xf0] sm:$0xff]   ;;  %v5263_v38 = vld [vmem:[%s9196_s6 + $0x78] sm:$0xff]  }
 0x383   :  { %v2335_v58 = vsel %vm1236_vm7, %v2329_v13, %v2331_v21  ;;  %v2336_v0 = vsel %vm1236_vm7, %v8247_v11, %v2329_v13  ;;  %v5262_v7 = vld [vmem:[%s9196_s6 + $0xb0] sm:$0xff]   ;;  %v5265_v57 = vld [vmem:[%s9196_s6 + $0xf8] sm:$0xff]   ;;  %v5269_v13 = vld [vmem:[%s9196_s6 + $0x1c0] sm:$0xff]  }
 0x384   :  { %v2362_v54 = vmul.f32 %v2336_v0, %v9744_v42  ;;  %v2363_v45 = vmul.f32 %v2335_v58, %v9745_v35  ;;  %2797 = vmatprep.subr.bf16.mxu1 %v2429_v8 }
 0x385   :  { %2798 = vmatpush1.bf16.msra.mxu1 %v2428_v39 }
 0x386   :  { %v2442_v41 = vpack.c.bf16 %v2362_v54, %v2362_v54  ;;  %v2443_v3 = vpack.c.bf16 %v2363_v45, %v2363_v45  ;;  %v2333_v18 = vpop.permute.xlu1 %2332 }
 0x387   :  { %v2334_v25 = vsel %vm1236_vm7, %v2331_v21, %v2333_v18  ;;  %v2349_v53 = vsel %vm1236_vm7, %v2333_v18, %v9746_v10  ;;  %v5267_v21 = vld [vmem:[%s9196_s6 + $0x140] sm:$0xff]  }
 0x388   :  { %v2364_v26 = vmul.f32 %v2334_v25, %v9747_v62  ;;  %v2365_v11 = vmul.f32 %v2349_v53, %v9748_v15  ;;  %4815 = vmatprep.subr.msk.bf16.mxu0 %vm1445_vm8, %v2443_v3  ;;  %v2493_v17 = vsel %vm1445_vm8, %v2442_v41, 0 }
 0x389   :  { %2759 = vmatpush1.bf16.msra.mxu0 %v2493_v17 }
 0x38a   :  { %v2444_v9 = vpack.c.bf16 %v2364_v26, %v2364_v26  ;;  %v2445_v31 = vpack.c.bf16 %v2365_v11, %v2365_v11 }
 0x38c   :  { %4816 = vmatmul.mubr.msk.bf16.vlgmr.msra.gmra.mrb[28].mxu0 %vm1441_vm9, %v7662_v5  ;;  %4817 = vmatprep.subr.msk.bf16.mxu1 %vm1445_vm8, %v2445_v31  ;;  %v2499_v36 = vsel %vm1445_vm8, %v2444_v9, 0  ;;  %v5235_v5 = vld [vmem:[%s9196_s6 + $0x40] sm:$0xff]  }
 0x38d   :  { %2800 = vmatpush1.bf16.msra.mxu1 %v2499_v36  ;;  %5036 = vmatprep.subr.bf16.mxu0 %v5235_v5 }
 0x38e   :  { %5037 = vmatpush3.bf16.msra.mxu0 %v5236_v50  ;;  %5058 = vmatprep.subr.bf16.mxu1 %v5237_v52  ;;  %v8497_v8 = vpop.permute.xlu0 %2450 }
 0x38f   :  { %5038 = vmatprep.subr.bf16.mxu0 %v5239_v61 }
 0x390   :  { %4818 = vmatmul.mubr.msk.bf16.vlgmr.msra.gmra.mrb[28].mxu1 %vm1441_vm9, %v5386_v14 }
 0x391   :  { %5059 = vmatpush3.bf16.msra.mxu1 %v5238_v12 }
 0x392   :  { %5039 = vmatpush3.bf16.msra.mxu0 %v5240_v63  ;;  %5060 = vmatprep.subr.bf16.mxu1 %v5241_v55 }
 0x393   :  { %5040 = vmatprep.subr.bf16.mxu0 %v5243_v37 }
 0x395   :  { %5061 = vmatpush3.bf16.msra.mxu1 %v5242_v22 }
 0x396   :  { %5041 = vmatpush3.bf16.msra.mxu0 %v5244_v59  ;;  %5062 = vmatprep.subr.bf16.mxu1 %v5245_v56 }
 0x397   :  { %5042 = vmatprep.subr.bf16.mxu0 %v5247_v32 }
 0x399   :  { %5063 = vmatpush3.bf16.msra.mxu1 %v5246_v27 }
 0x39a   :  { %5043 = vmatpush3.bf16.msra.mxu0 %v5248_v43  ;;  %5064 = vmatprep.subr.bf16.mxu1 %v5249_v60 }
 0x39b   :  { %5044 = vmatprep.subr.bf16.mxu0 %v5251_v4 }
 0x39d   :  { %5065 = vmatpush3.bf16.msra.mxu1 %v5250_v16 }
 0x39e   :  { %5045 = vmatpush3.bf16.msra.mxu0 %v5252_v24  ;;  %5066 = vmatprep.subr.bf16.mxu1 %v5253_v49 }
 0x39f   :  { %5046 = vmatprep.subr.bf16.mxu0 %v5255_v28 }
 0x3a1   :  { %5067 = vmatpush3.bf16.msra.mxu1 %v5254_v46 }
 0x3a2   :  { %5047 = vmatpush3.bf16.msra.mxu0 %v5256_v30  ;;  %5068 = vmatprep.subr.bf16.mxu1 %v5257_v51 }
 0x3a3   :  { %5048 = vmatprep.subr.bf16.mxu0 %v5259_v6 }
 0x3a5   :  { %5069 = vmatpush3.bf16.msra.mxu1 %v5258_v23 }
 0x3a6   :  { %5049 = vmatpush3.bf16.msra.mxu0 %v5260_v44  ;;  %5070 = vmatprep.subr.bf16.mxu1 %v5261_v19 }
 0x3a7   :  { %5050 = vmatprep.subr.bf16.mxu0 %v5263_v38 }
 0x3a9   :  { %5071 = vmatpush3.bf16.msra.mxu1 %v5262_v7 }
 0x3aa   :  { %v8391_v2 = vpop.f32.mrb[16].mxu1  ;;  %5072 = vmatprep.subr.bf16.mxu1 %v5265_v57  ;;  %5051 = vmatpush3.bf16.msra.mxu0 %v5264_v29 }
 0x3ab   :  { %v8393_v33 = vpop.f32.mrb[17].mxu1  ;;  %5080 = vmatprep.subr.bf16.mxu0 %v5267_v21  ;;  %v2580_v58 = vadd.f32 %v8391_v2, %v8497_v8 }
 0x3ac   :  { %v2583_v47 = vpop.f32.mrb[18].mxu1  ;;  %v2582_v0 = vadd.f32 %v8393_v33, %v8497_v8 }
 0x3ad   :  { %v2584_v40 = vpop.f32.mrb[19].mxu1  ;;  %5073 = vmatpush3.bf16.msra.mxu1 %v5266_v1  ;;  %v8503_v42 = vmax.f32 %v2580_v58, 0.0 }
 0x3ae   :  { %5102 = vmatprep.subr.bf16.mxu1 %v5269_v13  ;;  %v8505_v54 = vmax.f32 %v2582_v0, 0.0 }
 0x3af   :  { %v2892_v25 = vrot.slane %v8503_v42, 7  ;;  %v4821_v62 = vrot.slane %v8503_v42, 9  ;;  %v4823_v26 = vrot.slane %v8503_v42, 10  ;;  %v4825_v17 = vrot.slane %v8503_v42, 11 }
 0x3b0   :  { %v2893_v11 = vrot.slane %v8505_v54, 7  ;;  %v4827_v9 = vrot.slane %v8503_v42, 12  ;;  %v4829_v14 = vrot.slane %v8503_v42, 13  ;;  %v4822_v47 = vrot.slane %v8505_v54, 9 }
 0x3b1   :  { %v4824_v40 = vrot.slane %v8505_v54, 10  ;;  %v4826_v5 = vrot.slane %v8505_v54, 11  ;;  %v4828_v50 = vrot.slane %v8505_v54, 12  ;;  %v4830_v52 = vrot.slane %v8505_v54, 13 }
 0x3b2   :  { %v3003_v12 = vrot.slane %v2893_v11, 7  ;;  %v3002_v61 = vrot.slane %v2892_v25, 7 }
 0x3ea   :  { %v2661_v48 = vpop.f32.mrb[20].mxu1 }
 0x3eb   :  { %v2663_v34 = vpop.f32.mrb[21].mxu1  ;;  %v2662_v35 = vadd.f32 %v2661_v48, %v8497_v8 }
 0x3ec   :  { %v2665_v20 = vpop.f32.mrb[22].mxu1  ;;  %v2664_v45 = vadd.f32 %v2663_v34, %v8497_v8 }
 0x3ed   :  { %v2666_v39 = vpop.f32.mrb[23].mxu1  ;;  %v8517_v31 = vmax.f32 %v2662_v35, 0.0 }
 0x3ee   :  { %v8519_v36 = vmax.f32 %v2664_v45, 0.0 }
 0x3ef   :  { %v2920_v55 = vrot.slane %v8517_v31, 5  ;;  %v4843_v22 = vrot.slane %v8517_v31, 6  ;;  %v4845_v37 = vrot.slane %v8517_v31, 7  ;;  %v4849_v19 = vrot.slane %v8517_v31, 9 }
 0x3f0   :  { %v2921_v63 = vrot.slane %v8519_v36, 5  ;;  %v4844_v27 = vrot.slane %v8519_v36, 6  ;;  %v4846_v32 = vrot.slane %v8519_v36, 7  ;;  %v4850_v30 = vrot.slane %v8519_v36, 9 }
 0x3f1   :  { %v4852_v7 = vrot.slane %v8519_v36, 11  ;;  %v8560_v38 = vrot.slane %v2920_v55, 5  ;;  %v4854_v35 = vrot.slane %v8519_v36, 12 }
 0x3f2   :  { %v8548_v51 = vrot.slane %v2921_v63, 5 }
 0x40d   :  { %v2538_v41 = vpop.f32.mrb[16].mxu0 }
 0x40e   :  { %v2539_v3 = vadd.f32 %v2538_v41, %v8497_v8  ;;  %v2540_v18 = vpop.f32.mrb[17].mxu0 }
 0x40f   :  { %v2541_v10 = vadd.f32 %v2540_v18, %v8497_v8  ;;  %v2542_v53 = vpop.f32.mrb[18].mxu0 }
 0x410   :  { %v2543_v15 = vpop.f32.mrb[19].mxu0  ;;  %v2832_v2 = vmax.f32 %v2539_v3, 0.0 }
 0x411   :  { %v2833_v33 = vmax.f32 %v2541_v10, 0.0 }
 0x412   :  { %v2862_v59 = vrot.slane %v2832_v2, 4  ;;  %v2866_v43 = vrot.slane %v2832_v2, 5  ;;  %v2870_v46 = vrot.slane %v2832_v2, 6  ;;  %v2874_v28 = vrot.slane %v2832_v2, 7 }
 0x413   :  { %v2871_v56 = vrot.slane %v2833_v33, 6  ;;  %v2875_v60 = vrot.slane %v2833_v33, 7  ;;  %v2850_v44 = vrot.slane %v2832_v2, 1  ;;  %v2851_v29 = vrot.slane %v2833_v33, 1 }
 0x414   :  { %v8534_v16 = vsel %vm3200_vm10, %v2862_v59, %v4825_v17  ;;  %v8540_v24 = vsel %vm3200_vm10, %v2866_v43, %v4827_v9  ;;  %v8551_v23 = vsel %vm3200_vm10, %v2870_v46, %v4829_v14  ;;  %v8554_v6 = vsel %vm3200_vm10, %v2874_v28, %v3002_v61 }
 0x415   :  { %v8537_v4 = vsel %vm3200_vm10, %v2871_v56, %v4830_v52  ;;  %v8543_v49 = vsel %vm3200_vm10, %v2875_v60, %v3003_v12  ;;  %v2855_v57 = vrot.slane %v2833_v33, 2  ;;  %v2854_v1 = vrot.slane %v2832_v2, 2 }
 0x416   :  { %v2858_v48 = vrot.slane %v2832_v2, 3  ;;  %v2859_v20 = vrot.slane %v2833_v33, 3  ;;  %v2863_v21 = vrot.slane %v2833_v33, 4  ;;  %v2867_v39 = vrot.slane %v2833_v33, 5 }
 0x417   :  { %v3201_v0 = vsel %vm3200_vm10, %v2832_v2, %v2892_v25  ;;  %v3202_v3 = vsel %vm3200_vm10, %v2833_v33, %v2893_v11  ;;  %v3203_v18 = vsel %vm3200_vm10, %v2850_v44, %v8503_v42  ;;  %v3205_v10 = vsel %vm3200_vm10, %v2854_v1, %v4821_v62 }
 0x418   :  { %v3204_v17 = vsel %vm3200_vm10, %v2851_v29, %v8505_v54  ;;  %v3206_v9 = vsel %vm3200_vm10, %v2855_v57, %v4822_v47  ;;  %v3207_v25 = vsel %vm3200_vm10, %v2858_v48, %v4823_v26  ;;  %v3208_v2 = vsel %vm3200_vm10, %v2859_v20, %v4824_v40 }
 0x419   :  { %v3210_v11 = vsel %vm3200_vm10, %v2863_v21, %v4826_v5  ;;  %v3212_v33 = vsel %vm3200_vm10, %v2867_v39, %v4828_v50 }
 0x421   :  { %v2620_v34 = vpop.f32.mrb[20].mxu0 }
 0x422   :  { %v2621_v13 = vadd.f32 %v2620_v34, %v8497_v8  ;;  %v2622_v58 = vpop.f32.mrb[21].mxu0 }
 0x423   :  { %v2623_v45 = vadd.f32 %v2622_v58, %v8497_v8  ;;  %v2624_v41 = vpop.f32.mrb[22].mxu0 }
 0x424   :  { %v2836_v53 = vmax.f32 %v2621_v13, 0.0  ;;  %v2625_v15 = vpop.f32.mrb[23].mxu0 }
 0x425   :  { %v2837_v14 = vmax.f32 %v2623_v45, 0.0 }
 0x426   :  { %v2906_v52 = vrot.slane %v2836_v53, 6  ;;  %v4831_v62 = vrot.slane %v2836_v53, 7  ;;  %v3222_v12 = vsel %vm3217_vm11, %v3205_v10, %v2836_v53  ;;  %v4835_v61 = vrot.slane %v2836_v53, 9 }
 0x427   :  { %v2907_v59 = vrot.slane %v2837_v14, 6  ;;  %v4832_v54 = vrot.slane %v2837_v14, 7  ;;  %v3223_v47 = vsel %vm3217_vm11, %v3206_v9, %v2837_v14  ;;  %v4836_v56 = vrot.slane %v2837_v14, 9 }
 0x428   :  { %v3218_v42 = vsel %vm3217_vm11, %v3201_v0, %v2906_v52  ;;  %v8583_v26 = vsel %vm3234_vm12, %v3223_v47, %v4846_v32  ;;  %v3220_v40 = vsel %vm3217_vm11, %v3203_v18, %v4831_v62  ;;  %v8587_v5 = vsel %vm3234_vm12, %v3222_v12, %v4845_v37 }
 0x429   :  { %v3219_v50 = vsel %vm3217_vm11, %v3202_v3, %v2907_v59  ;;  %v8593_v43 = vsel %vm3234_vm12, %v3218_v42, %v2920_v55  ;;  %v3221_v60 = vsel %vm3217_vm11, %v3204_v17, %v4832_v54  ;;  %v8599_v46 = vsel %vm3234_vm12, %v3220_v40, %v4843_v22 }
 0x42a   :  { %v8604_v32 = vsel %vm3234_vm12, %v3219_v50, %v2921_v63  ;;  %v8609_v37 = vsel %vm3234_vm12, %v3221_v60, %v4844_v27  ;;  %v3225_v55 = vsel %vm3217_vm11, %v3208_v2, %v4836_v56  ;;  %v4838_v28 = vrot.slane %v2837_v14, 10 }
 0x42b   :  { %v8614_v44 = vsel %vm3234_vm12, %v3225_v55, %v8519_v36  ;;  %v3224_v22 = vsel %vm3217_vm11, %v3207_v25, %v4835_v61  ;;  %v4840_v29 = vrot.slane %v2837_v14, 11  ;;  %v4837_v57 = vrot.slane %v2836_v53, 10 }
 0x42c   :  { %v3227_v1 = vsel %vm3217_vm11, %v3210_v11, %v4838_v28  ;;  %v8620_v63 = vsel %vm3234_vm12, %v3224_v22, %v8517_v31  ;;  %v3031_v48 = vrot.slane %v2907_v59, 6  ;;  %v4839_v27 = vrot.slane %v2836_v53, 11 }
 0x42d   :  { %v8625_v34 = vsel %vm3234_vm12, %v3227_v1, %v4850_v30  ;;  %v3229_v20 = vsel %vm3217_vm11, %v3212_v33, %v4840_v29  ;;  %v3226_v21 = vsel %vm3217_vm11, %v8534_v16, %v4837_v57  ;;  %v4842_v39 = vrot.slane %v2837_v14, 13 }
 0x42e   :  { %v8632_v13 = vsel %vm3234_vm12, %v3229_v20, %v8548_v51  ;;  %v8637_v58 = vsel %vm3234_vm12, %v3226_v21, %v4849_v19  ;;  %v3231_v0 = vsel %vm3217_vm11, %v8537_v4, %v3031_v48  ;;  %v3228_v30 = vsel %vm3217_vm11, %v8540_v24, %v4839_v27 }
 0x42f   :  { %v8646_v16 = vsel %vm3234_vm12, %v3231_v0, %v4852_v7  ;;  %v8650_v51 = vsel %vm3234_vm12, %v3228_v30, %v8560_v38  ;;  %v3233_v45 = vsel %vm3217_vm11, %v8543_v49, %v4842_v39  ;;  %v3030_v41 = vrot.slane %v2906_v52, 6 }
 0x430   :  { %v8655_v19 = vsel %vm3234_vm12, %v3233_v45, %v4854_v35  ;;  %v4841_v4 = vrot.slane %v2836_v53, 13  ;;  %v4851_v3 = vrot.slane %v8517_v31, 11  ;;  %v4853_v24 = vrot.slane %v8517_v31, 12 }
 0x431   :  { %v3230_v7 = vsel %vm3217_vm11, %v8551_v23, %v3030_v41 }
 0x432   :  { %v3232_v38 = vsel %vm3217_vm11, %v8554_v6, %v4841_v4  ;;  %v8665_v49 = vsel %vm3234_vm12, %v3230_v7, %v4851_v3 }
 0x433   :  { %v2743_v36 = vpop.f32.mrb[24].mxu1  ;;  %v8668_v35 = vsel %vm3234_vm12, %v3232_v38, %v4853_v24 }
 0x434   :  { %v2744_v18 = vadd.f32 %v2743_v36, %v8497_v8  ;;  %v2745_v10 = vpop.f32.mrb[25].mxu1 }
 0x435   :  { %v2746_v53 = vadd.f32 %v2745_v10, %v8497_v8  ;;  %v2747_v15 = vpop.f32.mrb[26].mxu1  ;;  %v2702_v17 = vpop.f32.mrb[24].mxu0 }
 0x436   :  { %v8671_v31 = vmax.f32 %v2744_v18, 0.0  ;;  %v2748_v9 = vpop.f32.mrb[27].mxu1  ;;  %v2703_v6 = vadd.f32 %v2702_v17, %v8497_v8  ;;  %v2704_v25 = vpop.f32.mrb[25].mxu0 }
 0x437   :  { %v8673_v23 = vmax.f32 %v2746_v53, 0.0  ;;  %v2705_v14 = vadd.f32 %v2704_v25, %v8497_v8  ;;  %v2706_v2 = vpop.f32.mrb[26].mxu0 }
 0x438   :  { %v2948_v11 = vrot.slane %v8671_v31, 3  ;;  %v4867_v33 = vrot.slane %v8671_v31, 4  ;;  %v4869_v52 = vrot.slane %v8671_v31, 5  ;;  %v2840_v62 = vmax.f32 %v2703_v6, 0.0  ;;  %v2707_v12 = vpop.f32.mrb[27].mxu0 }
 0x439   :  { %v2949_v61 = vrot.slane %v8673_v23, 3  ;;  %v4868_v59 = vrot.slane %v8673_v23, 4  ;;  %v4870_v54 = vrot.slane %v8673_v23, 5  ;;  %v2841_v47 = vmax.f32 %v2705_v14, 0.0 }
 0x43a   :  { %v4872_v56 = vrot.slane %v8673_v23, 7  ;;  %v3114_v42 = vrot.slane %v2948_v11, 3  ;;  %v4871_v40 = vrot.slane %v8671_v31, 7  ;;  %v2934_v50 = vrot.slane %v2840_v62, 4 }
 0x43b   :  { %v4855_v60 = vrot.slane %v2840_v62, 5  ;;  %v3115_v55 = vrot.slane %v2949_v61, 3  ;;  %v4857_v28 = vrot.slane %v2840_v62, 6  ;;  %v2935_v22 = vrot.slane %v2841_v47, 4 }
 0x43c   :  { %v4856_v29 = vrot.slane %v2841_v47, 5  ;;  %v4858_v57 = vrot.slane %v2841_v47, 6  ;;  %v4860_v1 = vrot.slane %v2841_v47, 7  ;;  %v3251_v48 = vsel %vm1445_vm8, %v8593_v43, %v2934_v50 }
 0x43d   :  { %v3253_v27 = vsel %vm1445_vm8, %v8599_v46, %v4855_v60  ;;  %v3255_v20 = vsel %vm1445_vm8, %v8587_v5, %v4857_v28  ;;  %v4859_v21 = vrot.slane %v2840_v62, 7  ;;  %v3252_v39 = vsel %vm1445_vm8, %v8604_v32, %v2935_v22 }
 0x43e   :  { %v8694_v0 = vsel %vm3267_vm13, %v3251_v48, %v2948_v11  ;;  %v3254_v30 = vsel %vm1445_vm8, %v8609_v37, %v4856_v29  ;;  %v3256_v45 = vsel %vm1445_vm8, %v8583_v26, %v4858_v57  ;;  %v8701_v43 = vsel %vm3267_vm13, %v3252_v39, %v2949_v61 }
 0x43f   :  { %v8704_v46 = vsel %vm3267_vm13, %v3254_v30, %v4868_v59  ;;  %v8707_v5 = vsel %vm3267_vm13, %v3256_v45, %v4870_v54  ;;  %v3270_v32 = vsel %vm3267_vm13, %v3253_v27, %v4867_v33  ;;  %v3258_v41 = vsel %vm1445_vm8, %v8614_v44, %v4860_v1 }
 0x440   :  { %v8713_v4 = vsel %vm3267_vm13, %v3255_v20, %v4869_v52  ;;  %v3087_v37 = vrot.slane %v2935_v22, 4  ;;  %v3257_v26 = vsel %vm1445_vm8, %v8620_v63, %v4859_v21  ;;  %v3275_v3 = vsel %vm3267_vm13, %v3258_v41, %v3115_v55 }
 0x441   :  { %v8719_v24 = vsel %vm3267_vm13, %v3257_v26, %v3114_v42  ;;  %v4862_v36 = vrot.slane %v2841_v47, 9  ;;  %v3086_v7 = vrot.slane %v2934_v50, 4  ;;  %v4864_v18 = vrot.slane %v2841_v47, 10 }
 0x442   :  { %v3260_v38 = vsel %vm1445_vm8, %v8625_v34, %v3087_v37  ;;  %v4876_v44 = vrot.slane %v8673_v23, 9  ;;  %v4861_v10 = vrot.slane %v2840_v62, 9  ;;  %v4866_v17 = vrot.slane %v2841_v47, 11 }
 0x443   :  { %v8725_v53 = vsel %vm3267_vm13, %v3260_v38, %v4872_v56  ;;  %v3262_v63 = vsel %vm1445_vm8, %v8632_v13, %v4862_v36  ;;  %v3259_v15 = vsel %vm1445_vm8, %v8637_v58, %v3086_v7  ;;  %v3264_v6 = vsel %vm1445_vm8, %v8646_v16, %v4864_v18 }
 0x444   :  { %v8733_v9 = vsel %vm3267_vm13, %v3262_v63, %v8673_v23  ;;  %v8736_v34 = vsel %vm3267_vm13, %v3259_v15, %v4871_v40  ;;  %v3261_v25 = vsel %vm1445_vm8, %v8650_v51, %v4861_v10  ;;  %v8743_v14 = vsel %vm3267_vm13, %v3264_v6, %v4876_v44 }
 0x445   :  { %v8747_v13 = vsel %vm3267_vm13, %v3261_v25, %v8671_v31  ;;  %v4878_v58 = vrot.slane %v8673_v23, 10  ;;  %v3266_v2 = vsel %vm1445_vm8, %v8655_v19, %v4866_v17  ;;  %v4863_v11 = vrot.slane %v2840_v62, 10 }
 0x446   :  { %v4865_v33 = vrot.slane %v2840_v62, 11  ;;  %v4875_v16 = vrot.slane %v8671_v31, 9  ;;  %v4877_v51 = vrot.slane %v8671_v31, 10 }
 0x447   :  { %v8753_v52 = vsel %vm3267_vm13, %v3266_v2, %v4878_v58  ;;  %v3263_v12 = vsel %vm1445_vm8, %v8665_v49, %v4863_v11 }
 0x448   :  { %v3265_v61 = vsel %vm1445_vm8, %v8668_v35, %v4865_v33  ;;  %v8762_v23 = vsel %vm3267_vm13, %v3263_v12, %v4875_v16  ;;  %v5271_v12 = vld [vmem:[%s9196_s6 + $0x148] sm:$0xff]  }
 0x449   :  { %v8765_v19 = vsel %vm3267_vm13, %v3265_v61, %v4877_v51  ;;  %v5270_v51 = vld [vmem:[%s9196_s6 + $0x180] sm:$0xff]  }
 0x45f   :  { %v2784_v62 = vpop.f32.mrb[28].mxu0 }
 0x460   :  { %v2785_v59 = vadd.f32 %v2784_v62, %v8497_v8  ;;  %v2786_v54 = vpop.f32.mrb[29].mxu0 }
 0x461   :  { %v2787_v47 = vadd.f32 %v2786_v54, %v8497_v8  ;;  %v2788_v56 = vpop.f32.mrb[30].mxu0  ;;  %v5273_v54 = vld [vmem:[%s9196_s6 + $0x1c8] sm:$0xff]  }
 0x462   :  { %v8769_v31 = vmax.f32 %v2785_v59, 0.0  ;;  %v2789_v42 = vpop.f32.mrb[31].mxu0 }
 0x463   :  { %v8771_v49 = vmax.f32 %v2787_v47, 0.0  ;;  %v2825_v40 = vpop.f32.mrb[28].mxu1 }
 0x464   :  { %v2826_v35 = vadd.f32 %v2825_v40, %v8497_v8  ;;  %v2827_v50 = vpop.f32.mrb[29].mxu1  ;;  %v2962_v60 = vrot.slane %v8769_v31, 2  ;;  %v4879_v55 = vrot.slane %v8769_v31, 3  ;;  %v4881_v15 = vrot.slane %v8769_v31, 5 }
 0x465   :  { %v2828_v28 = vadd.f32 %v2827_v50, %v8497_v8  ;;  %v2829_v22 = vpop.f32.mrb[30].mxu1  ;;  %v2963_v29 = vrot.slane %v8771_v49, 2  ;;  %v4880_v57 = vrot.slane %v8771_v49, 3  ;;  %v4882_v1 = vrot.slane %v8771_v49, 5 }
 0x466   :  { %v8780_v48 = vmax.f32 %v2826_v35, 0.0  ;;  %v2830_v27 = vpop.f32.mrb[31].mxu1  ;;  %v3285_v20 = vsel %vm3284_vm14, %v8694_v0, %v2962_v60  ;;  %v3287_v21 = vsel %vm3284_vm14, %v3270_v32, %v4879_v55  ;;  %v3142_v39 = vrot.slane %v2962_v60, 2 }
 0x467   :  { %v8785_v30 = vmax.f32 %v2828_v28, 0.0  ;;  %v3286_v8 = vsel %vm3284_vm14, %v8701_v43, %v2963_v29  ;;  %v3288_v45 = vsel %vm3284_vm14, %v8704_v46, %v4880_v57  ;;  %v3143_v41 = vrot.slane %v2963_v29, 2  ;;  %v5275_v28 = vld [vmem:[%s9196_s6 + $0x150] sm:$0xff]   ;;  %v5274_v57 = vld [vmem:[%s9196_s6 + $0x188] sm:$0xff]  }
 0x468   :  { %v2976_v37 = vrot.slane %v8780_v48, 1  ;;  %v3292_v26 = vsel %vm3284_vm14, %v3275_v3, %v4882_v1  ;;  %v4891_v36 = vrot.slane %v8780_v48, 3  ;;  %v3289_v0 = vsel %vm3284_vm14, %v8713_v4, %v3142_v39 }
 0x469   :  { %v2977_v32 = vrot.slane %v8785_v30, 1  ;;  %v4892_v7 = vrot.slane %v8785_v30, 3  ;;  %v3290_v43 = vsel %vm3284_vm14, %v8707_v5, %v3143_v41  ;;  %v4894_v38 = vrot.slane %v8785_v30, 4  ;;  %v5268_v5 = vld [vmem:[%s9196_s6 + $0x100] sm:$0xff]  }
 0x46a   :  { %v3302_v46 = vsel %vm3301_vm15, %v3285_v20, %v2976_v37  ;;  %v3170_v18 = vrot.slane %v2976_v37, 1  ;;  %v8803_v44 = vsel %vm3301_vm15, %v3289_v0, %v4891_v36  ;;  %v4884_v3 = vrot.slane %v8771_v49, 6  ;;  %v5279_v37 = vld [vmem:[%s9196_s6 + $0x158] sm:$0xff]  }
 0x46b   :  { %v3303_v10 = vsel %vm3301_vm15, %v3286_v8, %v2977_v32  ;;  %v3171_v4 = vrot.slane %v2977_v32, 1  ;;  %v3307_v63 = vsel %vm3301_vm15, %v3290_v43, %v4892_v7  ;;  %v3309_v25 = vsel %vm3301_vm15, %v3292_v26, %v4894_v38  ;;  %v5283_v43 = vld [vmem:[%s9196_s6 + $0x160] sm:$0xff]   ;;  %v5282_v38 = vld [vmem:[%s9196_s6 + $0x198] sm:$0xff]  }
 0x46c   :  { %v3319_v17 = vpack.c.bf16 %v3303_v10, %v3303_v10  ;;  %v3304_v6 = vsel %vm3301_vm15, %v3287_v21, %v3170_v18  ;;  %v3318_v58 = vpack.c.bf16 %v3302_v46, %v3302_v46  ;;  %v3323_v11 = vpack.c.bf16 %v3307_v63, %v3307_v63  ;;  %v5277_v21 = vld [vmem:[%s9196_s6 + $0x1d0] sm:$0xff]   ;;  %v5287_v46 = vld [vmem:[%s9196_s6 + $0x168] sm:$0xff]   ;;  %v5286_v18 = vld [vmem:[%s9196_s6 + $0x1a0] sm:$0xff]  }
 0x46d   :  { %v3305_v2 = vsel %vm3301_vm15, %v3288_v45, %v3171_v4  ;;  %v3320_v33 = vpack.c.bf16 %v3304_v6, %v3304_v6  ;;  %v4896_v61 = vrot.slane %v8785_v30, 5  ;;  %v3294_v62 = vsel %vm3284_vm14, %v8725_v53, %v4884_v3  ;;  %v5272_v53 = vld [vmem:[%s9196_s6 + $0x108] sm:$0xff]   ;;  %v5291_v4 = vld [vmem:[%s9196_s6 + $0x170] sm:$0xff]  }
 0x46e   :  { %4397 = vmatprep.mubr.bf16.mxu0 %v3319_v17  ;;  %v3321_v16 = vpack.c.bf16 %v3305_v2, %v3305_v2  ;;  %v4893_v59 = vrot.slane %v8780_v48, 4  ;;  %v3291_v47 = vsel %vm3284_vm14, %v8719_v24, %v4881_v15  ;;  %v4886_v56 = vrot.slane %v8771_v49, 7  ;;  %v5289_v3 = vld [vmem:[%s9196_s6 + $0x1e8] sm:$0xff]   ;;  %v5293_v15 = vld [vmem:[%s9196_s6 + $0x1f0] sm:$0xff]   ;;  %v5299_v2 = vld [vmem:[%s9196_s6 + $0x240] sm:$0xff]  }
 0x46f   :  { %4398 = vmatmul.mubr.bf16.vlgmr.msra.gmra.mrb[32].mxu0 %v3318_v58  ;;  %v4898_v42 = vrot.slane %v8785_v30, 6  ;;  %v4883_v40 = vrot.slane %v8769_v31, 6  ;;  %v8837_v35 = vsel %vm3301_vm15, %v3294_v62, %v4896_v61  ;;  %v4895_v24 = vrot.slane %v8780_v48, 5  ;;  %v5288_v10 = vld [vmem:[%s9196_s6 + $0x128] sm:$0xff]   ;;  %v5292_v17 = vld [vmem:[%s9196_s6 + $0x130] sm:$0xff]   ;;  %v5296_v58 = vld [vmem:[%s9196_s6 + $0x138] sm:$0xff]  }
 0x470   :  { %5081 = vmatpush3.bf16.msra.mxu0 %v5268_v5  ;;  %4437 = vmatprep.mubr.bf16.mxu1 %v3321_v16  ;;  %v8840_v50 = vsel %vm3301_vm15, %v3291_v47, %v4893_v59  ;;  %v4900_v60 = vrot.slane %v8785_v30, 7  ;;  %v3325_v55 = vpack.c.bf16 %v3309_v25, %v3309_v25  ;;  %v3296_v22 = vsel %vm3284_vm14, %v8733_v9, %v4886_v56  ;;  %v5290_v63 = vld [vmem:[%s9196_s6 + $0x1a8] sm:$0xff]   ;;  %v5295_v5 = vld [vmem:[%s9196_s6 + $0x178] sm:$0xff]   ;;  %v5294_v6 = vld [vmem:[%s9196_s6 + $0x1b0] sm:$0xff]  }
 0x471   :  { %4477 = vmatprep.mubr.bf16.mxu0 %v3323_v11  ;;  %4438 = vmatmul.mubr.bf16.vlgmr.msra.gmra.mrb[32].mxu1 %v3320_v33  ;;  %v4885_v29 = vrot.slane %v8769_v31, 7  ;;  %v8854_v1 = vsel %vm3301_vm15, %v3296_v22, %v4898_v42  ;;  %v3293_v27 = vsel %vm3284_vm14, %v8736_v34, %v4883_v40  ;;  %v3298_v20 = vsel %vm3284_vm14, %v8743_v14, %v8771_v49  ;;  %v5276_v14 = vld [vmem:[%s9196_s6 + $0x110] sm:$0xff]   ;;  %v5297_v25 = vld [vmem:[%s9196_s6 + $0x1f8] sm:$0xff]   ;;  %v5301_v33 = vld [vmem:[%s9196_s6 + $0x2c0] sm:$0xff]  }
 0x472   :  { %5103 = vmatpush3.bf16.msra.mxu1 %v5270_v51  ;;  %5082 = vmatprep.subr.bf16.mxu0 %v5271_v12  ;;  %v4897_v9 = vrot.slane %v8780_v48, 6  ;;  %v8866_v39 = vsel %vm3301_vm15, %v3293_v27, %v4895_v24  ;;  %v8869_v8 = vsel %vm3301_vm15, %v3298_v20, %v4900_v60  ;;  %v4890_v34 = vrot.slane %v8771_v49, 9  ;;  %v5298_v11 = vld [vmem:[%s9196_s6 + $0x1b8] sm:$0xff]   ;;  %v5300_v16 = vld [vmem:[%s9196_s6 + $0x200] sm:$0xff]   ;;  %v5303_v12 = vld [vmem:[%s9196_s6 + $0x248] sm:$0xff]  }
 0x473   :  { %4517 = vmatprep.mubr.bf16.mxu1 %v3325_v55  ;;  %5104 = vmatprep.subr.bf16.mxu1 %v5273_v54  ;;  %v3295_v45 = vsel %vm3284_vm14, %v8747_v13, %v4885_v29  ;;  %v4899_v41 = vrot.slane %v8780_v48, 7  ;;  %v3297_v36 = vsel %vm3284_vm14, %v8762_v23, %v8769_v31  ;;  %v4889_v0 = vrot.slane %v8769_v31, 9  ;;  %v5278_v13 = vld [vmem:[%s9196_s6 + $0x190] sm:$0xff]   ;;  %v5280_v31 = vld [vmem:[%s9196_s6 + $0x118] sm:$0xff]   ;;  %v5302_v62 = vld [vmem:[%s9196_s6 + $0x280] sm:$0xff]  }
 0x474   :  { %5083 = vmatpush3.bf16.msra.mxu0 %v5272_v53  ;;  %v8882_v26 = vsel %vm3301_vm15, %v3295_v45, %v4897_v9  ;;  %v3300_v49 = vsel %vm3284_vm14, %v8753_v52, %v4890_v34  ;;  %v5281_v52 = vld [vmem:[%s9196_s6 + $0x1d8] sm:$0xff]   ;;  %v3322_v51 = vpack.c.bf16 %v8803_v44, %v8803_v44  ;;  %v3327_v61 = vpack.c.bf16 %v8837_v35, %v8837_v35  ;;  %v5305_v44 = vld [vmem:[%s9196_s6 + $0x2c8] sm:$0xff]   ;;  %v5307_v56 = vld [vmem:[%s9196_s6 + $0x250] sm:$0xff]  }
 0x475   :  { %5084 = vmatprep.subr.bf16.mxu0 %v5275_v28  ;;  %v8895_v32 = vsel %vm3301_vm15, %v3300_v49, %v8785_v30  ;;  %v8898_v7 = vsel %vm3301_vm15, %v3297_v36, %v4899_v41  ;;  %v3299_v23 = vsel %vm3284_vm14, %v8765_v19, %v4889_v0  ;;  %v5285_v19 = vld [vmem:[%s9196_s6 + $0x1e0] sm:$0xff]   ;;  %v3324_v59 = vpack.c.bf16 %v8840_v50, %v8840_v50  ;;  %v5304_v47 = vld [vmem:[%s9196_s6 + $0x208] sm:$0xff]   ;;  %v5309_v40 = vld [vmem:[%s9196_s6 + $0x2d0] sm:$0xff]  }
 0x476   :  { %5105 = vmatpush3.bf16.msra.mxu1 %v5274_v57  ;;  %v8910_v30 = vsel %vm3301_vm15, %v3299_v23, %v8780_v48  ;;  %v5284_v48 = vld [vmem:[%s9196_s6 + $0x120] sm:$0xff]   ;;  %v3329_v54 = vpack.c.bf16 %v8854_v1, %v8854_v1  ;;  %v5306_v42 = vld [vmem:[%s9196_s6 + $0x288] sm:$0xff]   ;;  %v5308_v53 = vld [vmem:[%s9196_s6 + $0x210] sm:$0xff]   ;;  %v3326_v23 = vpack.c.bf16 %v8866_v39, %v8866_v39 }
 0x477   :  { %5106 = vmatprep.subr.bf16.mxu1 %v5277_v21  ;;  %v5311_v35 = vld [vmem:[%s9196_s6 + $0x258] sm:$0xff]   ;;  %v5310_v50 = vld [vmem:[%s9196_s6 + $0x290] sm:$0xff]   ;;  %v5315_v55 = vld [vmem:[%s9196_s6 + $0x260] sm:$0xff]  }
 0x478   :  { %5085 = vmatpush3.bf16.msra.mxu0 %v5276_v14  ;;  %v5313_v24 = vld [vmem:[%s9196_s6 + $0x2d8] sm:$0xff]   ;;  %v5317_v22 = vld [vmem:[%s9196_s6 + $0x2e0] sm:$0xff]   ;;  %v5319_v57 = vld [vmem:[%s9196_s6 + $0x268] sm:$0xff]  }
 0x479   :  { %5086 = vmatprep.subr.bf16.mxu0 %v5279_v37  ;;  %v5312_v60 = vld [vmem:[%s9196_s6 + $0x218] sm:$0xff]   ;;  %v5316_v29 = vld [vmem:[%s9196_s6 + $0x220] sm:$0xff]   ;;  %v5321_v27 = vld [vmem:[%s9196_s6 + $0x2e8] sm:$0xff]  }
 0x47a   :  { %5107 = vmatpush3.bf16.msra.mxu1 %v5278_v13  ;;  %v5314_v28 = vld [vmem:[%s9196_s6 + $0x298] sm:$0xff]   ;;  %v5318_v1 = vld [vmem:[%s9196_s6 + $0x2a0] sm:$0xff]   ;;  %v5320_v20 = vld [vmem:[%s9196_s6 + $0x228] sm:$0xff]  }
 0x47b   :  { %5108 = vmatprep.subr.bf16.mxu1 %v5281_v52  ;;  %v5323_v9 = vld [vmem:[%s9196_s6 + $0x270] sm:$0xff]   ;;  %v5322_v21 = vld [vmem:[%s9196_s6 + $0x2a8] sm:$0xff]   ;;  %v5327_v45 = vld [vmem:[%s9196_s6 + $0x278] sm:$0xff]  }
 0x47c   :  { %5087 = vmatpush3.bf16.msra.mxu0 %v5280_v31  ;;  %v5325_v34 = vld [vmem:[%s9196_s6 + $0x2f0] sm:$0xff]   ;;  %v5329_v37 = vld [vmem:[%s9196_s6 + $0x2f8] sm:$0xff]   ;;  %v5331_v36 = vld [vmem:[%s9196_s6 + $0x340] sm:$0xff]  }
 0x47d   :  { %5088 = vmatprep.subr.bf16.mxu0 %v5283_v43  ;;  %v5324_v14 = vld [vmem:[%s9196_s6 + $0x230] sm:$0xff]   ;;  %v5328_v49 = vld [vmem:[%s9196_s6 + $0x238] sm:$0xff]   ;;  %v5333_v13 = vld [vmem:[%s9196_s6 + $0x3c0] sm:$0xff]   ;;  %v3331_v43 = vpack.c.bf16 %v8869_v8, %v8869_v8 }
 0x47e   :  { %5109 = vmatpush3.bf16.msra.mxu1 %v5282_v38  ;;  %v5326_v41 = vld [vmem:[%s9196_s6 + $0x2b0] sm:$0xff]   ;;  %v5330_v0 = vld [vmem:[%s9196_s6 + $0x2b8] sm:$0xff]   ;;  %v5332_v52 = vld [vmem:[%s9196_s6 + $0x300] sm:$0xff]  }
 0x47f   :  { %5110 = vmatprep.subr.bf16.mxu1 %v5285_v19  ;;  %v5335_v31 = vld [vmem:[%s9196_s6 + $0x348] sm:$0xff]   ;;  %v5334_v38 = vld [vmem:[%s9196_s6 + $0x380] sm:$0xff]   ;;  %v3328_v19 = vpack.c.bf16 %v8882_v26, %v8882_v26  ;;  %v5339_v26 = vld [vmem:[%s9196_s6 + $0x350] sm:$0xff]  }
 0x480   :  { %5089 = vmatpush3.bf16.msra.mxu0 %v5284_v48  ;;  %v5337_v39 = vld [vmem:[%s9196_s6 + $0x3c8] sm:$0xff]   ;;  %v3333_v48 = vpack.c.bf16 %v8895_v32, %v8895_v32  ;;  %v5341_v32 = vld [vmem:[%s9196_s6 + $0x3d0] sm:$0xff]  }
 0x481   :  { %5090 = vmatprep.subr.bf16.mxu0 %v5287_v46  ;;  %v5336_v8 = vld [vmem:[%s9196_s6 + $0x308] sm:$0xff]  }
 0x482   :  { %5111 = vmatpush3.bf16.msra.mxu1 %v5286_v18  ;;  %v5338_v46 = vld [vmem:[%s9196_s6 + $0x388] sm:$0xff]   ;;  %v5340_v18 = vld [vmem:[%s9196_s6 + $0x310] sm:$0xff]  }
 0x483   :  { %5112 = vmatprep.subr.bf16.mxu1 %v5289_v3  ;;  %v5343_v3 = vld [vmem:[%s9196_s6 + $0x358] sm:$0xff]  }
 0x484   :  { %5091 = vmatpush3.bf16.msra.mxu0 %v5288_v10  ;;  %v5342_v10 = vld [vmem:[%s9196_s6 + $0x390] sm:$0xff]  }
 0x485   :  { %5092 = vmatprep.subr.bf16.mxu0 %v5291_v4  ;;  %v5345_v4 = vld [vmem:[%s9196_s6 + $0x3d8] sm:$0xff]  }
 0x486   :  { %5113 = vmatpush3.bf16.msra.mxu1 %v5290_v63  ;;  %v5344_v63 = vld [vmem:[%s9196_s6 + $0x318] sm:$0xff]  }
 0x487   :  { %5114 = vmatprep.subr.bf16.mxu1 %v5293_v15  ;;  %v5347_v15 = vld [vmem:[%s9196_s6 + $0x360] sm:$0xff]  }
 0x488   :  { %5093 = vmatpush3.bf16.msra.mxu0 %v5292_v17  ;;  %v5346_v17 = vld [vmem:[%s9196_s6 + $0x398] sm:$0xff]  }
 0x489   :  { %5094 = vmatprep.subr.bf16.mxu0 %v5295_v5  ;;  %v5349_v5 = vld [vmem:[%s9196_s6 + $0x3e0] sm:$0xff]  }
 0x48a   :  { %5115 = vmatpush3.bf16.msra.mxu1 %v5294_v6  ;;  %v5348_v6 = vld [vmem:[%s9196_s6 + $0x320] sm:$0xff]  }
 0x48b   :  { %5116 = vmatprep.subr.bf16.mxu1 %v5297_v25  ;;  %v5351_v25 = vld [vmem:[%s9196_s6 + $0x368] sm:$0xff]  }
 0x48c   :  { %5095 = vmatpush3.bf16.msra.mxu0 %v5296_v58  ;;  %v5350_v58 = vld [vmem:[%s9196_s6 + $0x3a0] sm:$0xff]  }
 0x48d   :  { %5124 = vmatprep.subr.bf16.mxu0 %v5299_v2  ;;  %v5353_v2 = vld [vmem:[%s9196_s6 + $0x3e8] sm:$0xff]  }
 0x48e   :  { %5117 = vmatpush3.bf16.msra.mxu1 %v5298_v11  ;;  %v5352_v11 = vld [vmem:[%s9196_s6 + $0x328] sm:$0xff]  }
 0x48f   :  { %4478 = vmatmul.mubr.bf16.vlgmr.msra.gmra.mrb[36].mxu0 %v3322_v51  ;;  %5146 = vmatprep.subr.bf16.mxu1 %v5301_v33  ;;  %v5355_v33 = vld [vmem:[%s9196_s6 + $0x370] sm:$0xff]  }
 0x490   :  { %5125 = vmatpush3.bf16.msra.mxu0 %v5300_v16  ;;  %4557 = vmatprep.mubr.bf16.mxu0 %v3327_v61  ;;  %v5354_v16 = vld [vmem:[%s9196_s6 + $0x3a8] sm:$0xff]   ;;  %v5357_v51 = vld [vmem:[%s9196_s6 + $0x3f0] sm:$0xff]   ;;  %v5359_v61 = vld [vmem:[%s9196_s6 + $0x378] sm:$0xff]  }
 0x491   :  { %4518 = vmatmul.mubr.bf16.vlgmr.msra.gmra.mrb[36].mxu1 %v3324_v59  ;;  %5126 = vmatprep.subr.bf16.mxu0 %v5303_v12  ;;  %v5356_v12 = vld [vmem:[%s9196_s6 + $0x330] sm:$0xff]   ;;  %v5361_v59 = vld [vmem:[%s9196_s6 + $0x3f8] sm:$0xff]  }
 0x492   :  { %5147 = vmatpush3.bf16.msra.mxu1 %v5302_v62  ;;  %4597 = vmatprep.mubr.bf16.mxu1 %v3329_v54  ;;  %v5358_v62 = vld [vmem:[%s9196_s6 + $0x3b0] sm:$0xff]   ;;  %v5362_v54 = vld [vmem:[%s9196_s6 + $0x3b8] sm:$0xff]  }
 0x493   :  { %5148 = vmatprep.subr.bf16.mxu1 %v5305_v44  ;;  %v5360_v44 = vld [vmem:[%s9196_s6 + $0x338] sm:$0xff]  }
 0x494   :  { %5127 = vmatpush3.bf16.msra.mxu0 %v5304_v47  ;;  %v3330_v47 = vpack.c.bf16 %v8898_v7, %v8898_v7 }
 0x495   :  { %5128 = vmatprep.subr.bf16.mxu0 %v5307_v56  ;;  %v3332_v56 = vpack.c.bf16 %v8910_v30, %v8910_v30  ;;  %v4903_v30 = vld [vmem:[%s9198_s7] ss:$0 sm:$0xff] }
 0x496   :  { %5149 = vmatpush3.bf16.msra.mxu1 %v5306_v42  ;;  %v5396_v42 = vmov 0.0  }
 0x497   :  { %5150 = vmatprep.subr.bf16.mxu1 %v5309_v40  ;;  %v5363_v40 = vld [vmem:[%s9197_s8] sm:$0xff]  }
 0x498   :  { %5129 = vmatpush3.bf16.msra.mxu0 %v5308_v53  ;;  %v5364_v53 = vld [vmem:[%s9197_s8 + $0x8] sm:$0xff]  }
 0x499   :  { %5130 = vmatprep.subr.bf16.mxu0 %v5311_v35 }
 0x49a   :  { %5151 = vmatpush3.bf16.msra.mxu1 %v5310_v50 }
 0x49b   :  { %5152 = vmatprep.subr.bf16.mxu1 %v5313_v24 }
 0x49c   :  { %5131 = vmatpush3.bf16.msra.mxu0 %v5312_v60 }
 0x49d   :  { %5132 = vmatprep.subr.bf16.mxu0 %v5315_v55 }
 0x49e   :  { %5153 = vmatpush3.bf16.msra.mxu1 %v5314_v28 }
 0x49f   :  { %5154 = vmatprep.subr.bf16.mxu1 %v5317_v22 }
 0x4a0   :  { %5133 = vmatpush3.bf16.msra.mxu0 %v5316_v29 }
 0x4a1   :  { %5134 = vmatprep.subr.bf16.mxu0 %v5319_v57 }
 0x4a2   :  { %5155 = vmatpush3.bf16.msra.mxu1 %v5318_v1 }
 0x4a3   :  { %5156 = vmatprep.subr.bf16.mxu1 %v5321_v27 }
 0x4a4   :  { %5135 = vmatpush3.bf16.msra.mxu0 %v5320_v20 }
 0x4a5   :  { %5136 = vmatprep.subr.bf16.mxu0 %v5323_v9 }
 0x4a6   :  { %5157 = vmatpush3.bf16.msra.mxu1 %v5322_v21 }
 0x4a7   :  { %5158 = vmatprep.subr.bf16.mxu1 %v5325_v34 }
 0x4a8   :  { %5137 = vmatpush3.bf16.msra.mxu0 %v5324_v14 }
 0x4a9   :  { %5138 = vmatprep.subr.bf16.mxu0 %v5327_v45 }
 0x4aa   :  { %5159 = vmatpush3.bf16.msra.mxu1 %v5326_v41 }
 0x4ab   :  { %5160 = vmatprep.subr.bf16.mxu1 %v5329_v37 }
 0x4ac   :  { %5139 = vmatpush3.bf16.msra.mxu0 %v5328_v49 }
 0x4ad   :  { %5168 = vmatprep.subr.bf16.mxu0 %v5331_v36 }
 0x4ae   :  { %5161 = vmatpush3.bf16.msra.mxu1 %v5330_v0 }
 0x4af   :  { %4558 = vmatmul.mubr.bf16.vlgmr.msra.gmra.mrb[40].mxu0 %v3326_v23  ;;  %5190 = vmatprep.subr.bf16.mxu1 %v5333_v13 }
 0x4b0   :  { %5169 = vmatpush3.bf16.msra.mxu0 %v5332_v52  ;;  %4637 = vmatprep.mubr.bf16.mxu0 %v3331_v43 }
 0x4b1   :  { %4598 = vmatmul.mubr.bf16.vlgmr.msra.gmra.mrb[40].mxu1 %v3328_v19  ;;  %5170 = vmatprep.subr.bf16.mxu0 %v5335_v31 }
 0x4b2   :  { %5191 = vmatpush3.bf16.msra.mxu1 %v5334_v38  ;;  %4677 = vmatprep.mubr.bf16.mxu1 %v3333_v48 }
 0x4b3   :  { %5192 = vmatprep.subr.bf16.mxu1 %v5337_v39 }
 0x4b4   :  { %5171 = vmatpush3.bf16.msra.mxu0 %v5336_v8 }
 0x4b5   :  { %5172 = vmatprep.subr.bf16.mxu0 %v5339_v26 }
 0x4b6   :  { %5193 = vmatpush3.bf16.msra.mxu1 %v5338_v46 }
 0x4b7   :  { %5194 = vmatprep.subr.bf16.mxu1 %v5341_v32 }
 0x4b8   :  { %5173 = vmatpush3.bf16.msra.mxu0 %v5340_v18 }
 0x4b9   :  { %5174 = vmatprep.subr.bf16.mxu0 %v5343_v3 }
 0x4ba   :  { %5195 = vmatpush3.bf16.msra.mxu1 %v5342_v10 }
 0x4bb   :  { %5196 = vmatprep.subr.bf16.mxu1 %v5345_v4 }
 0x4bc   :  { %5175 = vmatpush3.bf16.msra.mxu0 %v5344_v63 }
 0x4bd   :  { %5176 = vmatprep.subr.bf16.mxu0 %v5347_v15 }
 0x4be   :  { %5197 = vmatpush3.bf16.msra.mxu1 %v5346_v17 }
 0x4bf   :  { %5198 = vmatprep.subr.bf16.mxu1 %v5349_v5 }
 0x4c0   :  { %5177 = vmatpush3.bf16.msra.mxu0 %v5348_v6 }
 0x4c1   :  { %5178 = vmatprep.subr.bf16.mxu0 %v5351_v25 }
 0x4c2   :  { %5199 = vmatpush3.bf16.msra.mxu1 %v5350_v58 }
 0x4c3   :  { %5200 = vmatprep.subr.bf16.mxu1 %v5353_v2 }
 0x4c4   :  { %5179 = vmatpush3.bf16.msra.mxu0 %v5352_v11 }
 0x4c5   :  { %5180 = vmatprep.subr.bf16.mxu0 %v5355_v33 }
 0x4c6   :  { %5201 = vmatpush3.bf16.msra.mxu1 %v5354_v16  ;;  %v5032_v16 = vld [vmem:[%s9199_s9] ss:$0 sm:$0xff] }
 0x4c7   :  { %5202 = vmatprep.subr.bf16.mxu1 %v5357_v51 }
 0x4c8   :  { %5181 = vmatpush3.bf16.msra.mxu0 %v5356_v12 }
 0x4c9   :  { %5182 = vmatprep.subr.bf16.mxu0 %v5359_v61 }
 0x4ca   :  { %5203 = vmatpush3.bf16.msra.mxu1 %v5358_v62 }
 0x4cb   :  { %5204 = vmatprep.subr.bf16.mxu1 %v5361_v59 }
 0x4cc   :  { %5183 = vmatpush3.bf16.msra.mxu0 %v5360_v44 }
 0x4cd   :  { %5215 = vmatprep.subr.bf16.mxu0 %v5396_v42 }
 0x4ce   :  { %5205 = vmatpush3.bf16.msra.mxu1 %v5362_v54 }
 0x4cf   :  { %4638 = vmatmul.mubr.bf16.vlgmr.msra.gmra.mrb[44].mxu0 %v3330_v47 }
 0x4d0   :  { %5219 = vmatprep.mubr.msk.bf16.mxu0 %vm5397_vm0, %v5396_v42  ;;  %5216 = vmatpush3.bf16.msra.mxu0 %v5363_v40 }
 0x4d1   :  { %4678 = vmatmul.mubr.bf16.vlgmr.msra.gmra.mrb[44].mxu1 %v3332_v56  ;;  %5217 = vmatprep.subr.bf16.mxu0 %v5396_v42 }
 0x4d4   :  { %5218 = vmatpush3.bf16.msra.mxu0 %v5364_v53 }
 0x542   :  { %v5052_v7 = vpop.f32.mrb[32].mxu0 }
 0x543   :  { %v5053_v35 = vpop.f32.mrb[33].mxu0 }
 0x544   :  { %v5054_v50 = vadd.f32 %v5053_v35, %v5052_v7  ;;  %v5055_v24 = vpop.f32.mrb[34].mxu0  ;;  %v5074_v60 = vpop.f32.mrb[32].mxu1 }
 0x545   :  { %v5056_v55 = vpop.f32.mrb[35].mxu0  ;;  %v5075_v28 = vpop.f32.mrb[33].mxu1 }
 0x546   :  { %v4400_v22 = vadd.f32 %v5054_v50, %v4903_v30  ;;  %v5076_v29 = vadd.f32 %v5075_v28, %v5074_v60  ;;  %v5077_v57 = vpop.f32.mrb[34].mxu1 }
 0x547   :  { %v5078_v1 = vpop.f32.mrb[35].mxu1 }
 0x548   :  { %v4440_v27 = vadd.f32 %v5076_v29, %v4400_v22 }
 0x562   :  { %v5096_v20 = vpop.f32.mrb[36].mxu0 }
 0x563   :  { %v5097_v9 = vpop.f32.mrb[37].mxu0 }
 0x564   :  { %v5098_v21 = vadd.f32 %v5097_v9, %v5096_v20  ;;  %v5099_v34 = vpop.f32.mrb[38].mxu0  ;;  %v5118_v14 = vpop.f32.mrb[36].mxu1 }
 0x565   :  { %v5100_v45 = vpop.f32.mrb[39].mxu0  ;;  %v5119_v41 = vpop.f32.mrb[37].mxu1 }
 0x566   :  { %v4480_v37 = vadd.f32 %v5098_v21, %v4440_v27  ;;  %v5120_v49 = vadd.f32 %v5119_v41, %v5118_v14  ;;  %v5121_v36 = vpop.f32.mrb[38].mxu1 }
 0x567   :  { %v5122_v0 = vpop.f32.mrb[39].mxu1 }
 0x568   :  { %v4520_v13 = vadd.f32 %v5120_v49, %v4480_v37 }
 0x582   :  { %v5140_v52 = vpop.f32.mrb[40].mxu0 }
 0x583   :  { %v5141_v23 = vpop.f32.mrb[41].mxu0 }
 0x584   :  { %v5142_v31 = vadd.f32 %v5141_v23, %v5140_v52  ;;  %v5143_v43 = vpop.f32.mrb[42].mxu0  ;;  %v5162_v38 = vpop.f32.mrb[40].mxu1 }
 0x585   :  { %v5144_v19 = vpop.f32.mrb[43].mxu0  ;;  %v5163_v39 = vpop.f32.mrb[41].mxu1 }
 0x586   :  { %v4560_v48 = vadd.f32 %v5142_v31, %v4520_v13  ;;  %v5164_v8 = vadd.f32 %v5163_v39, %v5162_v38  ;;  %v5165_v26 = vpop.f32.mrb[42].mxu1 }
 0x587   :  { %v5166_v46 = vpop.f32.mrb[43].mxu1 }
 0x588   :  { %v4600_v32 = vadd.f32 %v5164_v8, %v4560_v48 }
 0x5a2   :  { %v5184_v18 = vpop.f32.mrb[44].mxu0 }
 0x5a3   :  { %v5185_v3 = vpop.f32.mrb[45].mxu0 }
 0x5a4   :  { %v5186_v10 = vadd.f32 %v5185_v3, %v5184_v18  ;;  %v5187_v4 = vpop.f32.mrb[46].mxu0  ;;  %v5206_v63 = vpop.f32.mrb[44].mxu1 }
 0x5a5   :  { %v5188_v15 = vpop.f32.mrb[47].mxu0  ;;  %v5207_v17 = vpop.f32.mrb[45].mxu1 }
 0x5a6   :  { %v4640_v5 = vadd.f32 %v5186_v10, %v4600_v32  ;;  %v5208_v6 = vadd.f32 %v5207_v17, %v5206_v63  ;;  %v5209_v25 = vpop.f32.mrb[46].mxu1 }
 0x5a7   :  { %v5210_v58 = vpop.f32.mrb[47].mxu1 }
 0x5a8   :  { %v4680_v2 = vadd.f32 %v5208_v6, %v4640_v5 }
 0x5aa   :  { %v4685_v11 = vmax.f32 %v4680_v2, 0.0 }
 0x5ac   :  { %v4686_v33 = vpack.c.bf16 %v4685_v11, %v4685_v11 }
 0x5ae   :  { %5220 = vmatmul.mubr.msk.bf16.vlgmr.msra.gmra.mrb[48].mxu0 %vm4710_vm1, %v4686_v33 }
 0x681   :  { %v4748_v51 = vpop.f32.mrb[48].mxu0 }
 0x682   :  { %v4749_v12 = vadd.f32 %v5032_v16, %v4748_v51  ;;  %v5221_v61 = vpop.f32.mrb[49].mxu0 }
 0x683   :  { %v4751_v62 = vpop.f32.mrb[50].mxu0 }
 0x684   :  { %4754 = vmax.xlane.f32.xlu1 %v4749_v12  ;;  %v5222_v59 = vpop.f32.mrb[51].mxu0 }
 0x711   :  { %v4755_v44 = vpop.xlane.xlu1 %4754 }
 0x712   :  { %v4756_v54 = vsub.f32 %v4749_v12, %v4755_v44 }
 0x714   :  { %v4757_v47 = vmul.f32 1.442695, %v4756_v54 }
 0x716   :  { %5365 = vpow2.f32 %v4757_v47 }
 0x720   :  { %v5366_v56 = vpop.eup %5365 }
 0x721   :  { %4759 = vadd.xlane.f32.xlu0 %v5366_v56 }
 0x7ae   :  { %v4760_v42 = vpop.xlane.xlu0 %4759 }
 0x7af   :  { %5367 = vrcp.f32 %v4760_v42 }
 0x7b9   :  { %v5368_v40 = vpop.eup %5367 }
 0x7ba   :  { %v4762_v53 = vmul.f32 %v5368_v40, %v4760_v42 }
 0x7bc   :  { %v4763_v7 = vsub.f32 2.0, %v4762_v53 }
 0x7be   :  { %v4764_v30 = vmul.f32 %v5368_v40, %v4763_v7 }
 0x7c0   :  { %v4765_v35 = vmul.f32 %v5366_v56, %v4764_v30 }
 0x7c2   :  { %4766 = vst [vmem:[%s9200_s10] sm:$0xff] %v4765_v35 }

</bundles_post_ra>
